<compile_context>
chip_gen: v7x
topology: tpu7x:2x2x1
jax: 0.10.0
libtpu: 0.0.40
codegen_flags: <defaults>
</compile_context>

<pallas_src>
import functools

import jax
import jax.numpy as jnp
from jax.experimental import pallas as pl
from jax.experimental.pallas import tpu as pltpu


# ----------------------------------------------------------------------------
# VMEM budget / tiling helpers
# ----------------------------------------------------------------------------
_LANE = 128
_NEG_SLOPE = 0.2


def _round_up(x, m):
    return ((x + m - 1) // m) * m


def _cdiv(a, b):
    return (a + b - 1) // b


def _vmem_limit_bytes():
    # Physical VMEM: 128 MiB (v5e/v6e), 64 MiB per TensorCore (v7x).  A 40 MiB
    # scoped limit stays safely under every generation's capacity while lifting
    # the 16 MiB (v5e) / 32 MiB defaults enough to double-buffer the full-K
    # weight tile plus a large A tile.
    cap = 64 * 1024 * 1024
    try:
        cap = int(pltpu.get_tpu_info().vmem_capacity_bytes)
    except Exception:
        pass
    return min(40 * 1024 * 1024, (cap * 5) // 8)


_VMEM_LIMIT = _vmem_limit_bytes()
_TILE_BUDGET = _VMEM_LIMIT // 2  # working-set target (Pallas double-buffers)


def _pick_tm(M, K, Coutp):
    """Largest M tile whose double-buffered working set fits the VMEM budget."""
    tm = 128
    for cand in (512, 256, 128):
        work = (2 * cand * K * 2        # bf16 A tile, double-buffered
                + 2 * K * Coutp * 2     # bf16 full weight, double-buffered
                + 2 * cand * Coutp * 4  # f32 output tile, double-buffered
                + 4 * Coutp * 4)        # bias / stats rows
        if work <= _TILE_BUDGET:
            tm = cand
            break
    # TODO(synk): if even tm=128 overflowed (huge K) we'd add a K reduction grid
    # axis with an f32 VMEM accumulator (P3); not needed here (K <= 8192).
    return min(tm, _round_up(M, _LANE))


# ----------------------------------------------------------------------------
# Pallas kernels
# ----------------------------------------------------------------------------
def _conv_bias_act_kernel(a_ref, b_ref, bias_ref, y_ref, *, apply_lrelu, neg_slope):
    """One M-tile of im2col conv: bf16 (tm,K) @ bf16 (K,Coutp) + bias [+ LReLU]."""
    acc = jnp.dot(a_ref[...], b_ref[...], preferred_element_type=jnp.float32)
    acc = acc + bias_ref[...]                           # (1, Coutp) broadcast
    if apply_lrelu:
        acc = jnp.where(acc >= 0, acc, neg_slope * acc)
    y_ref[...] = acc


def _conv_stats_kernel(a_ref, b_ref, y_ref, psum_ref, psq_ref, *, m_total, tm):
    """Conv matmul for BN layers (no bias/act) with fused per-tile channel
    sum / sum-of-squares partials (tail rows masked)."""
    acc = jnp.dot(a_ref[...], b_ref[...], preferred_element_type=jnp.float32)
    y_ref[...] = acc
    if m_total % tm != 0:
        rows = jax.lax.broadcasted_iota(jnp.int32, (tm, 1), 0) + pl.program_id(0) * tm
        valid = rows < m_total
        s = jnp.where(valid, acc, 0.0)
        sq = jnp.where(valid, acc * acc, 0.0)
    else:
        s, sq = acc, acc * acc
    c = acc.shape[1]
    psum_ref[...] = jnp.sum(s, axis=0).reshape(1, 1, c)
    psq_ref[...] = jnp.sum(sq, axis=0).reshape(1, 1, c)


def _bn_lrelu_kernel(x_ref, scale_ref, shift_ref, o_ref, *, neg_slope):
    """Apply precomputed per-channel affine (BatchNorm) + LeakyReLU(0.2)."""
    y = x_ref[...] * scale_ref[...] + shift_ref[...]
    o_ref[...] = jnp.where(y >= 0, y, neg_slope * y)


# ----------------------------------------------------------------------------
# Pallas wrappers
# ----------------------------------------------------------------------------
def conv_bias_act(patches, w_mat, bias, *, apply_lrelu):
    """patches [M,K] bf16, w_mat [K,Coutp] bf16, bias [Coutp] f32 -> [M,Coutp] f32."""
    M, K = patches.shape
    Coutp = w_mat.shape[1]
    tm = _pick_tm(M, K, Coutp)
    grid_m = _cdiv(M, tm)
    kernel = functools.partial(_conv_bias_act_kernel,
                               apply_lrelu=apply_lrelu, neg_slope=_NEG_SLOPE)
    return pl.pallas_call(
        kernel,
        out_shape=jax.ShapeDtypeStruct((M, Coutp), jnp.float32),
        grid=(grid_m,),
        in_specs=[
            pl.BlockSpec((tm, K), lambda i: (i, 0)),       # A tile
            pl.BlockSpec((K, Coutp), lambda i: (0, 0)),    # full weight
            pl.BlockSpec((1, Coutp), lambda i: (0, 0)),    # bias row
        ],
        out_specs=pl.BlockSpec((tm, Coutp), lambda i: (i, 0)),
        compiler_params=pltpu.CompilerParams(
            dimension_semantics=("parallel",),
            vmem_limit_bytes=_VMEM_LIMIT),
    )(patches, w_mat, bias.reshape(1, Coutp).astype(jnp.float32))


def conv_with_stats(patches, w_mat):
    """Conv matmul for BatchNorm layers; returns y plus per-tile channel
    partial sums / sums-of-squares (final tiny reduce happens in JAX)."""
    M, K = patches.shape
    Coutp = w_mat.shape[1]
    tm = _pick_tm(M, K, Coutp)
    grid_m = _cdiv(M, tm)
    kernel = functools.partial(_conv_stats_kernel, m_total=M, tm=tm)
    y, psum, psq = pl.pallas_call(
        kernel,
        out_shape=(
            jax.ShapeDtypeStruct((M, Coutp), jnp.float32),
            jax.ShapeDtypeStruct((grid_m, 1, Coutp), jnp.float32),
            jax.ShapeDtypeStruct((grid_m, 1, Coutp), jnp.float32),
        ),
        grid=(grid_m,),
        in_specs=[
            pl.BlockSpec((tm, K), lambda i: (i, 0)),
            pl.BlockSpec((K, Coutp), lambda i: (0, 0)),
        ],
        out_specs=(
            pl.BlockSpec((tm, Coutp), lambda i: (i, 0)),
            pl.BlockSpec((1, 1, Coutp), lambda i: (i, 0, 0)),
            pl.BlockSpec((1, 1, Coutp), lambda i: (i, 0, 0)),
        ),
        compiler_params=pltpu.CompilerParams(
            dimension_semantics=("parallel",),
            vmem_limit_bytes=_VMEM_LIMIT),
    )(patches, w_mat)
    return y, psum.reshape(grid_m, Coutp), psq.reshape(grid_m, Coutp)


def bn_lrelu(x, scale, shift):
    """x: [M, C] f32; scale/shift: [C] (folded BatchNorm) -> [M, C] f32."""
    M, C = x.shape
    tb = min(1024, _round_up(M, _LANE))
    while tb > 128 and (4 * tb * C * 4) > _TILE_BUDGET:
        tb //= 2
    grid_m = _cdiv(M, tb)
    return pl.pallas_call(
        functools.partial(_bn_lrelu_kernel, neg_slope=_NEG_SLOPE),
        out_shape=jax.ShapeDtypeStruct((M, C), jnp.float32),
        grid=(grid_m,),
        in_specs=[
            pl.BlockSpec((tb, C), lambda i: (i, 0)),
            pl.BlockSpec((1, C), lambda i: (0, 0)),
            pl.BlockSpec((1, C), lambda i: (0, 0)),
        ],
        out_specs=pl.BlockSpec((tb, C), lambda i: (i, 0)),
        compiler_params=pltpu.CompilerParams(
            dimension_semantics=("parallel",),
            vmem_limit_bytes=_VMEM_LIMIT),
    )(x, scale.reshape(1, C).astype(jnp.float32),
      shift.reshape(1, C).astype(jnp.float32))


# ----------------------------------------------------------------------------
# Glue: im2col, weight layout, parameter init, forward
# ----------------------------------------------------------------------------
def im2col(x_nhwc, k=4, stride=2, pad=1):
    """x: [N,H,W,C] -> bf16 patches [N*Ho*Wo, k*k*C] (ordered kh, kw, C)."""
    # TODO(synk): in-kernel tap-gather (manual DMA of overlapping row windows)
    # would avoid materializing this 4-16x expansion in HBM.
    x = jnp.pad(x_nhwc, ((0, 0), (pad, pad), (pad, pad), (0, 0)))
    N, Hp, Wp, C = x.shape
    Ho = (Hp - k) // stride + 1
    Wo = (Wp - k) // stride + 1
    cols = []
    for di in range(k):
        for dj in range(k):
            cols.append(
                x[:, di:di + stride * (Ho - 1) + 1:stride,
                     dj:dj + stride * (Wo - 1) + 1:stride, :]
            )
    p = jnp.stack(cols, axis=3)                         # [N, Ho, Wo, k*k, C]
    return p.reshape(N * Ho * Wo, k * k * C).astype(jnp.bfloat16), (N, Ho, Wo)


def w_to_mat_padded(w, coutp):
    """[Cout,Cin,kh,kw] -> bf16 [kh*kw*Cin, coutp] (lane-dense, zero-padded cols)."""
    cout, cin, kh, kw = w.shape
    m = jnp.transpose(w, (2, 3, 1, 0)).reshape(kh * kw * cin, cout)
    if coutp > cout:
        m = jnp.pad(m, ((0, 0), (0, coutp - cout)))
    return m.astype(jnp.bfloat16)


def init_params(key, input_nc, ndf=64, n_layers=3):
    """Mirror NLayerDiscriminator.__init__ with norm_layer=BatchNorm2d (use_bias=False)."""
    layer_cfg = []  # (Cin, Cout, stride, use_bias, use_bn, use_lrelu)
    layer_cfg.append((input_nc, ndf, 2, True, False, True))
    nf_mult = 1
    for n in range(1, n_layers):
        nf_prev, nf_mult = nf_mult, min(2 ** n, 8)
        layer_cfg.append((ndf * nf_prev, ndf * nf_mult, 2, False, True, True))
    nf_prev, nf_mult = nf_mult, min(2 ** n_layers, 8)
    layer_cfg.append((ndf * nf_prev, ndf * nf_mult, 1, False, True, True))
    layer_cfg.append((ndf * nf_mult, 1, 1, True, False, False))

    params = []
    for (cin, cout, stride, use_bias, use_bn, use_lrelu) in layer_cfg:
        key, kw_, kb_ = jax.random.split(key, 3)
        w = 0.02 * jax.random.normal(kw_, (cout, cin, 4, 4), jnp.float32)
        b = (0.01 * jax.random.normal(kb_, (cout,), jnp.float32)
             if use_bias else None)
        params.append(dict(
            w=w, b=b,
            gamma=jnp.ones((cout,), jnp.float32) if use_bn else None,
            beta=jnp.zeros((cout,), jnp.float32) if use_bn else None,
            stride=stride, bn=use_bn, lrelu=use_lrelu,
        ))
    return params


def nlayer_discriminator_forward(x_nchw, params):
    """Returns NCHW output, matching PyTorch forward (BatchNorm in train mode)."""
    x = jnp.transpose(x_nchw, (0, 2, 3, 1)).astype(jnp.float32)  # NHWC
    for p in params:
        patches, (N, Ho, Wo) = im2col(x, k=4, stride=p["stride"], pad=1)
        cout = p["w"].shape[0]
        coutp = _round_up(cout, _LANE)                 # lane-dense output channels
        w_mat = w_to_mat_padded(p["w"], coutp)
        if p["bn"]:
            y, psum, psq = conv_with_stats(patches, w_mat)
            M = y.shape[0]
            tot = jnp.sum(psum, axis=0)
            totsq = jnp.sum(psq, axis=0)
            mean = tot / M
            var = jnp.maximum(totsq / M - mean * mean, 0.0)  # biased, PyTorch train
            gamma = jnp.pad(p["gamma"], (0, coutp - cout), constant_values=1.0)
            beta = jnp.pad(p["beta"], (0, coutp - cout))
            scale = gamma * jax.lax.rsqrt(var + 1e-5)
            shift = beta - mean * scale
            y = bn_lrelu(y, scale, shift)
        else:
            bias = jnp.pad(p["b"], (0, coutp - cout))
            y = conv_bias_act(patches, w_mat, bias, apply_lrelu=p["lrelu"])
        x = y[:, :cout].reshape(N, Ho, Wo, cout)
    return jnp.transpose(x, (0, 3, 1, 2))              # back to NCHW


if __name__ == "__main__":
    key = jax.random.PRNGKey(0)
    kx, kp = jax.random.split(key)

    # Small config consistent with the module: input_nc=4, ndf=16, n_layers=3.
    N, input_nc, H, W = 2, 4, 32, 32
    x = jax.random.normal(kx, (N, input_nc, H, W), jnp.float32)
    params = init_params(kp, input_nc, ndf=16, n_layers=3)

    fwd = jax.jit(lambda inp: nlayer_discriminator_forward(inp, params))
    out = jax.block_until_ready(fwd(x))
    assert out.shape == (N, 1, 2, 2), out.shape
    assert bool(jnp.all(jnp.isfinite(out)))
    print("KERNEL_OK")
</pallas_src>

<mosaic_0001>
module attributes {stable_mosaic.version = 11 : i64} {
  func.func @_conv_bias_act_kernel(%arg0: i32, %arg1: memref<512x64xbf16, #tpu.memory_space<vmem>>, %arg2: memref<64x128xbf16, #tpu.memory_space<vmem>>, %arg3: memref<1x128xf32, #tpu.memory_space<vmem>>, %arg4: memref<512x128xf32, #tpu.memory_space<vmem>>) attributes {dimension_semantics = [#tpu.dimension_semantics<parallel>], iteration_bounds = array<i64: 1>, scalar_prefetch = 0 : i64, scratch_operands = 0 : i64, tpu.core_type = #tpu.core_type<tc>, window_params = [{transform_indices = @transform_0, window_bounds = array<i64: 512, 64>}, {pipeline_mode = #tpu.pipeline_mode<synchronous>, transform_indices = @transform_1, window_bounds = array<i64: 64, 128>}, {pipeline_mode = #tpu.pipeline_mode<synchronous>, transform_indices = @transform_2, window_bounds = array<i64: 1, 128>}, {transform_indices = @transform_3, window_bounds = array<i64: 512, 128>}]} {
    %c0 = arith.constant 0 : index
    %c0_0 = arith.constant 0 : index
    %0 = vector.load %arg1[%c0, %c0_0] : memref<512x64xbf16, #tpu.memory_space<vmem>>, vector<512x64xbf16>
    %c0_1 = arith.constant 0 : index
    %c0_2 = arith.constant 0 : index
    %1 = vector.load %arg2[%c0_1, %c0_2] : memref<64x128xbf16, #tpu.memory_space<vmem>>, vector<64x128xbf16>
    %cst = arith.constant dense<0.000000e+00> : vector<512x128xf32>
    %2 = tpu.matmul %0, %1, %cst {dimension_numbers = #tpu.dot_dimension_numbers<[1], [0], [0], [1], [0, 0, 1, 1], [], []>} : vector<512x64xbf16>, vector<64x128xbf16>, vector<512x128xf32> -> vector<512x128xf32>
    %c0_3 = arith.constant 0 : index
    %c0_4 = arith.constant 0 : index
    %3 = vector.load %arg3[%c0_3, %c0_4] : memref<1x128xf32, #tpu.memory_space<vmem>>, vector<1x128xf32>
    %4 = vector.broadcast %3 : vector<1x128xf32> to vector<512x128xf32>
    %5 = arith.addf %2, %4 : vector<512x128xf32>
    %cst_5 = arith.constant 0.000000e+00 : f32
    %6 = vector.broadcast %cst_5 : f32 to vector<512x128xf32>
    %7 = arith.cmpf oge, %5, %6 : vector<512x128xf32>
    %cst_6 = arith.constant 2.000000e-01 : f32
    %8 = vector.broadcast %cst_6 : f32 to vector<512x128xf32>
    %9 = arith.mulf %8, %5 : vector<512x128xf32>
    %10 = arith.select %7, %5, %9 : vector<512x128xi1>, vector<512x128xf32>
    %c0_7 = arith.constant 0 : index
    %c0_8 = arith.constant 0 : index
    %11 = vector.load %arg4[%c0_7, %c0_8] : memref<512x128xf32, #tpu.memory_space<vmem>>, vector<512x128xf32>
    tpu.vector_store %arg4[%c0_7, %c0_8], %10 {strides = array<i32>} : memref<512x128xf32, #tpu.memory_space<vmem>>, vector<512x128xf32>,
    return
  }
  func.func @transform_0(%arg0: i32) -> (i32, i32) {
    %c0_i32 = arith.constant 0 : i32
    %c0_i32_0 = arith.constant 0 : i32
    return %arg0, %c0_i32 : i32, i32
  }
  func.func @transform_1(%arg0: i32) -> (i32, i32) {
    %c0_i32 = arith.constant 0 : i32
    %c0_i32_0 = arith.constant 0 : i32
    %c0_i32_1 = arith.constant 0 : i32
    return %c0_i32, %c0_i32_0 : i32, i32
  }
  func.func @transform_2(%arg0: i32) -> (i32, i32) {
    %c0_i32 = arith.constant 0 : i32
    %c0_i32_0 = arith.constant 0 : i32
    %c0_i32_1 = arith.constant 0 : i32
    return %c0_i32, %c0_i32_0 : i32, i32
  }
  func.func @transform_3(%arg0: i32) -> (i32, i32) {
    %c0_i32 = arith.constant 0 : i32
    %c0_i32_0 = arith.constant 0 : i32
    return %arg0, %c0_i32 : i32, i32
  }
}

module attributes {stable_mosaic.version = 11 : i64} {
  func.func @_conv_stats_kernel(%arg0: i32, %arg1: memref<128x256xbf16, #tpu.memory_space<vmem>>, %arg2: memref<256x128xbf16, #tpu.memory_space<vmem>>, %arg3: memref<128x128xf32, #tpu.memory_space<vmem>>, %arg4: memref<1x1x128xf32, #tpu.memory_space<vmem>>, %arg5: memref<1x1x128xf32, #tpu.memory_space<vmem>>) attributes {dimension_semantics = [#tpu.dimension_semantics<parallel>], iteration_bounds = array<i64: 1>, scalar_prefetch = 0 : i64, scratch_operands = 0 : i64, tpu.core_type = #tpu.core_type<tc>, window_params = [{transform_indices = @transform_0, window_bounds = array<i64: 128, 256>}, {pipeline_mode = #tpu.pipeline_mode<synchronous>, transform_indices = @transform_1, window_bounds = array<i64: 256, 128>}, {transform_indices = @transform_2, window_bounds = array<i64: 128, 128>}, {transform_indices = @transform_3, window_bounds = array<i64: 1, 1, 128>}, {transform_indices = @transform_4, window_bounds = array<i64: 1, 1, 128>}]} {
    %c0 = arith.constant 0 : index
    %c0_0 = arith.constant 0 : index
    %0 = vector.load %arg1[%c0, %c0_0] : memref<128x256xbf16, #tpu.memory_space<vmem>>, vector<128x256xbf16>
    %c0_1 = arith.constant 0 : index
    %c0_2 = arith.constant 0 : index
    %1 = vector.load %arg2[%c0_1, %c0_2] : memref<256x128xbf16, #tpu.memory_space<vmem>>, vector<256x128xbf16>
    %cst = arith.constant dense<0.000000e+00> : vector<128x128xf32>
    %2 = tpu.matmul %0, %1, %cst {dimension_numbers = #tpu.dot_dimension_numbers<[1], [0], [0], [1], [0, 0, 1, 1], [], []>} : vector<128x256xbf16>, vector<256x128xbf16>, vector<128x128xf32> -> vector<128x128xf32>
    %c0_3 = arith.constant 0 : index
    %c0_4 = arith.constant 0 : index
    %3 = vector.load %arg3[%c0_3, %c0_4] : memref<128x128xf32, #tpu.memory_space<vmem>>, vector<128x128xf32>
    tpu.vector_store %arg3[%c0_3, %c0_4], %2 {strides = array<i32>} : memref<128x128xf32, #tpu.memory_space<vmem>>, vector<128x128xf32>,
    %4 = arith.mulf %2, %2 : vector<128x128xf32>
    %cst_5 = arith.constant dense<0.000000e+00> : vector<128xf32>
    %5 = vector.multi_reduction <add>, %2, %cst_5 [0] : vector<128x128xf32> to vector<128xf32>
    %6 = vector.shape_cast %5 : vector<128xf32> to vector<1x1x128xf32>
    %c0_6 = arith.constant 0 : index
    %c0_7 = arith.constant 0 : index
    %c0_8 = arith.constant 0 : index
    %7 = vector.load %arg4[%c0_6, %c0_7, %c0_8] : memref<1x1x128xf32, #tpu.memory_space<vmem>>, vector<1x1x128xf32>
    tpu.vector_store %arg4[%c0_6, %c0_7, %c0_8], %6 {strides = array<i32>} : memref<1x1x128xf32, #tpu.memory_space<vmem>>, vector<1x1x128xf32>,
    %cst_9 = arith.constant dense<0.000000e+00> : vector<128xf32>
    %8 = vector.multi_reduction <add>, %4, %cst_9 [0] : vector<128x128xf32> to vector<128xf32>
    %9 = vector.shape_cast %8 : vector<128xf32> to vector<1x1x128xf32>
    %c0_10 = arith.constant 0 : index
    %c0_11 = arith.constant 0 : index
    %c0_12 = arith.constant 0 : index
    %10 = vector.load %arg5[%c0_10, %c0_11, %c0_12] : memref<1x1x128xf32, #tpu.memory_space<vmem>>, vector<1x1x128xf32>
    tpu.vector_store %arg5[%c0_10, %c0_11, %c0_12], %9 {strides = array<i32>} : memref<1x1x128xf32, #tpu.memory_space<vmem>>, vector<1x1x128xf32>,
    return
  }
  func.func @transform_0(%arg0: i32) -> (i32, i32) {
    %c0_i32 = arith.constant 0 : i32
    %c0_i32_0 = arith.constant 0 : i32
    return %arg0, %c0_i32 : i32, i32
  }
  func.func @transform_1(%arg0: i32) -> (i32, i32) {
    %c0_i32 = arith.constant 0 : i32
    %c0_i32_0 = arith.constant 0 : i32
    %c0_i32_1 = arith.constant 0 : i32
    return %c0_i32, %c0_i32_0 : i32, i32
  }
  func.func @transform_2(%arg0: i32) -> (i32, i32) {
    %c0_i32 = arith.constant 0 : i32
    %c0_i32_0 = arith.constant 0 : i32
    return %arg0, %c0_i32 : i32, i32
  }
  func.func @transform_3(%arg0: i32) -> (i32, i32, i32) {
    %c0_i32 = arith.constant 0 : i32
    %c0_i32_0 = arith.constant 0 : i32
    %c0_i32_1 = arith.constant 0 : i32
    return %arg0, %c0_i32, %c0_i32_0 : i32, i32, i32
  }
  func.func @transform_4(%arg0: i32) -> (i32, i32, i32) {
    %c0_i32 = arith.constant 0 : i32
    %c0_i32_0 = arith.constant 0 : i32
    %c0_i32_1 = arith.constant 0 : i32
    return %arg0, %c0_i32, %c0_i32_0 : i32, i32, i32
  }
}

module attributes {stable_mosaic.version = 11 : i64} {
  func.func @_bn_lrelu_kernel(%arg0: i32, %arg1: memref<128x128xf32, #tpu.memory_space<vmem>>, %arg2: memref<1x128xf32, #tpu.memory_space<vmem>>, %arg3: memref<1x128xf32, #tpu.memory_space<vmem>>, %arg4: memref<128x128xf32, #tpu.memory_space<vmem>>) attributes {dimension_semantics = [#tpu.dimension_semantics<parallel>], iteration_bounds = array<i64: 1>, scalar_prefetch = 0 : i64, scratch_operands = 0 : i64, tpu.core_type = #tpu.core_type<tc>, window_params = [{transform_indices = @transform_0, window_bounds = array<i64: 128, 128>}, {pipeline_mode = #tpu.pipeline_mode<synchronous>, transform_indices = @transform_1, window_bounds = array<i64: 1, 128>}, {pipeline_mode = #tpu.pipeline_mode<synchronous>, transform_indices = @transform_2, window_bounds = array<i64: 1, 128>}, {transform_indices = @transform_3, window_bounds = array<i64: 128, 128>}]} {
    %c0 = arith.constant 0 : index
    %c0_0 = arith.constant 0 : index
    %0 = vector.load %arg1[%c0, %c0_0] : memref<128x128xf32, #tpu.memory_space<vmem>>, vector<128x128xf32>
    %c0_1 = arith.constant 0 : index
    %c0_2 = arith.constant 0 : index
    %1 = vector.load %arg2[%c0_1, %c0_2] : memref<1x128xf32, #tpu.memory_space<vmem>>, vector<1x128xf32>
    %2 = vector.broadcast %1 : vector<1x128xf32> to vector<128x128xf32>
    %3 = arith.mulf %0, %2 : vector<128x128xf32>
    %c0_3 = arith.constant 0 : index
    %c0_4 = arith.constant 0 : index
    %4 = vector.load %arg3[%c0_3, %c0_4] : memref<1x128xf32, #tpu.memory_space<vmem>>, vector<1x128xf32>
    %5 = vector.broadcast %4 : vector<1x128xf32> to vector<128x128xf32>
    %6 = arith.addf %3, %5 : vector<128x128xf32>
    %cst = arith.constant 0.000000e+00 : f32
    %7 = vector.broadcast %cst : f32 to vector<128x128xf32>
    %8 = arith.cmpf oge, %6, %7 : vector<128x128xf32>
    %cst_5 = arith.constant 2.000000e-01 : f32
    %9 = vector.broadcast %cst_5 : f32 to vector<128x128xf32>
    %10 = arith.mulf %9, %6 : vector<128x128xf32>
    %11 = arith.select %8, %6, %10 : vector<128x128xi1>, vector<128x128xf32>
    %c0_6 = arith.constant 0 : index
    %c0_7 = arith.constant 0 : index
    %12 = vector.load %arg4[%c0_6, %c0_7] : memref<128x128xf32, #tpu.memory_space<vmem>>, vector<128x128xf32>
    tpu.vector_store %arg4[%c0_6, %c0_7], %11 {strides = array<i32>} : memref<128x128xf32, #tpu.memory_space<vmem>>, vector<128x128xf32>,
    return
  }
  func.func @transform_0(%arg0: i32) -> (i32, i32) {
    %c0_i32 = arith.constant 0 : i32
    %c0_i32_0 = arith.constant 0 : i32
    return %arg0, %c0_i32 : i32, i32
  }
  func.func @transform_1(%arg0: i32) -> (i32, i32) {
    %c0_i32 = arith.constant 0 : i32
    %c0_i32_0 = arith.constant 0 : i32
    %c0_i32_1 = arith.constant 0 : i32
    return %c0_i32, %c0_i32_0 : i32, i32
  }
  func.func @transform_2(%arg0: i32) -> (i32, i32) {
    %c0_i32 = arith.constant 0 : i32
    %c0_i32_0 = arith.constant 0 : i32
    %c0_i32_1 = arith.constant 0 : i32
    return %c0_i32, %c0_i32_0 : i32, i32
  }
  func.func @transform_3(%arg0: i32) -> (i32, i32) {
    %c0_i32 = arith.constant 0 : i32
    %c0_i32_0 = arith.constant 0 : i32
    return %arg0, %c0_i32 : i32, i32
  }
}

module attributes {stable_mosaic.version = 11 : i64} {
  func.func @_conv_stats_kernel(%arg0: i32, %arg1: memref<128x512xbf16, #tpu.memory_space<vmem>>, %arg2: memref<512x128xbf16, #tpu.memory_space<vmem>>, %arg3: memref<128x128xf32, #tpu.memory_space<vmem>>, %arg4: memref<1x1x128xf32, #tpu.memory_space<vmem>>, %arg5: memref<1x1x128xf32, #tpu.memory_space<vmem>>) attributes {dimension_semantics = [#tpu.dimension_semantics<parallel>], iteration_bounds = array<i64: 1>, scalar_prefetch = 0 : i64, scratch_operands = 0 : i64, tpu.core_type = #tpu.core_type<tc>, window_params = [{transform_indices = @transform_0, window_bounds = array<i64: 128, 512>}, {pipeline_mode = #tpu.pipeline_mode<synchronous>, transform_indices = @transform_1, window_bounds = array<i64: 512, 128>}, {transform_indices = @transform_2, window_bounds = array<i64: 128, 128>}, {transform_indices = @transform_3, window_bounds = array<i64: 1, 1, 128>}, {transform_indices = @transform_4, window_bounds = array<i64: 1, 1, 128>}]} {
    %c0 = arith.constant 0 : index
    %c0_0 = arith.constant 0 : index
    %0 = vector.load %arg1[%c0, %c0_0] : memref<128x512xbf16, #tpu.memory_space<vmem>>, vector<128x512xbf16>
    %c0_1 = arith.constant 0 : index
    %c0_2 = arith.constant 0 : index
    %1 = vector.load %arg2[%c0_1, %c0_2] : memref<512x128xbf16, #tpu.memory_space<vmem>>, vector<512x128xbf16>
    %cst = arith.constant dense<0.000000e+00> : vector<128x128xf32>
    %2 = tpu.matmul %0, %1, %cst {dimension_numbers = #tpu.dot_dimension_numbers<[1], [0], [0], [1], [0, 0, 1, 1], [], []>} : vector<128x512xbf16>, vector<512x128xbf16>, vector<128x128xf32> -> vector<128x128xf32>
    %c0_3 = arith.constant 0 : index
    %c0_4 = arith.constant 0 : index
    %3 = vector.load %arg3[%c0_3, %c0_4] : memref<128x128xf32, #tpu.memory_space<vmem>>, vector<128x128xf32>
    tpu.vector_store %arg3[%c0_3, %c0_4], %2 {strides = array<i32>} : memref<128x128xf32, #tpu.memory_space<vmem>>, vector<128x128xf32>,
    %4 = tpu.iota {dimensions = array<i32: 0>} : vector<128x1xi32>
    %c128_i32 = arith.constant 128 : i32
    %5 = arith.muli %arg0, %c128_i32 : i32
    %6 = vector.broadcast %5 : i32 to vector<128x1xi32>
    %7 = arith.addi %4, %6 : vector<128x1xi32>
    %c32_i32 = arith.constant 32 : i32
    %8 = vector.broadcast %c32_i32 : i32 to vector<128x1xi32>
    %9 = arith.cmpi slt, %7, %8 : vector<128x1xi32>
    %cst_5 = arith.constant 0.000000e+00 : f32
    %10 = vector.shape_cast %9 : vector<128x1xi1> to vector<128x1xi1>
    %11 = vector.broadcast %10 : vector<128x1xi1> to vector<128x128xi1>
    %12 = vector.broadcast %cst_5 : f32 to vector<128x128xf32>
    %13 = arith.select %11, %2, %12 : vector<128x128xi1>, vector<128x128xf32>
    %14 = arith.mulf %2, %2 : vector<128x128xf32>
    %cst_6 = arith.constant 0.000000e+00 : f32
    %15 = vector.shape_cast %9 : vector<128x1xi1> to vector<128x1xi1>
    %16 = vector.broadcast %15 : vector<128x1xi1> to vector<128x128xi1>
    %17 = vector.broadcast %cst_6 : f32 to vector<128x128xf32>
    %18 = arith.select %16, %14, %17 : vector<128x128xi1>, vector<128x128xf32>
    %cst_7 = arith.constant dense<0.000000e+00> : vector<128xf32>
    %19 = vector.multi_reduction <add>, %13, %cst_7 [0] : vector<128x128xf32> to vector<128xf32>
    %20 = vector.shape_cast %19 : vector<128xf32> to vector<1x1x128xf32>
    %c0_8 = arith.constant 0 : index
    %c0_9 = arith.constant 0 : index
    %c0_10 = arith.constant 0 : index
    %21 = vector.load %arg4[%c0_8, %c0_9, %c0_10] : memref<1x1x128xf32, #tpu.memory_space<vmem>>, vector<1x1x128xf32>
    tpu.vector_store %arg4[%c0_8, %c0_9, %c0_10], %20 {strides = array<i32>} : memref<1x1x128xf32, #tpu.memory_space<vmem>>, vector<1x1x128xf32>,
    %cst_11 = arith.constant dense<0.000000e+00> : vector<128xf32>
    %22 = vector.multi_reduction <add>, %18, %cst_11 [0] : vector<128x128xf32> to vector<128xf32>
    %23 = vector.shape_cast %22 : vector<128xf32> to vector<1x1x128xf32>
    %c0_12 = arith.constant 0 : index
    %c0_13 = arith.constant 0 : index
    %c0_14 = arith.constant 0 : index
    %24 = vector.load %arg5[%c0_12, %c0_13, %c0_14] : memref<1x1x128xf32, #tpu.memory_space<vmem>>, vector<1x1x128xf32>
    tpu.vector_store %arg5[%c0_12, %c0_13, %c0_14], %23 {strides = array<i32>} : memref<1x1x128xf32, #tpu.memory_space<vmem>>, vector<1x1x128xf32>,
    return
  }
  func.func @transform_0(%arg0: i32) -> (i32, i32) {
    %c0_i32 = arith.constant 0 : i32
    %c0_i32_0 = arith.constant 0 : i32
    return %arg0, %c0_i32 : i32, i32
  }
  func.func @transform_1(%arg0: i32) -> (i32, i32) {
    %c0_i32 = arith.constant 0 : i32
    %c0_i32_0 = arith.constant 0 : i32
    %c0_i32_1 = arith.constant 0 : i32
    return %c0_i32, %c0_i32_0 : i32, i32
  }
  func.func @transform_2(%arg0: i32) -> (i32, i32) {
    %c0_i32 = arith.constant 0 : i32
    %c0_i32_0 = arith.constant 0 : i32
    return %arg0, %c0_i32 : i32, i32
  }
  func.func @transform_3(%arg0: i32) -> (i32, i32, i32) {
    %c0_i32 = arith.constant 0 : i32
    %c0_i32_0 = arith.constant 0 : i32
    %c0_i32_1 = arith.constant 0 : i32
    return %arg0, %c0_i32, %c0_i32_0 : i32, i32, i32
  }
  func.func @transform_4(%arg0: i32) -> (i32, i32, i32) {
    %c0_i32 = arith.constant 0 : i32
    %c0_i32_0 = arith.constant 0 : i32
    %c0_i32_1 = arith.constant 0 : i32
    return %arg0, %c0_i32, %c0_i32_0 : i32, i32, i32
  }
}

module attributes {stable_mosaic.version = 11 : i64} {
  func.func @_bn_lrelu_kernel(%arg0: i32, %arg1: memref<128x128xf32, #tpu.memory_space<vmem>>, %arg2: memref<1x128xf32, #tpu.memory_space<vmem>>, %arg3: memref<1x128xf32, #tpu.memory_space<vmem>>, %arg4: memref<128x128xf32, #tpu.memory_space<vmem>>) attributes {dimension_semantics = [#tpu.dimension_semantics<parallel>], iteration_bounds = array<i64: 1>, scalar_prefetch = 0 : i64, scratch_operands = 0 : i64, tpu.core_type = #tpu.core_type<tc>, window_params = [{transform_indices = @transform_0, window_bounds = array<i64: 128, 128>}, {pipeline_mode = #tpu.pipeline_mode<synchronous>, transform_indices = @transform_1, window_bounds = array<i64: 1, 128>}, {pipeline_mode = #tpu.pipeline_mode<synchronous>, transform_indices = @transform_2, window_bounds = array<i64: 1, 128>}, {transform_indices = @transform_3, window_bounds = array<i64: 128, 128>}]} {
    %c0 = arith.constant 0 : index
    %c0_0 = arith.constant 0 : index
    %0 = vector.load %arg1[%c0, %c0_0] : memref<128x128xf32, #tpu.memory_space<vmem>>, vector<128x128xf32>
    %c0_1 = arith.constant 0 : index
    %c0_2 = arith.constant 0 : index
    %1 = vector.load %arg2[%c0_1, %c0_2] : memref<1x128xf32, #tpu.memory_space<vmem>>, vector<1x128xf32>
    %2 = vector.broadcast %1 : vector<1x128xf32> to vector<128x128xf32>
    %3 = arith.mulf %0, %2 : vector<128x128xf32>
    %c0_3 = arith.constant 0 : index
    %c0_4 = arith.constant 0 : index
    %4 = vector.load %arg3[%c0_3, %c0_4] : memref<1x128xf32, #tpu.memory_space<vmem>>, vector<1x128xf32>
    %5 = vector.broadcast %4 : vector<1x128xf32> to vector<128x128xf32>
    %6 = arith.addf %3, %5 : vector<128x128xf32>
    %cst = arith.constant 0.000000e+00 : f32
    %7 = vector.broadcast %cst : f32 to vector<128x128xf32>
    %8 = arith.cmpf oge, %6, %7 : vector<128x128xf32>
    %cst_5 = arith.constant 2.000000e-01 : f32
    %9 = vector.broadcast %cst_5 : f32 to vector<128x128xf32>
    %10 = arith.mulf %9, %6 : vector<128x128xf32>
    %11 = arith.select %8, %6, %10 : vector<128x128xi1>, vector<128x128xf32>
    %c0_6 = arith.constant 0 : index
    %c0_7 = arith.constant 0 : index
    %12 = vector.load %arg4[%c0_6, %c0_7] : memref<128x128xf32, #tpu.memory_space<vmem>>, vector<128x128xf32>
    tpu.vector_store %arg4[%c0_6, %c0_7], %11 {strides = array<i32>} : memref<128x128xf32, #tpu.memory_space<vmem>>, vector<128x128xf32>,
    return
  }
  func.func @transform_0(%arg0: i32) -> (i32, i32) {
    %c0_i32 = arith.constant 0 : i32
    %c0_i32_0 = arith.constant 0 : i32
    return %arg0, %c0_i32 : i32, i32
  }
  func.func @transform_1(%arg0: i32) -> (i32, i32) {
    %c0_i32 = arith.constant 0 : i32
    %c0_i32_0 = arith.constant 0 : i32
    %c0_i32_1 = arith.constant 0 : i32
    return %c0_i32, %c0_i32_0 : i32, i32
  }
  func.func @transform_2(%arg0: i32) -> (i32, i32) {
    %c0_i32 = arith.constant 0 : i32
    %c0_i32_0 = arith.constant 0 : i32
    %c0_i32_1 = arith.constant 0 : i32
    return %c0_i32, %c0_i32_0 : i32, i32
  }
  func.func @transform_3(%arg0: i32) -> (i32, i32) {
    %c0_i32 = arith.constant 0 : i32
    %c0_i32_0 = arith.constant 0 : i32
    return %arg0, %c0_i32 : i32, i32
  }
}

module attributes {stable_mosaic.version = 11 : i64} {
  func.func @_conv_stats_kernel(%arg0: i32, %arg1: memref<128x1024xbf16, #tpu.memory_space<vmem>>, %arg2: memref<1024x128xbf16, #tpu.memory_space<vmem>>, %arg3: memref<128x128xf32, #tpu.memory_space<vmem>>, %arg4: memref<1x1x128xf32, #tpu.memory_space<vmem>>, %arg5: memref<1x1x128xf32, #tpu.memory_space<vmem>>) attributes {dimension_semantics = [#tpu.dimension_semantics<parallel>], iteration_bounds = array<i64: 1>, scalar_prefetch = 0 : i64, scratch_operands = 0 : i64, tpu.core_type = #tpu.core_type<tc>, window_params = [{transform_indices = @transform_0, window_bounds = array<i64: 128, 1024>}, {pipeline_mode = #tpu.pipeline_mode<synchronous>, transform_indices = @transform_1, window_bounds = array<i64: 1024, 128>}, {transform_indices = @transform_2, window_bounds = array<i64: 128, 128>}, {transform_indices = @transform_3, window_bounds = array<i64: 1, 1, 128>}, {transform_indices = @transform_4, window_bounds = array<i64: 1, 1, 128>}]} {
    %c0 = arith.constant 0 : index
    %c0_0 = arith.constant 0 : index
    %0 = vector.load %arg1[%c0, %c0_0] : memref<128x1024xbf16, #tpu.memory_space<vmem>>, vector<128x1024xbf16>
    %c0_1 = arith.constant 0 : index
    %c0_2 = arith.constant 0 : index
    %1 = vector.load %arg2[%c0_1, %c0_2] : memref<1024x128xbf16, #tpu.memory_space<vmem>>, vector<1024x128xbf16>
    %cst = arith.constant dense<0.000000e+00> : vector<128x128xf32>
    %2 = tpu.matmul %0, %1, %cst {dimension_numbers = #tpu.dot_dimension_numbers<[1], [0], [0], [1], [0, 0, 1, 1], [], []>} : vector<128x1024xbf16>, vector<1024x128xbf16>, vector<128x128xf32> -> vector<128x128xf32>
    %c0_3 = arith.constant 0 : index
    %c0_4 = arith.constant 0 : index
    %3 = vector.load %arg3[%c0_3, %c0_4] : memref<128x128xf32, #tpu.memory_space<vmem>>, vector<128x128xf32>
    tpu.vector_store %arg3[%c0_3, %c0_4], %2 {strides = array<i32>} : memref<128x128xf32, #tpu.memory_space<vmem>>, vector<128x128xf32>,
    %4 = tpu.iota {dimensions = array<i32: 0>} : vector<128x1xi32>
    %c128_i32 = arith.constant 128 : i32
    %5 = arith.muli %arg0, %c128_i32 : i32
    %6 = vector.broadcast %5 : i32 to vector<128x1xi32>
    %7 = arith.addi %4, %6 : vector<128x1xi32>
    %c18_i32 = arith.constant 18 : i32
    %8 = vector.broadcast %c18_i32 : i32 to vector<128x1xi32>
    %9 = arith.cmpi slt, %7, %8 : vector<128x1xi32>
    %cst_5 = arith.constant 0.000000e+00 : f32
    %10 = vector.shape_cast %9 : vector<128x1xi1> to vector<128x1xi1>
    %11 = vector.broadcast %10 : vector<128x1xi1> to vector<128x128xi1>
    %12 = vector.broadcast %cst_5 : f32 to vector<128x128xf32>
    %13 = arith.select %11, %2, %12 : vector<128x128xi1>, vector<128x128xf32>
    %14 = arith.mulf %2, %2 : vector<128x128xf32>
    %cst_6 = arith.constant 0.000000e+00 : f32
    %15 = vector.shape_cast %9 : vector<128x1xi1> to vector<128x1xi1>
    %16 = vector.broadcast %15 : vector<128x1xi1> to vector<128x128xi1>
    %17 = vector.broadcast %cst_6 : f32 to vector<128x128xf32>
    %18 = arith.select %16, %14, %17 : vector<128x128xi1>, vector<128x128xf32>
    %cst_7 = arith.constant dense<0.000000e+00> : vector<128xf32>
    %19 = vector.multi_reduction <add>, %13, %cst_7 [0] : vector<128x128xf32> to vector<128xf32>
    %20 = vector.shape_cast %19 : vector<128xf32> to vector<1x1x128xf32>
    %c0_8 = arith.constant 0 : index
    %c0_9 = arith.constant 0 : index
    %c0_10 = arith.constant 0 : index
    %21 = vector.load %arg4[%c0_8, %c0_9, %c0_10] : memref<1x1x128xf32, #tpu.memory_space<vmem>>, vector<1x1x128xf32>
    tpu.vector_store %arg4[%c0_8, %c0_9, %c0_10], %20 {strides = array<i32>} : memref<1x1x128xf32, #tpu.memory_space<vmem>>, vector<1x1x128xf32>,
    %cst_11 = arith.constant dense<0.000000e+00> : vector<128xf32>
    %22 = vector.multi_reduction <add>, %18, %cst_11 [0] : vector<128x128xf32> to vector<128xf32>
    %23 = vector.shape_cast %22 : vector<128xf32> to vector<1x1x128xf32>
    %c0_12 = arith.constant 0 : index
    %c0_13 = arith.constant 0 : index
    %c0_14 = arith.constant 0 : index
    %24 = vector.load %arg5[%c0_12, %c0_13, %c0_14] : memref<1x1x128xf32, #tpu.memory_space<vmem>>, vector<1x1x128xf32>
    tpu.vector_store %arg5[%c0_12, %c0_13, %c0_14], %23 {strides = array<i32>} : memref<1x1x128xf32, #tpu.memory_space<vmem>>, vector<1x1x128xf32>,
    return
  }
  func.func @transform_0(%arg0: i32) -> (i32, i32) {
    %c0_i32 = arith.constant 0 : i32
    %c0_i32_0 = arith.constant 0 : i32
    return %arg0, %c0_i32 : i32, i32
  }
  func.func @transform_1(%arg0: i32) -> (i32, i32) {
    %c0_i32 = arith.constant 0 : i32
    %c0_i32_0 = arith.constant 0 : i32
    %c0_i32_1 = arith.constant 0 : i32
    return %c0_i32, %c0_i32_0 : i32, i32
  }
  func.func @transform_2(%arg0: i32) -> (i32, i32) {
    %c0_i32 = arith.constant 0 : i32
    %c0_i32_0 = arith.constant 0 : i32
    return %arg0, %c0_i32 : i32, i32
  }
  func.func @transform_3(%arg0: i32) -> (i32, i32, i32) {
    %c0_i32 = arith.constant 0 : i32
    %c0_i32_0 = arith.constant 0 : i32
    %c0_i32_1 = arith.constant 0 : i32
    return %arg0, %c0_i32, %c0_i32_0 : i32, i32, i32
  }
  func.func @transform_4(%arg0: i32) -> (i32, i32, i32) {
    %c0_i32 = arith.constant 0 : i32
    %c0_i32_0 = arith.constant 0 : i32
    %c0_i32_1 = arith.constant 0 : i32
    return %arg0, %c0_i32, %c0_i32_0 : i32, i32, i32
  }
}

module attributes {stable_mosaic.version = 11 : i64} {
  func.func @_bn_lrelu_kernel(%arg0: i32, %arg1: memref<128x128xf32, #tpu.memory_space<vmem>>, %arg2: memref<1x128xf32, #tpu.memory_space<vmem>>, %arg3: memref<1x128xf32, #tpu.memory_space<vmem>>, %arg4: memref<128x128xf32, #tpu.memory_space<vmem>>) attributes {dimension_semantics = [#tpu.dimension_semantics<parallel>], iteration_bounds = array<i64: 1>, scalar_prefetch = 0 : i64, scratch_operands = 0 : i64, tpu.core_type = #tpu.core_type<tc>, window_params = [{transform_indices = @transform_0, window_bounds = array<i64: 128, 128>}, {pipeline_mode = #tpu.pipeline_mode<synchronous>, transform_indices = @transform_1, window_bounds = array<i64: 1, 128>}, {pipeline_mode = #tpu.pipeline_mode<synchronous>, transform_indices = @transform_2, window_bounds = array<i64: 1, 128>}, {transform_indices = @transform_3, window_bounds = array<i64: 128, 128>}]} {
    %c0 = arith.constant 0 : index
    %c0_0 = arith.constant 0 : index
    %0 = vector.load %arg1[%c0, %c0_0] : memref<128x128xf32, #tpu.memory_space<vmem>>, vector<128x128xf32>
    %c0_1 = arith.constant 0 : index
    %c0_2 = arith.constant 0 : index
    %1 = vector.load %arg2[%c0_1, %c0_2] : memref<1x128xf32, #tpu.memory_space<vmem>>, vector<1x128xf32>
    %2 = vector.broadcast %1 : vector<1x128xf32> to vector<128x128xf32>
    %3 = arith.mulf %0, %2 : vector<128x128xf32>
    %c0_3 = arith.constant 0 : index
    %c0_4 = arith.constant 0 : index
    %4 = vector.load %arg3[%c0_3, %c0_4] : memref<1x128xf32, #tpu.memory_space<vmem>>, vector<1x128xf32>
    %5 = vector.broadcast %4 : vector<1x128xf32> to vector<128x128xf32>
    %6 = arith.addf %3, %5 : vector<128x128xf32>
    %cst = arith.constant 0.000000e+00 : f32
    %7 = vector.broadcast %cst : f32 to vector<128x128xf32>
    %8 = arith.cmpf oge, %6, %7 : vector<128x128xf32>
    %cst_5 = arith.constant 2.000000e-01 : f32
    %9 = vector.broadcast %cst_5 : f32 to vector<128x128xf32>
    %10 = arith.mulf %9, %6 : vector<128x128xf32>
    %11 = arith.select %8, %6, %10 : vector<128x128xi1>, vector<128x128xf32>
    %c0_6 = arith.constant 0 : index
    %c0_7 = arith.constant 0 : index
    %12 = vector.load %arg4[%c0_6, %c0_7] : memref<128x128xf32, #tpu.memory_space<vmem>>, vector<128x128xf32>
    tpu.vector_store %arg4[%c0_6, %c0_7], %11 {strides = array<i32>} : memref<128x128xf32, #tpu.memory_space<vmem>>, vector<128x128xf32>,
    return
  }
  func.func @transform_0(%arg0: i32) -> (i32, i32) {
    %c0_i32 = arith.constant 0 : i32
    %c0_i32_0 = arith.constant 0 : i32
    return %arg0, %c0_i32 : i32, i32
  }
  func.func @transform_1(%arg0: i32) -> (i32, i32) {
    %c0_i32 = arith.constant 0 : i32
    %c0_i32_0 = arith.constant 0 : i32
    %c0_i32_1 = arith.constant 0 : i32
    return %c0_i32, %c0_i32_0 : i32, i32
  }
  func.func @transform_2(%arg0: i32) -> (i32, i32) {
    %c0_i32 = arith.constant 0 : i32
    %c0_i32_0 = arith.constant 0 : i32
    %c0_i32_1 = arith.constant 0 : i32
    return %c0_i32, %c0_i32_0 : i32, i32
  }
  func.func @transform_3(%arg0: i32) -> (i32, i32) {
    %c0_i32 = arith.constant 0 : i32
    %c0_i32_0 = arith.constant 0 : i32
    return %arg0, %c0_i32 : i32, i32
  }
}

module attributes {stable_mosaic.version = 11 : i64} {
  func.func @_conv_bias_act_kernel(%arg0: i32, %arg1: memref<128x2048xbf16, #tpu.memory_space<vmem>>, %arg2: memref<2048x128xbf16, #tpu.memory_space<vmem>>, %arg3: memref<1x128xf32, #tpu.memory_space<vmem>>, %arg4: memref<128x128xf32, #tpu.memory_space<vmem>>) attributes {dimension_semantics = [#tpu.dimension_semantics<parallel>], iteration_bounds = array<i64: 1>, scalar_prefetch = 0 : i64, scratch_operands = 0 : i64, tpu.core_type = #tpu.core_type<tc>, window_params = [{transform_indices = @transform_0, window_bounds = array<i64: 128, 2048>}, {pipeline_mode = #tpu.pipeline_mode<synchronous>, transform_indices = @transform_1, window_bounds = array<i64: 2048, 128>}, {pipeline_mode = #tpu.pipeline_mode<synchronous>, transform_indices = @transform_2, window_bounds = array<i64: 1, 128>}, {transform_indices = @transform_3, window_bounds = array<i64: 128, 128>}]} {
    %c0 = arith.constant 0 : index
    %c0_0 = arith.constant 0 : index
    %0 = vector.load %arg1[%c0, %c0_0] : memref<128x2048xbf16, #tpu.memory_space<vmem>>, vector<128x2048xbf16>
    %c0_1 = arith.constant 0 : index
    %c0_2 = arith.constant 0 : index
    %1 = vector.load %arg2[%c0_1, %c0_2] : memref<2048x128xbf16, #tpu.memory_space<vmem>>, vector<2048x128xbf16>
    %cst = arith.constant dense<0.000000e+00> : vector<128x128xf32>
    %2 = tpu.matmul %0, %1, %cst {dimension_numbers = #tpu.dot_dimension_numbers<[1], [0], [0], [1], [0, 0, 1, 1], [], []>} : vector<128x2048xbf16>, vector<2048x128xbf16>, vector<128x128xf32> -> vector<128x128xf32>
    %c0_3 = arith.constant 0 : index
    %c0_4 = arith.constant 0 : index
    %3 = vector.load %arg3[%c0_3, %c0_4] : memref<1x128xf32, #tpu.memory_space<vmem>>, vector<1x128xf32>
    %4 = vector.broadcast %3 : vector<1x128xf32> to vector<128x128xf32>
    %5 = arith.addf %2, %4 : vector<128x128xf32>
    %c0_5 = arith.constant 0 : index
    %c0_6 = arith.constant 0 : index
    %6 = vector.load %arg4[%c0_5, %c0_6] : memref<128x128xf32, #tpu.memory_space<vmem>>, vector<128x128xf32>
    tpu.vector_store %arg4[%c0_5, %c0_6], %5 {strides = array<i32>} : memref<128x128xf32, #tpu.memory_space<vmem>>, vector<128x128xf32>,
    return
  }
  func.func @transform_0(%arg0: i32) -> (i32, i32) {
    %c0_i32 = arith.constant 0 : i32
    %c0_i32_0 = arith.constant 0 : i32
    return %arg0, %c0_i32 : i32, i32
  }
  func.func @transform_1(%arg0: i32) -> (i32, i32) {
    %c0_i32 = arith.constant 0 : i32
    %c0_i32_0 = arith.constant 0 : i32
    %c0_i32_1 = arith.constant 0 : i32
    return %c0_i32, %c0_i32_0 : i32, i32
  }
  func.func @transform_2(%arg0: i32) -> (i32, i32) {
    %c0_i32 = arith.constant 0 : i32
    %c0_i32_0 = arith.constant 0 : i32
    %c0_i32_1 = arith.constant 0 : i32
    return %c0_i32, %c0_i32_0 : i32, i32
  }
  func.func @transform_3(%arg0: i32) -> (i32, i32) {
    %c0_i32 = arith.constant 0 : i32
    %c0_i32_0 = arith.constant 0 : i32
    return %arg0, %c0_i32 : i32, i32
  }
}

</mosaic_0001>

<bundles_post_ra>
// kernel: _lambda_.8
= control target key start
LH: loop header
LB: loop body
LE: loop exit
PB: predicated region body
PF: predicated region fallthrough
CT: control target
= control target key end

     0   :  { %vm278_vm0 = vcmask 523264   ;;  %s1566_s1 = inlined_call_operand.vmem [shape: bf16[64,128], index: 1, kind: input, shape index: {}]   ;;  %s1567_s0 = inlined_call_operand.vmem [shape: bf16[512,64], index: 0, kind: input, shape index: {}]   ;;  %s1568_s2 = inlined_call_operand.vmem [shape: f32[1,128], index: 2, kind: input, shape index: {}]   ;;  %s1569_s3 = inlined_call_operand.vmem [shape: f32[512,128], index: 3, kind: output, shape index: {}]  }
   0x1   :  { %v1109_v0 = vld [vmem:[%s1566_s1] sm:$0xff]   ;;  %v1110_v1 = vld [vmem:[%s1566_s1 + $0x8] sm:$0xff]   ;;  %v1111_v2 = vld [vmem:[%s1566_s1 + $0x10] sm:$0xff]  }
   0x2   :  { %1029 = vmatprep.subr.bf16.mxu0 %v1109_v0  ;;  %1101 = vmatprep.subr.bf16.mxu1 %v1109_v0  ;;  %v1113_v3 = vld [vmem:[%s1567_s0] sm:$0xff]   ;;  %v1112_v5 = vld [vmem:[%s1566_s1 + $0x18] sm:$0xff]   ;;  %v1115_v6 = vld [vmem:[%s1567_s0 + $0x8] sm:$0xff]  }
   0x3   :  { %1030 = vmatpush3.bf16.msra.mxu0 %v1109_v0  ;;  %1105 = vmatpush3.bf16.msra.mxu1 %v1109_v0  ;;  %v1114_v4 = vld [vmem:[%s1567_s0 + $0x80] sm:$0xff]   ;;  %v1116_v7 = vld [vmem:[%s1567_s0 + $0x88] sm:$0xff]   ;;  %v1117_v8 = vld [vmem:[%s1567_s0 + $0x10] sm:$0xff]  }
   0x4   :  { %1031 = vmatprep.subr.bf16.mxu0 %v1110_v1  ;;  %1102 = vmatprep.subr.bf16.mxu1 %v1110_v1  ;;  %v1118_v9 = vld [vmem:[%s1567_s0 + $0x90] sm:$0xff]   ;;  %v1119_v10 = vld [vmem:[%s1567_s0 + $0x18] sm:$0xff]   ;;  %v1121_v12 = vld [vmem:[%s1567_s0 + $0x20] sm:$0xff]  }
   0x5   :  { %1037 = vmatprep.mubr.msk.bf16.mxu0 %vm278_vm0, %v1113_v3  ;;  %1069 = vmatprep.mubr.msk.bf16.mxu1 %vm278_vm0, %v1114_v4  ;;  %v1120_v11 = vld [vmem:[%s1567_s0 + $0x98] sm:$0xff]   ;;  %v1122_v13 = vld [vmem:[%s1567_s0 + $0xa0] sm:$0xff]   ;;  %v1123_v14 = vld [vmem:[%s1567_s0 + $0x28] sm:$0xff]  }
   0x6   :  { %v1124_v15 = vld [vmem:[%s1567_s0 + $0xa8] sm:$0xff]   ;;  %v1125_v16 = vld [vmem:[%s1567_s0 + $0x30] sm:$0xff]   ;;  %v1127_v18 = vld [vmem:[%s1567_s0 + $0x38] sm:$0xff]  }
   0x7   :  { %1032 = vmatpush3.bf16.msra.mxu0 %v1110_v1  ;;  %1106 = vmatpush3.bf16.msra.mxu1 %v1110_v1  ;;  %v1126_v17 = vld [vmem:[%s1567_s0 + $0xb0] sm:$0xff]   ;;  %v1128_v19 = vld [vmem:[%s1567_s0 + $0xb8] sm:$0xff]   ;;  %v1129_v20 = vld [vmem:[%s1567_s0 + $0x40] sm:$0xff]  }
   0x8   :  { %1033 = vmatprep.subr.bf16.mxu0 %v1111_v2  ;;  %1103 = vmatprep.subr.bf16.mxu1 %v1111_v2  ;;  %v1130_v21 = vld [vmem:[%s1567_s0 + $0xc0] sm:$0xff]   ;;  %v1131_v22 = vld [vmem:[%s1567_s0 + $0x48] sm:$0xff]   ;;  %v1133_v24 = vld [vmem:[%s1567_s0 + $0x50] sm:$0xff]  }
   0x9   :  { %v1132_v23 = vld [vmem:[%s1567_s0 + $0xc8] sm:$0xff]   ;;  %v1134_v25 = vld [vmem:[%s1567_s0 + $0xd0] sm:$0xff]   ;;  %v1135_v26 = vld [vmem:[%s1567_s0 + $0x58] sm:$0xff]  }
   0xa   :  { %v1136_v27 = vld [vmem:[%s1567_s0 + $0xd8] sm:$0xff]   ;;  %v1137_v28 = vld [vmem:[%s1567_s0 + $0x60] sm:$0xff]   ;;  %v1139_v30 = vld [vmem:[%s1567_s0 + $0x68] sm:$0xff]  }
   0xb   :  { %1034 = vmatpush3.bf16.msra.mxu0 %v1111_v2  ;;  %1107 = vmatpush3.bf16.msra.mxu1 %v1111_v2  ;;  %v1138_v29 = vld [vmem:[%s1567_s0 + $0xe0] sm:$0xff]   ;;  %v1140_v31 = vld [vmem:[%s1567_s0 + $0xe8] sm:$0xff]   ;;  %v1141_v32 = vld [vmem:[%s1567_s0 + $0x70] sm:$0xff]  }
   0xc   :  { %1035 = vmatprep.subr.bf16.mxu0 %v1112_v5  ;;  %1104 = vmatprep.subr.bf16.mxu1 %v1112_v5  ;;  %v1142_v33 = vld [vmem:[%s1567_s0 + $0xf0] sm:$0xff]   ;;  %v1143_v34 = vld [vmem:[%s1567_s0 + $0x78] sm:$0xff]   ;;  %v1308_v36 = vld [vmem:[%s1568_s2] ss:$0 sm:$0xff] }
   0xd   :  { %v1144_v35 = vld [vmem:[%s1567_s0 + $0xf8] sm:$0xff]  }
   0xf   :  { %1036 = vmatpush3.bf16.msra.mxu0 %v1112_v5  ;;  %1108 = vmatpush3.bf16.msra.mxu1 %v1112_v5 }
  0x12   :  { %1038 = vmatmul.mubr.msk.bf16.vlgmr.msra.gmra.mrb[0].mxu0 %vm278_vm0, %v1115_v6  ;;  %1070 = vmatmul.mubr.msk.bf16.vlgmr.msra.gmra.mrb[0].mxu1 %vm278_vm0, %v1116_v7 }
  0x13   :  { %1041 = vmatprep.mubr.msk.bf16.mxu0 %vm278_vm0, %v1117_v8  ;;  %1073 = vmatprep.mubr.msk.bf16.mxu1 %vm278_vm0, %v1118_v9 }
  0x1a   :  { %1042 = vmatmul.mubr.msk.bf16.gmra.mrb[4].mxu0 %vm278_vm0, %v1119_v10  ;;  %1074 = vmatmul.mubr.msk.bf16.gmra.mrb[4].mxu1 %vm278_vm0, %v1120_v11 }
  0x1b   :  { %1045 = vmatprep.mubr.msk.bf16.mxu0 %vm278_vm0, %v1121_v12  ;;  %1077 = vmatprep.mubr.msk.bf16.mxu1 %vm278_vm0, %v1122_v13 }
  0x22   :  { %1046 = vmatmul.mubr.msk.bf16.gmra.mrb[8].mxu0 %vm278_vm0, %v1123_v14  ;;  %1078 = vmatmul.mubr.msk.bf16.gmra.mrb[8].mxu1 %vm278_vm0, %v1124_v15 }
  0x23   :  { %1049 = vmatprep.mubr.msk.bf16.mxu0 %vm278_vm0, %v1125_v16  ;;  %1081 = vmatprep.mubr.msk.bf16.mxu1 %vm278_vm0, %v1126_v17 }
  0x2a   :  { %1050 = vmatmul.mubr.msk.bf16.gmra.mrb[12].mxu0 %vm278_vm0, %v1127_v18  ;;  %1082 = vmatmul.mubr.msk.bf16.gmra.mrb[12].mxu1 %vm278_vm0, %v1128_v19 }
  0x2b   :  { %1053 = vmatprep.mubr.msk.bf16.mxu0 %vm278_vm0, %v1129_v20  ;;  %1085 = vmatprep.mubr.msk.bf16.mxu1 %vm278_vm0, %v1130_v21 }
  0x32   :  { %1054 = vmatmul.mubr.msk.bf16.gmra.mrb[16].mxu0 %vm278_vm0, %v1131_v22  ;;  %1086 = vmatmul.mubr.msk.bf16.gmra.mrb[16].mxu1 %vm278_vm0, %v1132_v23 }
  0x33   :  { %1057 = vmatprep.mubr.msk.bf16.mxu0 %vm278_vm0, %v1133_v24  ;;  %1089 = vmatprep.mubr.msk.bf16.mxu1 %vm278_vm0, %v1134_v25 }
  0x3a   :  { %1058 = vmatmul.mubr.msk.bf16.gmra.mrb[20].mxu0 %vm278_vm0, %v1135_v26  ;;  %1090 = vmatmul.mubr.msk.bf16.gmra.mrb[20].mxu1 %vm278_vm0, %v1136_v27 }
  0x3b   :  { %1061 = vmatprep.mubr.msk.bf16.mxu0 %vm278_vm0, %v1137_v28  ;;  %1093 = vmatprep.mubr.msk.bf16.mxu1 %vm278_vm0, %v1138_v29 }
  0x42   :  { %1062 = vmatmul.mubr.msk.bf16.gmra.mrb[24].mxu0 %vm278_vm0, %v1139_v30  ;;  %1094 = vmatmul.mubr.msk.bf16.gmra.mrb[24].mxu1 %vm278_vm0, %v1140_v31 }
  0x43   :  { %1065 = vmatprep.mubr.msk.bf16.mxu0 %vm278_vm0, %v1141_v32  ;;  %1097 = vmatprep.mubr.msk.bf16.mxu1 %vm278_vm0, %v1142_v33 }
  0x4a   :  { %1066 = vmatmul.mubr.msk.bf16.gmra.mrb[28].mxu0 %vm278_vm0, %v1143_v34  ;;  %1098 = vmatmul.mubr.msk.bf16.gmra.mrb[28].mxu1 %vm278_vm0, %v1144_v35 }
  0xe5   :  { %v1039_v37 = vpop.f32.mrb[0].mxu0  ;;  %v1071_v38 = vpop.f32.mrb[0].mxu1 }
  0xe6   :  { %v418_v39 = vadd.f32 %v1039_v37, %v1308_v36  ;;  %v546_v40 = vadd.f32 %v1071_v38, %v1308_v36  ;;  %v409_v41 = vpop.f32.mrb[1].mxu0  ;;  %v537_v42 = vpop.f32.mrb[1].mxu1 }
  0xe7   :  { %v410_v43 = vadd.f32 %v1308_v36, %v409_v41  ;;  %v538_v44 = vadd.f32 %v1308_v36, %v537_v42  ;;  %v1040_v45 = vpop.f32.mrb[2].mxu0  ;;  %v1072_v46 = vpop.f32.mrb[2].mxu1 }
  0xe8   :  { %vm666_vm1 = vcmp.ge.f32.partialorder %v418_v39, 0.0  ;;  %v730_v47 = vmul.f32 0.2, %v418_v39  ;;  %vm698_vm2 = vcmp.ge.f32.partialorder %v546_v40, 0.0  ;;  %v762_v48 = vmul.f32 0.2, %v546_v40 }
  0xe9   :  { %vm664_vm3 = vcmp.ge.f32.partialorder %v410_v43, 0.0  ;;  %v728_v49 = vmul.f32 0.2, %v410_v43  ;;  %vm696_vm4 = vcmp.ge.f32.partialorder %v538_v44, 0.0  ;;  %v760_v50 = vmul.f32 0.2, %v538_v44 }
  0xea   :  { %v794_v51 = vsel %vm666_vm1, %v418_v39, %v730_v47  ;;  %v826_v52 = vsel %vm698_vm2, %v546_v40, %v762_v48  ;;  %v421_v53 = vadd.f32 %v1040_v45, %v1308_v36  ;;  %v549_v54 = vadd.f32 %v1072_v46, %v1308_v36  ;;  %v412_v55 = vpop.f32.mrb[3].mxu0  ;;  %v540_v56 = vpop.f32.mrb[3].mxu1 }
  0xeb   :  { %858 = vst [vmem:[%s1569_s3 + $0x10] sm:$0xff] %v794_v51  ;;  %890 = vst [vmem:[%s1569_s3 + $0x110] sm:$0xff] %v826_v52  ;;  %v792_v57 = vsel %vm664_vm3, %v410_v43, %v728_v49  ;;  %v824_v58 = vsel %vm696_vm4, %v538_v44, %v760_v50  ;;  %v413_v59 = vadd.f32 %v1308_v36, %v412_v55 }
  0xec   :  { %v541_v60 = vadd.f32 %v1308_v36, %v540_v56  ;;  %856 = vst [vmem:[%s1569_s3] sm:$0xff] %v792_v57  ;;  %888 = vst [vmem:[%s1569_s3 + $0x100] sm:$0xff] %v824_v58  ;;  %vm667_vm5 = vcmp.ge.f32.partialorder %v421_v53, 0.0  ;;  %v731_v61 = vmul.f32 0.2, %v421_v53  ;;  %vm699_vm6 = vcmp.ge.f32.partialorder %v549_v54, 0.0 }
  0xed   :  { %v763_v62 = vmul.f32 0.2, %v549_v54  ;;  %vm665_vm7 = vcmp.ge.f32.partialorder %v413_v59, 0.0  ;;  %v729_v63 = vmul.f32 0.2, %v413_v59  ;;  %v1043_v3 = vpop.f32.mrb[4].mxu0 }
  0xee   :  { %vm697_vm8 = vcmp.ge.f32.partialorder %v541_v60, 0.0  ;;  %v761_v0 = vmul.f32 0.2, %v541_v60  ;;  %v795_v1 = vsel %vm667_vm5, %v421_v53, %v731_v61  ;;  %v1075_v4 = vpop.f32.mrb[4].mxu1  ;;  %v434_v7 = vadd.f32 %v1043_v3, %v1308_v36  ;;  %v425_v9 = vpop.f32.mrb[5].mxu0 }
  0xef   :  { %v827_v2 = vsel %vm699_vm6, %v549_v54, %v763_v62  ;;  %859 = vst [vmem:[%s1569_s3 + $0x18] sm:$0xff] %v795_v1  ;;  %v793_v5 = vsel %vm665_vm7, %v413_v59, %v729_v63  ;;  %v562_v8 = vadd.f32 %v1075_v4, %v1308_v36  ;;  %v553_v10 = vpop.f32.mrb[5].mxu1  ;;  %v426_v11 = vadd.f32 %v1308_v36, %v425_v9  ;;  %v1044_v13 = vpop.f32.mrb[6].mxu0 }
  0xf0   :  { %891 = vst [vmem:[%s1569_s3 + $0x118] sm:$0xff] %v827_v2  ;;  %v825_v6 = vsel %vm697_vm8, %v541_v60, %v761_v0  ;;  %857 = vst [vmem:[%s1569_s3 + $0x8] sm:$0xff] %v793_v5  ;;  %v554_v12 = vadd.f32 %v1308_v36, %v553_v10  ;;  %v1076_v14 = vpop.f32.mrb[6].mxu1  ;;  %vm670_vm9 = vcmp.ge.f32.partialorder %v434_v7, 0.0  ;;  %v734_v15 = vmul.f32 0.2, %v434_v7 }
  0xf1   :  { %889 = vst [vmem:[%s1569_s3 + $0x108] sm:$0xff] %v825_v6  ;;  %vm702_vm10 = vcmp.ge.f32.partialorder %v562_v8, 0.0  ;;  %v766_v16 = vmul.f32 0.2, %v562_v8  ;;  %vm668_vm11 = vcmp.ge.f32.partialorder %v426_v11, 0.0  ;;  %v437_v21 = vadd.f32 %v1044_v13, %v1308_v36  ;;  %v428_v23 = vpop.f32.mrb[7].mxu0 }
  0xf2   :  { %v732_v17 = vmul.f32 0.2, %v426_v11  ;;  %vm700_vm12 = vcmp.ge.f32.partialorder %v554_v12, 0.0  ;;  %v764_v18 = vmul.f32 0.2, %v554_v12  ;;  %v798_v19 = vsel %vm670_vm9, %v434_v7, %v734_v15  ;;  %v556_v24 = vpop.f32.mrb[7].mxu1 }
  0xf3   :  { %v830_v20 = vsel %vm702_vm10, %v562_v8, %v766_v16  ;;  %v565_v22 = vadd.f32 %v1076_v14, %v1308_v36  ;;  %862 = vst [vmem:[%s1569_s3 + $0x30] sm:$0xff] %v798_v19  ;;  %v429_v27 = vadd.f32 %v1308_v36, %v428_v23  ;;  %v557_v28 = vadd.f32 %v1308_v36, %v556_v24 }
  0xf4   :  { %894 = vst [vmem:[%s1569_s3 + $0x130] sm:$0xff] %v830_v20  ;;  %v796_v25 = vsel %vm668_vm11, %v426_v11, %v732_v17  ;;  %v828_v26 = vsel %vm700_vm12, %v554_v12, %v764_v18  ;;  %vm671_vm13 = vcmp.ge.f32.partialorder %v437_v21, 0.0  ;;  %v735_v29 = vmul.f32 0.2, %v437_v21 }
  0xf5   :  { %860 = vst [vmem:[%s1569_s3 + $0x20] sm:$0xff] %v796_v25  ;;  %892 = vst [vmem:[%s1569_s3 + $0x120] sm:$0xff] %v828_v26  ;;  %vm703_vm14 = vcmp.ge.f32.partialorder %v565_v22, 0.0  ;;  %v767_v30 = vmul.f32 0.2, %v565_v22  ;;  %vm669_vm15 = vcmp.ge.f32.partialorder %v429_v27, 0.0 }
  0xf6   :  { %v733_v31 = vmul.f32 0.2, %v429_v27  ;;  %vm701_vm0 = vcmp.ge.f32.partialorder %v557_v28, 0.0  ;;  %v765_v32 = vmul.f32 0.2, %v557_v28  ;;  %v799_v33 = vsel %vm671_vm13, %v437_v21, %v735_v29  ;;  %v1047_v35 = vpop.f32.mrb[8].mxu0 }
  0xf7   :  { %v831_v34 = vsel %vm703_vm14, %v565_v22, %v767_v30  ;;  %v1079_v37 = vpop.f32.mrb[8].mxu1  ;;  %863 = vst [vmem:[%s1569_s3 + $0x38] sm:$0xff] %v799_v33  ;;  %v450_v40 = vadd.f32 %v1047_v35, %v1308_v36  ;;  %v441_v42 = vpop.f32.mrb[9].mxu0 }
  0xf8   :  { %895 = vst [vmem:[%s1569_s3 + $0x138] sm:$0xff] %v831_v34  ;;  %v797_v38 = vsel %vm669_vm15, %v429_v27, %v733_v31  ;;  %v829_v39 = vsel %vm701_vm0, %v557_v28, %v765_v32  ;;  %v578_v41 = vadd.f32 %v1079_v37, %v1308_v36  ;;  %v569_v43 = vpop.f32.mrb[9].mxu1  ;;  %v442_v44 = vadd.f32 %v1308_v36, %v441_v42  ;;  %v1048_v46 = vpop.f32.mrb[10].mxu0 }
  0xf9   :  { %861 = vst [vmem:[%s1569_s3 + $0x28] sm:$0xff] %v797_v38  ;;  %893 = vst [vmem:[%s1569_s3 + $0x128] sm:$0xff] %v829_v39  ;;  %v570_v45 = vadd.f32 %v1308_v36, %v569_v43  ;;  %v1080_v47 = vpop.f32.mrb[10].mxu1  ;;  %vm674_vm1 = vcmp.ge.f32.partialorder %v450_v40, 0.0  ;;  %v738_v48 = vmul.f32 0.2, %v450_v40  ;;  %v453_v54 = vadd.f32 %v1048_v46, %v1308_v36 }
  0xfa   :  { %vm706_vm2 = vcmp.ge.f32.partialorder %v578_v41, 0.0  ;;  %v770_v49 = vmul.f32 0.2, %v578_v41  ;;  %vm672_vm3 = vcmp.ge.f32.partialorder %v442_v44, 0.0  ;;  %v736_v50 = vmul.f32 0.2, %v442_v44 }
  0xfb   :  { %vm704_vm4 = vcmp.ge.f32.partialorder %v570_v45, 0.0  ;;  %v768_v51 = vmul.f32 0.2, %v570_v45  ;;  %v802_v52 = vsel %vm674_vm1, %v450_v40, %v738_v48  ;;  %v581_v55 = vadd.f32 %v1080_v47, %v1308_v36  ;;  %v444_v56 = vpop.f32.mrb[11].mxu0  ;;  %v572_v57 = vpop.f32.mrb[11].mxu1 }
  0xfc   :  { %v834_v53 = vsel %vm706_vm2, %v578_v41, %v770_v49  ;;  %866 = vst [vmem:[%s1569_s3 + $0x50] sm:$0xff] %v802_v52  ;;  %v800_v58 = vsel %vm672_vm3, %v442_v44, %v736_v50  ;;  %v445_v60 = vadd.f32 %v1308_v36, %v444_v56  ;;  %v573_v61 = vadd.f32 %v1308_v36, %v572_v57 }
  0xfd   :  { %898 = vst [vmem:[%s1569_s3 + $0x150] sm:$0xff] %v834_v53  ;;  %v832_v59 = vsel %vm704_vm4, %v570_v45, %v768_v51  ;;  %v1051_v62 = vpop.f32.mrb[12].mxu0  ;;  %v1083_v63 = vpop.f32.mrb[12].mxu1  ;;  %864 = vst [vmem:[%s1569_s3 + $0x40] sm:$0xff] %v800_v58  ;;  %vm675_vm5 = vcmp.ge.f32.partialorder %v453_v54, 0.0  ;;  %vm707_vm6 = vcmp.ge.f32.partialorder %v581_v55, 0.0 }
  0xfe   :  { %896 = vst [vmem:[%s1569_s3 + $0x140] sm:$0xff] %v832_v59  ;;  %v739_v0 = vmul.f32 0.2, %v453_v54  ;;  %v771_v1 = vmul.f32 0.2, %v581_v55  ;;  %vm673_vm7 = vcmp.ge.f32.partialorder %v445_v60, 0.0  ;;  %v466_v6 = vadd.f32 %v1051_v62, %v1308_v36 }
  0xff   :  { %v737_v2 = vmul.f32 0.2, %v445_v60  ;;  %vm705_vm8 = vcmp.ge.f32.partialorder %v573_v61, 0.0  ;;  %v769_v3 = vmul.f32 0.2, %v573_v61  ;;  %v594_v7 = vadd.f32 %v1083_v63, %v1308_v36  ;;  %v457_v8 = vpop.f32.mrb[13].mxu0 }
 0x100   :  { %v803_v4 = vsel %vm675_vm5, %v453_v54, %v739_v0  ;;  %v835_v5 = vsel %vm707_vm6, %v581_v55, %v771_v1  ;;  %v585_v9 = vpop.f32.mrb[13].mxu1  ;;  %v458_v12 = vadd.f32 %v1308_v36, %v457_v8  ;;  %v1052_v14 = vpop.f32.mrb[14].mxu0  ;;  %vm678_vm9 = vcmp.ge.f32.partialorder %v466_v6, 0.0 }
 0x101   :  { %867 = vst [vmem:[%s1569_s3 + $0x58] sm:$0xff] %v803_v4  ;;  %899 = vst [vmem:[%s1569_s3 + $0x158] sm:$0xff] %v835_v5  ;;  %v801_v10 = vsel %vm673_vm7, %v445_v60, %v737_v2  ;;  %v833_v11 = vsel %vm705_vm8, %v573_v61, %v769_v3  ;;  %v586_v13 = vadd.f32 %v1308_v36, %v585_v9  ;;  %v1084_v15 = vpop.f32.mrb[14].mxu1  ;;  %v742_v16 = vmul.f32 0.2, %v466_v6  ;;  %v460_v24 = vpop.f32.mrb[15].mxu0 }
 0x102   :  { %865 = vst [vmem:[%s1569_s3 + $0x48] sm:$0xff] %v801_v10  ;;  %897 = vst [vmem:[%s1569_s3 + $0x148] sm:$0xff] %v833_v11  ;;  %vm710_vm10 = vcmp.ge.f32.partialorder %v594_v7, 0.0  ;;  %v774_v17 = vmul.f32 0.2, %v594_v7  ;;  %vm676_vm11 = vcmp.ge.f32.partialorder %v458_v12, 0.0  ;;  %v469_v22 = vadd.f32 %v1052_v14, %v1308_v36 }
 0x103   :  { %v740_v18 = vmul.f32 0.2, %v458_v12  ;;  %vm708_vm12 = vcmp.ge.f32.partialorder %v586_v13, 0.0  ;;  %v772_v19 = vmul.f32 0.2, %v586_v13  ;;  %v806_v20 = vsel %vm678_vm9, %v466_v6, %v742_v16  ;;  %v588_v25 = vpop.f32.mrb[15].mxu1 }
 0x104   :  { %v838_v21 = vsel %vm710_vm10, %v594_v7, %v774_v17  ;;  %v597_v23 = vadd.f32 %v1084_v15, %v1308_v36  ;;  %870 = vst [vmem:[%s1569_s3 + $0x70] sm:$0xff] %v806_v20  ;;  %v461_v28 = vadd.f32 %v1308_v36, %v460_v24  ;;  %v589_v29 = vadd.f32 %v1308_v36, %v588_v25 }
 0x105   :  { %902 = vst [vmem:[%s1569_s3 + $0x170] sm:$0xff] %v838_v21  ;;  %v804_v26 = vsel %vm676_vm11, %v458_v12, %v740_v18  ;;  %v836_v27 = vsel %vm708_vm12, %v586_v13, %v772_v19  ;;  %v1055_v30 = vpop.f32.mrb[16].mxu0  ;;  %v1087_v31 = vpop.f32.mrb[16].mxu1  ;;  %vm679_vm13 = vcmp.ge.f32.partialorder %v469_v22, 0.0  ;;  %v743_v32 = vmul.f32 0.2, %v469_v22 }
 0x106   :  { %868 = vst [vmem:[%s1569_s3 + $0x60] sm:$0xff] %v804_v26  ;;  %900 = vst [vmem:[%s1569_s3 + $0x160] sm:$0xff] %v836_v27  ;;  %vm711_vm14 = vcmp.ge.f32.partialorder %v597_v23, 0.0  ;;  %v775_v33 = vmul.f32 0.2, %v597_v23  ;;  %vm677_vm15 = vcmp.ge.f32.partialorder %v461_v28, 0.0  ;;  %v482_v39 = vadd.f32 %v1055_v30, %v1308_v36 }
 0x107   :  { %v741_v34 = vmul.f32 0.2, %v461_v28  ;;  %vm709_vm0 = vcmp.ge.f32.partialorder %v589_v29, 0.0  ;;  %v773_v35 = vmul.f32 0.2, %v589_v29  ;;  %v807_v37 = vsel %vm679_vm13, %v469_v22, %v743_v32  ;;  %v473_v41 = vpop.f32.mrb[17].mxu0 }
 0x108   :  { %v839_v38 = vsel %vm711_vm14, %v597_v23, %v775_v33  ;;  %v610_v40 = vadd.f32 %v1087_v31, %v1308_v36  ;;  %v601_v42 = vpop.f32.mrb[17].mxu1  ;;  %871 = vst [vmem:[%s1569_s3 + $0x78] sm:$0xff] %v807_v37  ;;  %v474_v45 = vadd.f32 %v1308_v36, %v473_v41  ;;  %v1056_v47 = vpop.f32.mrb[18].mxu0  ;;  %vm682_vm1 = vcmp.ge.f32.partialorder %v482_v39, 0.0 }
 0x109   :  { %903 = vst [vmem:[%s1569_s3 + $0x178] sm:$0xff] %v839_v38  ;;  %v805_v43 = vsel %vm677_vm15, %v461_v28, %v741_v34  ;;  %v837_v44 = vsel %vm709_vm0, %v589_v29, %v773_v35  ;;  %v602_v46 = vadd.f32 %v1308_v36, %v601_v42  ;;  %v1088_v48 = vpop.f32.mrb[18].mxu1  ;;  %v746_v49 = vmul.f32 0.2, %v482_v39  ;;  %v476_v57 = vpop.f32.mrb[19].mxu0 }
 0x10a   :  { %869 = vst [vmem:[%s1569_s3 + $0x68] sm:$0xff] %v805_v43  ;;  %901 = vst [vmem:[%s1569_s3 + $0x168] sm:$0xff] %v837_v44  ;;  %vm714_vm2 = vcmp.ge.f32.partialorder %v610_v40, 0.0  ;;  %v778_v50 = vmul.f32 0.2, %v610_v40  ;;  %vm680_vm3 = vcmp.ge.f32.partialorder %v474_v45, 0.0  ;;  %v485_v55 = vadd.f32 %v1056_v47, %v1308_v36 }
 0x10b   :  { %v744_v51 = vmul.f32 0.2, %v474_v45  ;;  %vm712_vm4 = vcmp.ge.f32.partialorder %v602_v46, 0.0  ;;  %v776_v52 = vmul.f32 0.2, %v602_v46  ;;  %v810_v53 = vsel %vm682_vm1, %v482_v39, %v746_v49  ;;  %v604_v58 = vpop.f32.mrb[19].mxu1 }
 0x10c   :  { %v842_v54 = vsel %vm714_vm2, %v610_v40, %v778_v50  ;;  %v613_v56 = vadd.f32 %v1088_v48, %v1308_v36  ;;  %874 = vst [vmem:[%s1569_s3 + $0x90] sm:$0xff] %v810_v53  ;;  %v477_v61 = vadd.f32 %v1308_v36, %v476_v57  ;;  %v605_v62 = vadd.f32 %v1308_v36, %v604_v58 }
 0x10d   :  { %906 = vst [vmem:[%s1569_s3 + $0x190] sm:$0xff] %v842_v54  ;;  %v808_v59 = vsel %vm680_vm3, %v474_v45, %v744_v51  ;;  %v840_v60 = vsel %vm712_vm4, %v602_v46, %v776_v52  ;;  %v1059_v63 = vpop.f32.mrb[20].mxu0  ;;  %v1091_v0 = vpop.f32.mrb[20].mxu1  ;;  %vm683_vm5 = vcmp.ge.f32.partialorder %v485_v55, 0.0  ;;  %v747_v1 = vmul.f32 0.2, %v485_v55 }
 0x10e   :  { %872 = vst [vmem:[%s1569_s3 + $0x80] sm:$0xff] %v808_v59  ;;  %904 = vst [vmem:[%s1569_s3 + $0x180] sm:$0xff] %v840_v60  ;;  %vm715_vm6 = vcmp.ge.f32.partialorder %v613_v56, 0.0  ;;  %v779_v2 = vmul.f32 0.2, %v613_v56  ;;  %vm681_vm7 = vcmp.ge.f32.partialorder %v477_v61, 0.0  ;;  %v498_v7 = vadd.f32 %v1059_v63, %v1308_v36 }
 0x10f   :  { %v745_v3 = vmul.f32 0.2, %v477_v61  ;;  %vm713_vm8 = vcmp.ge.f32.partialorder %v605_v62, 0.0  ;;  %v777_v4 = vmul.f32 0.2, %v605_v62  ;;  %v811_v5 = vsel %vm683_vm5, %v485_v55, %v747_v1  ;;  %v489_v9 = vpop.f32.mrb[21].mxu0 }
 0x110   :  { %v843_v6 = vsel %vm715_vm6, %v613_v56, %v779_v2  ;;  %v626_v8 = vadd.f32 %v1091_v0, %v1308_v36  ;;  %v617_v10 = vpop.f32.mrb[21].mxu1  ;;  %875 = vst [vmem:[%s1569_s3 + $0x98] sm:$0xff] %v811_v5  ;;  %v490_v13 = vadd.f32 %v1308_v36, %v489_v9  ;;  %v1060_v15 = vpop.f32.mrb[22].mxu0  ;;  %vm686_vm9 = vcmp.ge.f32.partialorder %v498_v7, 0.0 }
 0x111   :  { %907 = vst [vmem:[%s1569_s3 + $0x198] sm:$0xff] %v843_v6  ;;  %v809_v11 = vsel %vm681_vm7, %v477_v61, %v745_v3  ;;  %v841_v12 = vsel %vm713_vm8, %v605_v62, %v777_v4  ;;  %v618_v14 = vadd.f32 %v1308_v36, %v617_v10  ;;  %v1092_v16 = vpop.f32.mrb[22].mxu1  ;;  %v750_v17 = vmul.f32 0.2, %v498_v7  ;;  %v492_v25 = vpop.f32.mrb[23].mxu0 }
 0x112   :  { %873 = vst [vmem:[%s1569_s3 + $0x88] sm:$0xff] %v809_v11  ;;  %905 = vst [vmem:[%s1569_s3 + $0x188] sm:$0xff] %v841_v12  ;;  %vm718_vm10 = vcmp.ge.f32.partialorder %v626_v8, 0.0  ;;  %v782_v18 = vmul.f32 0.2, %v626_v8  ;;  %vm684_vm11 = vcmp.ge.f32.partialorder %v490_v13, 0.0  ;;  %v501_v23 = vadd.f32 %v1060_v15, %v1308_v36 }
 0x113   :  { %v748_v19 = vmul.f32 0.2, %v490_v13  ;;  %vm716_vm12 = vcmp.ge.f32.partialorder %v618_v14, 0.0  ;;  %v780_v20 = vmul.f32 0.2, %v618_v14  ;;  %v814_v21 = vsel %vm686_vm9, %v498_v7, %v750_v17  ;;  %v620_v26 = vpop.f32.mrb[23].mxu1 }
 0x114   :  { %v846_v22 = vsel %vm718_vm10, %v626_v8, %v782_v18  ;;  %v629_v24 = vadd.f32 %v1092_v16, %v1308_v36  ;;  %878 = vst [vmem:[%s1569_s3 + $0xb0] sm:$0xff] %v814_v21  ;;  %v493_v29 = vadd.f32 %v1308_v36, %v492_v25  ;;  %v621_v30 = vadd.f32 %v1308_v36, %v620_v26 }
 0x115   :  { %910 = vst [vmem:[%s1569_s3 + $0x1b0] sm:$0xff] %v846_v22  ;;  %v812_v27 = vsel %vm684_vm11, %v490_v13, %v748_v19  ;;  %v844_v28 = vsel %vm716_vm12, %v618_v14, %v780_v20  ;;  %v1063_v31 = vpop.f32.mrb[24].mxu0  ;;  %v1095_v32 = vpop.f32.mrb[24].mxu1  ;;  %vm687_vm13 = vcmp.ge.f32.partialorder %v501_v23, 0.0  ;;  %v751_v33 = vmul.f32 0.2, %v501_v23 }
 0x116   :  { %876 = vst [vmem:[%s1569_s3 + $0xa0] sm:$0xff] %v812_v27  ;;  %908 = vst [vmem:[%s1569_s3 + $0x1a0] sm:$0xff] %v844_v28  ;;  %vm719_vm14 = vcmp.ge.f32.partialorder %v629_v24, 0.0  ;;  %v783_v34 = vmul.f32 0.2, %v629_v24  ;;  %vm685_vm15 = vcmp.ge.f32.partialorder %v493_v29, 0.0  ;;  %v514_v40 = vadd.f32 %v1063_v31, %v1308_v36 }
 0x117   :  { %v749_v35 = vmul.f32 0.2, %v493_v29  ;;  %vm717_vm0 = vcmp.ge.f32.partialorder %v621_v30, 0.0  ;;  %v781_v37 = vmul.f32 0.2, %v621_v30  ;;  %v815_v38 = vsel %vm687_vm13, %v501_v23, %v751_v33  ;;  %v505_v42 = vpop.f32.mrb[25].mxu0 }
 0x118   :  { %v847_v39 = vsel %vm719_vm14, %v629_v24, %v783_v34  ;;  %v642_v41 = vadd.f32 %v1095_v32, %v1308_v36  ;;  %v633_v43 = vpop.f32.mrb[25].mxu1  ;;  %879 = vst [vmem:[%s1569_s3 + $0xb8] sm:$0xff] %v815_v38  ;;  %v506_v46 = vadd.f32 %v1308_v36, %v505_v42  ;;  %v1064_v48 = vpop.f32.mrb[26].mxu0  ;;  %vm690_vm1 = vcmp.ge.f32.partialorder %v514_v40, 0.0 }
 0x119   :  { %911 = vst [vmem:[%s1569_s3 + $0x1b8] sm:$0xff] %v847_v39  ;;  %v813_v44 = vsel %vm685_vm15, %v493_v29, %v749_v35  ;;  %v845_v45 = vsel %vm717_vm0, %v621_v30, %v781_v37  ;;  %v634_v47 = vadd.f32 %v1308_v36, %v633_v43  ;;  %v1096_v49 = vpop.f32.mrb[26].mxu1  ;;  %v754_v50 = vmul.f32 0.2, %v514_v40  ;;  %v508_v58 = vpop.f32.mrb[27].mxu0 }
 0x11a   :  { %877 = vst [vmem:[%s1569_s3 + $0xa8] sm:$0xff] %v813_v44  ;;  %909 = vst [vmem:[%s1569_s3 + $0x1a8] sm:$0xff] %v845_v45  ;;  %vm722_vm2 = vcmp.ge.f32.partialorder %v642_v41, 0.0  ;;  %v786_v51 = vmul.f32 0.2, %v642_v41  ;;  %vm688_vm3 = vcmp.ge.f32.partialorder %v506_v46, 0.0  ;;  %v517_v56 = vadd.f32 %v1064_v48, %v1308_v36 }
 0x11b   :  { %v752_v52 = vmul.f32 0.2, %v506_v46  ;;  %vm720_vm4 = vcmp.ge.f32.partialorder %v634_v47, 0.0  ;;  %v784_v53 = vmul.f32 0.2, %v634_v47  ;;  %v818_v54 = vsel %vm690_vm1, %v514_v40, %v754_v50  ;;  %v636_v59 = vpop.f32.mrb[27].mxu1 }
 0x11c   :  { %v850_v55 = vsel %vm722_vm2, %v642_v41, %v786_v51  ;;  %v645_v57 = vadd.f32 %v1096_v49, %v1308_v36  ;;  %882 = vst [vmem:[%s1569_s3 + $0xd0] sm:$0xff] %v818_v54  ;;  %v509_v62 = vadd.f32 %v1308_v36, %v508_v58  ;;  %v637_v63 = vadd.f32 %v1308_v36, %v636_v59 }
 0x11d   :  { %914 = vst [vmem:[%s1569_s3 + $0x1d0] sm:$0xff] %v850_v55  ;;  %v816_v60 = vsel %vm688_vm3, %v506_v46, %v752_v52  ;;  %v848_v61 = vsel %vm720_vm4, %v634_v47, %v784_v53  ;;  %v1067_v0 = vpop.f32.mrb[28].mxu0  ;;  %v1099_v1 = vpop.f32.mrb[28].mxu1  ;;  %vm691_vm5 = vcmp.ge.f32.partialorder %v517_v56, 0.0  ;;  %v755_v2 = vmul.f32 0.2, %v517_v56 }
 0x11e   :  { %880 = vst [vmem:[%s1569_s3 + $0xc0] sm:$0xff] %v816_v60  ;;  %912 = vst [vmem:[%s1569_s3 + $0x1c0] sm:$0xff] %v848_v61  ;;  %vm723_vm6 = vcmp.ge.f32.partialorder %v645_v57, 0.0  ;;  %v787_v3 = vmul.f32 0.2, %v645_v57  ;;  %vm689_vm7 = vcmp.ge.f32.partialorder %v509_v62, 0.0  ;;  %v530_v8 = vadd.f32 %v1067_v0, %v1308_v36 }
 0x11f   :  { %v753_v4 = vmul.f32 0.2, %v509_v62  ;;  %vm721_vm8 = vcmp.ge.f32.partialorder %v637_v63, 0.0  ;;  %v785_v5 = vmul.f32 0.2, %v637_v63  ;;  %v819_v6 = vsel %vm691_vm5, %v517_v56, %v755_v2  ;;  %v521_v10 = vpop.f32.mrb[29].mxu0 }
 0x120   :  { %v851_v7 = vsel %vm723_vm6, %v645_v57, %v787_v3  ;;  %v658_v9 = vadd.f32 %v1099_v1, %v1308_v36  ;;  %v649_v11 = vpop.f32.mrb[29].mxu1  ;;  %883 = vst [vmem:[%s1569_s3 + $0xd8] sm:$0xff] %v819_v6  ;;  %v522_v14 = vadd.f32 %v1308_v36, %v521_v10  ;;  %v1068_v16 = vpop.f32.mrb[30].mxu0  ;;  %vm694_vm9 = vcmp.ge.f32.partialorder %v530_v8, 0.0 }
 0x121   :  { %915 = vst [vmem:[%s1569_s3 + $0x1d8] sm:$0xff] %v851_v7  ;;  %v817_v12 = vsel %vm689_vm7, %v509_v62, %v753_v4  ;;  %v849_v13 = vsel %vm721_vm8, %v637_v63, %v785_v5  ;;  %v650_v15 = vadd.f32 %v1308_v36, %v649_v11  ;;  %v1100_v17 = vpop.f32.mrb[30].mxu1  ;;  %v758_v18 = vmul.f32 0.2, %v530_v8  ;;  %v524_v26 = vpop.f32.mrb[31].mxu0 }
 0x122   :  { %881 = vst [vmem:[%s1569_s3 + $0xc8] sm:$0xff] %v817_v12  ;;  %913 = vst [vmem:[%s1569_s3 + $0x1c8] sm:$0xff] %v849_v13  ;;  %vm726_vm10 = vcmp.ge.f32.partialorder %v658_v9, 0.0  ;;  %v790_v19 = vmul.f32 0.2, %v658_v9  ;;  %vm692_vm11 = vcmp.ge.f32.partialorder %v522_v14, 0.0  ;;  %v533_v24 = vadd.f32 %v1068_v16, %v1308_v36 }
 0x123   :  { %v756_v20 = vmul.f32 0.2, %v522_v14  ;;  %vm724_vm12 = vcmp.ge.f32.partialorder %v650_v15, 0.0  ;;  %v788_v21 = vmul.f32 0.2, %v650_v15  ;;  %v822_v22 = vsel %vm694_vm9, %v530_v8, %v758_v18  ;;  %v652_v27 = vpop.f32.mrb[31].mxu1 }
 0x124   :  { %v854_v23 = vsel %vm726_vm10, %v658_v9, %v790_v19  ;;  %v661_v25 = vadd.f32 %v1100_v17, %v1308_v36  ;;  %886 = vst [vmem:[%s1569_s3 + $0xf0] sm:$0xff] %v822_v22  ;;  %v525_v30 = vadd.f32 %v1308_v36, %v524_v26  ;;  %v653_v31 = vadd.f32 %v1308_v36, %v652_v27 }
 0x125   :  { %918 = vst [vmem:[%s1569_s3 + $0x1f0] sm:$0xff] %v854_v23  ;;  %v820_v28 = vsel %vm692_vm11, %v522_v14, %v756_v20  ;;  %v852_v29 = vsel %vm724_vm12, %v650_v15, %v788_v21  ;;  %vm695_vm13 = vcmp.ge.f32.partialorder %v533_v24, 0.0  ;;  %v759_v32 = vmul.f32 0.2, %v533_v24 }
 0x126   :  { %884 = vst [vmem:[%s1569_s3 + $0xe0] sm:$0xff] %v820_v28  ;;  %916 = vst [vmem:[%s1569_s3 + $0x1e0] sm:$0xff] %v852_v29  ;;  %vm727_vm14 = vcmp.ge.f32.partialorder %v661_v25, 0.0  ;;  %v791_v33 = vmul.f32 0.2, %v661_v25  ;;  %vm693_vm15 = vcmp.ge.f32.partialorder %v525_v30, 0.0 }
 0x127   :  { %v757_v34 = vmul.f32 0.2, %v525_v30  ;;  %vm725_vm0 = vcmp.ge.f32.partialorder %v653_v31, 0.0  ;;  %v789_v35 = vmul.f32 0.2, %v653_v31  ;;  %v823_v37 = vsel %vm695_vm13, %v533_v24, %v759_v32 }
 0x128   :  { %v855_v38 = vsel %vm727_vm14, %v661_v25, %v791_v33  ;;  %887 = vst [vmem:[%s1569_s3 + $0xf8] sm:$0xff] %v823_v37 }
 0x129   :  { %919 = vst [vmem:[%s1569_s3 + $0x1f8] sm:$0xff] %v855_v38  ;;  %v821_v36 = vsel %vm693_vm15, %v525_v30, %v757_v34  ;;  %v853_v39 = vsel %vm725_vm0, %v653_v31, %v789_v35 }
 0x12a   :  { %885 = vst [vmem:[%s1569_s3 + $0xe8] sm:$0xff] %v821_v36  ;;  %917 = vst [vmem:[%s1569_s3 + $0x1e8] sm:$0xff] %v853_v39 }

// kernel: _lambda_.9
= control target key start
LH: loop header
LB: loop body
LE: loop exit
PB: predicated region body
PF: predicated region fallthrough
CT: control target
= control target key end

     0   :  { %s769_s1 = inlined_call_operand.vmem [shape: bf16[256,128], index: 1, kind: input, shape index: {}]   ;;  %s770_s0 = inlined_call_operand.vmem [shape: bf16[128,256], index: 0, kind: input, shape index: {}]   ;;  %s771_s2 = inlined_call_operand.vmem [shape: f32[128,128], index: 2, kind: output, shape index: {0}]   ;;  %s772_s3 = inlined_call_operand.vmem [shape: f32[1,1,128], index: 3, kind: output, shape index: {1}]   ;;  %s773_s4 = inlined_call_operand.vmem [shape: f32[1,1,128], index: 4, kind: output, shape index: {2}]  }
   0x1   :  { %v536_v0 = vld [vmem:[%s769_s1 + $0x40] sm:$0xff]   ;;  %v538_v2 = vld [vmem:[%s769_s1 + $0x48] sm:$0xff]   ;;  %v540_v4 = vld [vmem:[%s769_s1 + $0x50] sm:$0xff]  }
   0x2   :  { %v537_v1 = vld [vmem:[%s769_s1] sm:$0xff]   ;;  %456 = vmatprep.subr.bf16.mxu0 %v536_v0  ;;  %520 = vmatprep.subr.bf16.mxu1 %v536_v0  ;;  %v539_v3 = vld [vmem:[%s769_s1 + $0x8] sm:$0xff]   ;;  %v541_v5 = vld [vmem:[%s769_s1 + $0x10] sm:$0xff]  }
   0x3   :  { %457 = vmatpush3.bf16.msra.mxu0 %v537_v1  ;;  %528 = vmatpush3.bf16.msra.mxu1 %v537_v1  ;;  %v542_v6 = vld [vmem:[%s769_s1 + $0x58] sm:$0xff]   ;;  %v544_v8 = vld [vmem:[%s769_s1 + $0x60] sm:$0xff]   ;;  %v546_v10 = vld [vmem:[%s769_s1 + $0x68] sm:$0xff]  }
   0x4   :  { %458 = vmatprep.subr.bf16.mxu0 %v538_v2  ;;  %521 = vmatprep.subr.bf16.mxu1 %v538_v2  ;;  %v543_v7 = vld [vmem:[%s769_s1 + $0x18] sm:$0xff]   ;;  %v545_v9 = vld [vmem:[%s769_s1 + $0x20] sm:$0xff]   ;;  %v547_v12 = vld [vmem:[%s769_s1 + $0x28] sm:$0xff]  }
   0x5   :  { %v554_v11 = vld [vmem:[%s770_s0 + $0x4] ss:$8 sps:$4 sm:$0xff]   ;;  %v548_v14 = vld [vmem:[%s769_s1 + $0x70] sm:$0xff]   ;;  %v550_v16 = vld [vmem:[%s769_s1 + $0x78] sm:$0xff]  }
   0x6   :  { %v560_v13 = vld [vmem:[%s770_s0 + $0x44] ss:$8 sps:$4 sm:$0xff]   ;;  %271 = vmatprep.mubr.bf16.mxu0 %v554_v11  ;;  %v549_v15 = vld [vmem:[%s769_s1 + $0x30] sm:$0xff]   ;;  %v551_v17 = vld [vmem:[%s769_s1 + $0x38] sm:$0xff]  }
   0x7   :  { %459 = vmatpush3.bf16.msra.mxu0 %v539_v3  ;;  %529 = vmatpush3.bf16.msra.mxu1 %v539_v3  ;;  %v552_v18 = vld [vmem:[%s770_s0] ss:$8 sps:$4 sm:$0xff]   ;;  %v555_v20 = vld [vmem:[%s770_s0 + $0x14] ss:$8 sps:$4 sm:$0xff]   ;;  %v557_v22 = vld [vmem:[%s770_s0 + $0x10] ss:$8 sps:$4 sm:$0xff]  }
   0x8   :  { %460 = vmatprep.subr.bf16.mxu0 %v540_v4  ;;  %522 = vmatprep.subr.bf16.mxu1 %v540_v4  ;;  %v558_v19 = vld [vmem:[%s770_s0 + $0x40] ss:$8 sps:$4 sm:$0xff]   ;;  %v564_v21 = vld [vmem:[%s770_s0 + $0x54] ss:$8 sps:$4 sm:$0xff]   ;;  %v566_v23 = vld [vmem:[%s770_s0 + $0x50] ss:$8 sps:$4 sm:$0xff]  }
   0x9   :  { %303 = vmatprep.mubr.bf16.mxu1 %v560_v13  ;;  %v561_v24 = vld [vmem:[%s770_s0 + $0x24] ss:$8 sps:$4 sm:$0xff]   ;;  %v563_v26 = vld [vmem:[%s770_s0 + $0x20] ss:$8 sps:$4 sm:$0xff]   ;;  %v567_v28 = vld [vmem:[%s770_s0 + $0x34] ss:$8 sps:$4 sm:$0xff]  }
   0xa   :  { %v570_v25 = vld [vmem:[%s770_s0 + $0x64] ss:$8 sps:$4 sm:$0xff]   ;;  %v572_v27 = vld [vmem:[%s770_s0 + $0x60] ss:$8 sps:$4 sm:$0xff]   ;;  %v573_v29 = vld [vmem:[%s770_s0 + $0x74] ss:$8 sps:$4 sm:$0xff]  }
   0xb   :  { %461 = vmatpush3.bf16.msra.mxu0 %v541_v5  ;;  %530 = vmatpush3.bf16.msra.mxu1 %v541_v5  ;;  %v569_v30 = vld [vmem:[%s770_s0 + $0x30] ss:$8 sps:$4 sm:$0xff]  }
   0xc   :  { %462 = vmatprep.subr.bf16.mxu0 %v542_v6  ;;  %523 = vmatprep.subr.bf16.mxu1 %v542_v6  ;;  %v575_v31 = vld [vmem:[%s770_s0 + $0x70] ss:$8 sps:$4 sm:$0xff]  }
   0xf   :  { %463 = vmatpush3.bf16.msra.mxu0 %v543_v7  ;;  %531 = vmatpush3.bf16.msra.mxu1 %v543_v7 }
  0x10   :  { %464 = vmatprep.subr.bf16.mxu0 %v544_v8  ;;  %524 = vmatprep.subr.bf16.mxu1 %v544_v8 }
  0x13   :  { %465 = vmatpush3.bf16.msra.mxu0 %v545_v9  ;;  %532 = vmatpush3.bf16.msra.mxu1 %v545_v9 }
  0x14   :  { %466 = vmatprep.subr.bf16.mxu0 %v546_v10  ;;  %525 = vmatprep.subr.bf16.mxu1 %v546_v10 }
  0x17   :  { %467 = vmatpush3.bf16.msra.mxu0 %v547_v12  ;;  %533 = vmatpush3.bf16.msra.mxu1 %v547_v12 }
  0x18   :  { %468 = vmatprep.subr.bf16.mxu0 %v548_v14  ;;  %526 = vmatprep.subr.bf16.mxu1 %v548_v14 }
  0x1b   :  { %469 = vmatpush3.bf16.msra.mxu0 %v549_v15  ;;  %534 = vmatpush3.bf16.msra.mxu1 %v549_v15 }
  0x1c   :  { %470 = vmatprep.subr.bf16.mxu0 %v550_v16  ;;  %527 = vmatprep.subr.bf16.mxu1 %v550_v16 }
  0x1f   :  { %471 = vmatpush3.bf16.msra.mxu0 %v551_v17  ;;  %535 = vmatpush3.bf16.msra.mxu1 %v551_v17 }
  0x22   :  { %272 = vmatmul.mubr.bf16.vlgmr.msra.gmra.mrb[0].mxu0 %v552_v18  ;;  %304 = vmatmul.mubr.bf16.vlgmr.msra.gmra.mrb[0].mxu1 %v558_v19 }
  0x23   :  { %279 = vmatprep.mubr.bf16.mxu0 %v555_v20  ;;  %311 = vmatprep.mubr.bf16.mxu1 %v564_v21 }
  0x2a   :  { %280 = vmatmul.mubr.bf16.gmra.mrb[4].mxu0 %v557_v22  ;;  %312 = vmatmul.mubr.bf16.gmra.mrb[4].mxu1 %v566_v23 }
  0x2b   :  { %287 = vmatprep.mubr.bf16.mxu0 %v561_v24  ;;  %319 = vmatprep.mubr.bf16.mxu1 %v570_v25 }
  0x32   :  { %288 = vmatmul.mubr.bf16.gmra.mrb[8].mxu0 %v563_v26  ;;  %320 = vmatmul.mubr.bf16.gmra.mrb[8].mxu1 %v572_v27 }
  0x33   :  { %295 = vmatprep.mubr.bf16.mxu0 %v567_v28  ;;  %327 = vmatprep.mubr.bf16.mxu1 %v573_v29 }
  0x3a   :  { %296 = vmatmul.mubr.bf16.gmra.mrb[12].mxu0 %v569_v30  ;;  %328 = vmatmul.mubr.bf16.gmra.mrb[12].mxu1 %v575_v31 }
  0xf5   :  { %v472_v32 = vpop.f32.mrb[0].mxu0  ;;  %v496_v33 = vpop.f32.mrb[0].mxu1 }
  0xf6   :  { %v473_v34 = vpop.f32.mrb[1].mxu0  ;;  %v497_v35 = vpop.f32.mrb[1].mxu1 }
  0xf7   :  { %v474_v36 = vadd.f32 %v473_v34, %v472_v32  ;;  %v475_v37 = vpop.f32.mrb[2].mxu0  ;;  %v697_v38 = vadd.f32 %v497_v35, %v496_v33  ;;  %v499_v39 = vpop.f32.mrb[2].mxu1 }
  0xf8   :  { %v476_v40 = vpop.f32.mrb[3].mxu0  ;;  %v500_v41 = vpop.f32.mrb[3].mxu1 }
  0xf9   :  { %336 = vst [vmem:[%s771_s2] sm:$0xff] %v474_v36  ;;  %v477_v42 = vadd.f32 %v476_v40, %v475_v37  ;;  %344 = vst [vmem:[%s771_s2 + $0x40] sm:$0xff] %v697_v38  ;;  %v706_v43 = vadd.f32 %v500_v41, %v499_v39  ;;  %v352_v44 = vmul.f32 %v474_v36, %v474_v36 }
  0xfa   :  { %v360_v37 = vmul.f32 %v697_v38, %v697_v38 }
  0xfb   :  { %337 = vst [vmem:[%s771_s2 + $0x8] sm:$0xff] %v477_v42  ;;  %v353_v45 = vmul.f32 %v477_v42, %v477_v42  ;;  %v368_v46 = vadd.f32 %v477_v42, %v474_v36  ;;  %345 = vst [vmem:[%s771_s2 + $0x48] sm:$0xff] %v706_v43  ;;  %v361_v41 = vmul.f32 %v706_v43, %v706_v43 }
  0xfd   :  { %v390_v47 = vadd.f32 %v353_v45, %v352_v44  ;;  %v478_v48 = vpop.f32.mrb[4].mxu0  ;;  %v502_v49 = vpop.f32.mrb[4].mxu1 }
  0xfe   :  { %v479_v50 = vpop.f32.mrb[5].mxu0  ;;  %v503_v51 = vpop.f32.mrb[5].mxu1 }
  0xff   :  { %v480_v52 = vadd.f32 %v479_v50, %v478_v48  ;;  %v481_v53 = vpop.f32.mrb[6].mxu0  ;;  %v715_v54 = vadd.f32 %v503_v51, %v502_v49  ;;  %v505_v55 = vpop.f32.mrb[6].mxu1 }
 0x100   :  { %v482_v56 = vpop.f32.mrb[7].mxu0  ;;  %v506_v57 = vpop.f32.mrb[7].mxu1 }
 0x101   :  { %338 = vst [vmem:[%s771_s2 + $0x10] sm:$0xff] %v480_v52  ;;  %v354_v58 = vmul.f32 %v480_v52, %v480_v52  ;;  %v369_v59 = vadd.f32 %v480_v52, %v368_v46  ;;  %v483_v60 = vadd.f32 %v482_v56, %v481_v53  ;;  %346 = vst [vmem:[%s771_s2 + $0x50] sm:$0xff] %v715_v54 }
 0x102   :  { %v507_v61 = vadd.f32 %v506_v57, %v505_v55  ;;  %v362_v45 = vmul.f32 %v715_v54, %v715_v54 }
 0x103   :  { %v391_v62 = vadd.f32 %v390_v47, %v354_v58  ;;  %339 = vst [vmem:[%s771_s2 + $0x18] sm:$0xff] %v483_v60  ;;  %v355_v63 = vmul.f32 %v483_v60, %v483_v60  ;;  %v370_v0 = vadd.f32 %v483_v60, %v369_v59 }
 0x104   :  { %347 = vst [vmem:[%s771_s2 + $0x58] sm:$0xff] %v507_v61  ;;  %v363_v48 = vmul.f32 %v507_v61, %v507_v61 }
 0x105   :  { %v392_v1 = vadd.f32 %v391_v62, %v355_v63  ;;  %v484_v2 = vpop.f32.mrb[8].mxu0  ;;  %v508_v3 = vpop.f32.mrb[8].mxu1 }
 0x106   :  { %v485_v4 = vpop.f32.mrb[9].mxu0  ;;  %v509_v5 = vpop.f32.mrb[9].mxu1 }
 0x107   :  { %v486_v6 = vadd.f32 %v485_v4, %v484_v2  ;;  %v487_v7 = vpop.f32.mrb[10].mxu0  ;;  %v510_v8 = vadd.f32 %v509_v5, %v508_v3  ;;  %v511_v9 = vpop.f32.mrb[10].mxu1 }
 0x108   :  { %v488_v10 = vpop.f32.mrb[11].mxu0  ;;  %v512_v11 = vpop.f32.mrb[11].mxu1 }
 0x109   :  { %340 = vst [vmem:[%s771_s2 + $0x20] sm:$0xff] %v486_v6  ;;  %v356_v12 = vmul.f32 %v486_v6, %v486_v6  ;;  %v371_v13 = vadd.f32 %v486_v6, %v370_v0  ;;  %v489_v14 = vadd.f32 %v488_v10, %v487_v7  ;;  %348 = vst [vmem:[%s771_s2 + $0x60] sm:$0xff] %v510_v8 }
 0x10a   :  { %v513_v15 = vadd.f32 %v512_v11, %v511_v9  ;;  %v364_v51 = vmul.f32 %v510_v8, %v510_v8 }
 0x10b   :  { %v393_v16 = vadd.f32 %v392_v1, %v356_v12  ;;  %341 = vst [vmem:[%s771_s2 + $0x28] sm:$0xff] %v489_v14  ;;  %v357_v17 = vmul.f32 %v489_v14, %v489_v14  ;;  %v372_v18 = vadd.f32 %v489_v14, %v371_v13 }
 0x10c   :  { %349 = vst [vmem:[%s771_s2 + $0x68] sm:$0xff] %v513_v15  ;;  %v365_v55 = vmul.f32 %v513_v15, %v513_v15 }
 0x10d   :  { %v394_v19 = vadd.f32 %v393_v16, %v357_v17  ;;  %v490_v20 = vpop.f32.mrb[12].mxu0  ;;  %v514_v21 = vpop.f32.mrb[12].mxu1 }
 0x10e   :  { %v491_v22 = vpop.f32.mrb[13].mxu0  ;;  %v515_v23 = vpop.f32.mrb[13].mxu1 }
 0x10f   :  { %v492_v24 = vadd.f32 %v491_v22, %v490_v20  ;;  %v493_v25 = vpop.f32.mrb[14].mxu0  ;;  %v516_v26 = vadd.f32 %v515_v23, %v514_v21  ;;  %v517_v27 = vpop.f32.mrb[14].mxu1 }
 0x110   :  { %v494_v28 = vpop.f32.mrb[15].mxu0  ;;  %v518_v29 = vpop.f32.mrb[15].mxu1 }
 0x111   :  { %342 = vst [vmem:[%s771_s2 + $0x30] sm:$0xff] %v492_v24  ;;  %v358_v30 = vmul.f32 %v492_v24, %v492_v24  ;;  %v373_v31 = vadd.f32 %v492_v24, %v372_v18  ;;  %v495_v32 = vadd.f32 %v494_v28, %v493_v25  ;;  %350 = vst [vmem:[%s771_s2 + $0x70] sm:$0xff] %v516_v26 }
 0x112   :  { %v519_v33 = vadd.f32 %v518_v29, %v517_v27  ;;  %v366_v57 = vmul.f32 %v516_v26, %v516_v26 }
 0x113   :  { %v395_v34 = vadd.f32 %v394_v19, %v358_v30  ;;  %343 = vst [vmem:[%s771_s2 + $0x38] sm:$0xff] %v495_v32  ;;  %v359_v35 = vmul.f32 %v495_v32, %v495_v32  ;;  %v374_v36 = vadd.f32 %v495_v32, %v373_v31 }
 0x114   :  { %351 = vst [vmem:[%s771_s2 + $0x78] sm:$0xff] %v519_v33  ;;  %v367_v60 = vmul.f32 %v519_v33, %v519_v33 }
 0x115   :  { %v375_v39 = vadd.f32 %v697_v38, %v374_v36  ;;  %v396_v40 = vadd.f32 %v395_v34, %v359_v35 }
 0x117   :  { %v376_v42 = vadd.f32 %v706_v43, %v375_v39  ;;  %v397_v44 = vadd.f32 %v396_v40, %v360_v37 }
 0x119   :  { %v398_v46 = vadd.f32 %v397_v44, %v361_v41  ;;  %v377_v47 = vadd.f32 %v715_v54, %v376_v42 }
 0x11b   :  { %v378_v49 = vadd.f32 %v507_v61, %v377_v47  ;;  %v399_v50 = vadd.f32 %v398_v46, %v362_v45 }
 0x11d   :  { %v379_v52 = vadd.f32 %v510_v8, %v378_v49  ;;  %v400_v53 = vadd.f32 %v399_v50, %v363_v48 }
 0x11f   :  { %v401_v38 = vadd.f32 %v400_v53, %v364_v51  ;;  %v380_v56 = vadd.f32 %v513_v15, %v379_v52 }
 0x121   :  { %v402_v58 = vadd.f32 %v401_v38, %v365_v55  ;;  %v381_v59 = vadd.f32 %v516_v26, %v380_v56 }
 0x123   :  { %v403_v43 = vadd.f32 %v402_v58, %v366_v57  ;;  %v382_v62 = vadd.f32 %v519_v33, %v381_v59 }
 0x125   :  { %v383_v63 = vrot.slane %v382_v62, 4  ;;  %v404_v0 = vadd.f32 %v403_v43, %v367_v60 }
 0x127   :  { %v384_v1 = vadd.f32 %v383_v63, %v382_v62  ;;  %v405_v2 = vrot.slane %v404_v0, 4 }
 0x129   :  { %v385_v54 = vrot.slane %v384_v1, 2  ;;  %v406_v3 = vadd.f32 %v405_v2, %v404_v0 }
 0x12b   :  { %v386_v61 = vadd.f32 %v385_v54, %v384_v1  ;;  %v407_v4 = vrot.slane %v406_v3, 2 }
 0x12d   :  { %v387_v5 = vrot.slane %v386_v61, 1  ;;  %v408_v6 = vadd.f32 %v407_v4, %v406_v3 }
 0x12f   :  { %v388_v7 = vadd.f32 %v387_v5, %v386_v61  ;;  %v409_v8 = vrot.slane %v408_v6, 1 }
 0x131   :  { %389 = vst [vmem:[%s772_s3] sm:$0x1] %v388_v7  ;;  %v410_v9 = vadd.f32 %v409_v8, %v408_v6 }
 0x133   :  { %411 = vst [vmem:[%s773_s4] sm:$0x1] %v410_v9 }

// kernel: _lambda_.10
= control target key start
LH: loop header
LB: loop body
LE: loop exit
PB: predicated region body
PF: predicated region fallthrough
CT: control target
= control target key end

     0   :  { %s305_s0 = inlined_call_operand.vmem [shape: f32[128,128], index: 0, kind: input, shape index: {}]   ;;  %s306_s1 = inlined_call_operand.vmem [shape: f32[1,128], index: 1, kind: input, shape index: {}]   ;;  %s307_s2 = inlined_call_operand.vmem [shape: f32[1,128], index: 2, kind: input, shape index: {}]   ;;  %s308_s3 = inlined_call_operand.vmem [shape: f32[128,128], index: 3, kind: output, shape index: {}]  }
   0x1   :  { %v14_v0 = vld [vmem:[%s305_s0] sm:$0xff]  ;;  %v15_v4 = vld [vmem:[%s305_s0 + $0x8] sm:$0xff]  ;;  %v16_v5 = vld [vmem:[%s305_s0 + $0x10] sm:$0xff] }
   0x2   :  { %v172_v1 = vld [vmem:[%s306_s1] ss:$0 sm:$0xff]  ;;  %v17_v6 = vld [vmem:[%s305_s0 + $0x18] sm:$0xff]  ;;  %v19_v11 = vld [vmem:[%s305_s0 + $0x28] sm:$0xff] }
   0x3   :  { %v177_v2 = vld [vmem:[%s307_s2] ss:$0 sm:$0xff]  ;;  %v37_v3 = vmul.f32 %v172_v1, %v14_v0  ;;  %v38_v7 = vmul.f32 %v172_v1, %v15_v4  ;;  %v39_v8 = vmul.f32 %v172_v1, %v16_v5  ;;  %v40_v9 = vmul.f32 %v172_v1, %v17_v6  ;;  %v20_v12 = vld [vmem:[%s305_s0 + $0x30] sm:$0xff]  ;;  %v21_v17 = vld [vmem:[%s305_s0 + $0x38] sm:$0xff] }
   0x4   :  { %v18_v10 = vld [vmem:[%s305_s0 + $0x20] sm:$0xff]  ;;  %v42_v15 = vmul.f32 %v172_v1, %v19_v11  ;;  %v43_v16 = vmul.f32 %v172_v1, %v20_v12  ;;  %v44_v21 = vmul.f32 %v172_v1, %v21_v17  ;;  %v23_v30 = vld [vmem:[%s305_s0 + $0x48] sm:$0xff]  ;;  %v24_v31 = vld [vmem:[%s305_s0 + $0x50] sm:$0xff] }
   0x5   :  { %v60_v13 = vadd.f32 %v177_v2, %v37_v3  ;;  %v41_v14 = vmul.f32 %v172_v1, %v18_v10  ;;  %v61_v18 = vadd.f32 %v177_v2, %v38_v7  ;;  %v62_v19 = vadd.f32 %v177_v2, %v39_v8  ;;  %v22_v25 = vld [vmem:[%s305_s0 + $0x40] sm:$0xff]  ;;  %v25_v43 = vld [vmem:[%s305_s0 + $0x58] sm:$0xff]  ;;  %v27_v45 = vld [vmem:[%s305_s0 + $0x68] sm:$0xff] }
   0x6   :  { %v63_v20 = vadd.f32 %v177_v2, %v40_v9  ;;  %v65_v24 = vadd.f32 %v177_v2, %v42_v15  ;;  %v66_v37 = vadd.f32 %v177_v2, %v43_v16  ;;  %v67_v38 = vadd.f32 %v177_v2, %v44_v21  ;;  %v26_v44 = vld [vmem:[%s305_s0 + $0x60] sm:$0xff]  ;;  %v28_v56 = vld [vmem:[%s305_s0 + $0x70] sm:$0xff]  ;;  %v29_v4 = vld [vmem:[%s305_s0 + $0x78] sm:$0xff] }
   0x7   :  { %vm76_vm0 = vcmp.ge.f32.partialorder %v60_v13, 0.0  ;;  %v92_v22 = vmul.f32 0.2, %v60_v13  ;;  %v64_v23 = vadd.f32 %v177_v2, %v41_v14  ;;  %vm77_vm1 = vcmp.ge.f32.partialorder %v61_v18, 0.0 }
   0x8   :  { %v93_v26 = vmul.f32 0.2, %v61_v18  ;;  %vm78_vm2 = vcmp.ge.f32.partialorder %v62_v19, 0.0  ;;  %v94_v27 = vmul.f32 0.2, %v62_v19  ;;  %vm79_vm3 = vcmp.ge.f32.partialorder %v63_v20, 0.0 }
   0x9   :  { %v108_v28 = vsel %vm76_vm0, %v60_v13, %v92_v22  ;;  %v95_v29 = vmul.f32 0.2, %v63_v20  ;;  %vm80_vm4 = vcmp.ge.f32.partialorder %v64_v23, 0.0  ;;  %v96_v34 = vmul.f32 0.2, %v64_v23 }
   0xa   :  { %124 = vst [vmem:[%s308_s3] sm:$0xff] %v108_v28  ;;  %v109_v32 = vsel %vm77_vm1, %v61_v18, %v93_v26  ;;  %v110_v33 = vsel %vm78_vm2, %v62_v19, %v94_v27  ;;  %vm81_vm5 = vcmp.ge.f32.partialorder %v65_v24, 0.0  ;;  %v97_v36 = vmul.f32 0.2, %v65_v24 }
   0xb   :  { %125 = vst [vmem:[%s308_s3 + $0x8] sm:$0xff] %v109_v32  ;;  %126 = vst [vmem:[%s308_s3 + $0x10] sm:$0xff] %v110_v33  ;;  %v111_v35 = vsel %vm79_vm3, %v63_v20, %v95_v29  ;;  %v112_v39 = vsel %vm80_vm4, %v64_v23, %v96_v34  ;;  %v45_v40 = vmul.f32 %v172_v1, %v22_v25  ;;  %vm82_vm6 = vcmp.ge.f32.partialorder %v66_v37, 0.0 }
   0xc   :  { %127 = vst [vmem:[%s308_s3 + $0x18] sm:$0xff] %v111_v35  ;;  %v46_v41 = vmul.f32 %v172_v1, %v23_v30  ;;  %v47_v42 = vmul.f32 %v172_v1, %v24_v31  ;;  %128 = vst [vmem:[%s308_s3 + $0x20] sm:$0xff] %v112_v39  ;;  %v113_v46 = vsel %vm81_vm5, %v65_v24, %v97_v36  ;;  %v98_v47 = vmul.f32 0.2, %v66_v37 }
   0xd   :  { %vm83_vm7 = vcmp.ge.f32.partialorder %v67_v38, 0.0  ;;  %129 = vst [vmem:[%s308_s3 + $0x28] sm:$0xff] %v113_v46  ;;  %v99_v48 = vmul.f32 0.2, %v67_v38  ;;  %v68_v49 = vadd.f32 %v177_v2, %v45_v40  ;;  %v48_v53 = vmul.f32 %v172_v1, %v25_v43 }
   0xe   :  { %v69_v50 = vadd.f32 %v177_v2, %v46_v41  ;;  %v70_v51 = vadd.f32 %v177_v2, %v47_v42  ;;  %v114_v52 = vsel %vm82_vm6, %v66_v37, %v98_v47  ;;  %v49_v54 = vmul.f32 %v172_v1, %v26_v44 }
   0xf   :  { %v50_v55 = vmul.f32 %v172_v1, %v27_v45  ;;  %130 = vst [vmem:[%s308_s3 + $0x30] sm:$0xff] %v114_v52  ;;  %v115_v57 = vsel %vm83_vm7, %v67_v38, %v99_v48  ;;  %vm84_vm8 = vcmp.ge.f32.partialorder %v68_v49, 0.0  ;;  %v100_v58 = vmul.f32 0.2, %v68_v49 }
  0x10   :  { %vm85_vm9 = vcmp.ge.f32.partialorder %v69_v50, 0.0  ;;  %131 = vst [vmem:[%s308_s3 + $0x38] sm:$0xff] %v115_v57  ;;  %v101_v59 = vmul.f32 0.2, %v69_v50  ;;  %vm86_vm10 = vcmp.ge.f32.partialorder %v70_v51, 0.0  ;;  %v71_v61 = vadd.f32 %v177_v2, %v48_v53 }
  0x11   :  { %v102_v60 = vmul.f32 0.2, %v70_v51  ;;  %v116_v62 = vsel %vm84_vm8, %v68_v49, %v100_v58  ;;  %v72_v63 = vadd.f32 %v177_v2, %v49_v54  ;;  %v73_v0 = vadd.f32 %v177_v2, %v50_v55 }
  0x12   :  { %v51_v3 = vmul.f32 %v172_v1, %v28_v56  ;;  %132 = vst [vmem:[%s308_s3 + $0x40] sm:$0xff] %v116_v62  ;;  %v117_v5 = vsel %vm85_vm9, %v69_v50, %v101_v59  ;;  %vm87_vm11 = vcmp.ge.f32.partialorder %v71_v61, 0.0  ;;  %v103_v7 = vmul.f32 0.2, %v71_v61 }
  0x13   :  { %v118_v6 = vsel %vm86_vm10, %v70_v51, %v102_v60  ;;  %133 = vst [vmem:[%s308_s3 + $0x48] sm:$0xff] %v117_v5  ;;  %vm88_vm12 = vcmp.ge.f32.partialorder %v72_v63, 0.0  ;;  %v104_v8 = vmul.f32 0.2, %v72_v63  ;;  %vm89_vm13 = vcmp.ge.f32.partialorder %v73_v0, 0.0 }
  0x14   :  { %134 = vst [vmem:[%s308_s3 + $0x50] sm:$0xff] %v118_v6  ;;  %v105_v9 = vmul.f32 0.2, %v73_v0  ;;  %v119_v10 = vsel %vm87_vm11, %v71_v61, %v103_v7  ;;  %v74_v11 = vadd.f32 %v177_v2, %v51_v3  ;;  %v52_v12 = vmul.f32 %v172_v1, %v29_v4 }
  0x15   :  { %135 = vst [vmem:[%s308_s3 + $0x58] sm:$0xff] %v119_v10  ;;  %v120_v13 = vsel %vm88_vm12, %v72_v63, %v104_v8 }
  0x16   :  { %v121_v14 = vsel %vm89_vm13, %v73_v0, %v105_v9  ;;  %136 = vst [vmem:[%s308_s3 + $0x60] sm:$0xff] %v120_v13  ;;  %vm90_vm14 = vcmp.ge.f32.partialorder %v74_v11, 0.0  ;;  %v106_v15 = vmul.f32 0.2, %v74_v11  ;;  %v75_v16 = vadd.f32 %v177_v2, %v52_v12 }
  0x17   :  { %137 = vst [vmem:[%s308_s3 + $0x68] sm:$0xff] %v121_v14 }
  0x18   :  { %v122_v17 = vsel %vm90_vm14, %v74_v11, %v106_v15  ;;  %vm91_vm15 = vcmp.ge.f32.partialorder %v75_v16, 0.0  ;;  %v107_v1 = vmul.f32 0.2, %v75_v16 }
  0x19   :  { %138 = vst [vmem:[%s308_s3 + $0x70] sm:$0xff] %v122_v17 }
  0x1a   :  { %v123_v18 = vsel %vm91_vm15, %v75_v16, %v107_v1 }
  0x1b   :  { %139 = vst [vmem:[%s308_s3 + $0x78] sm:$0xff] %v123_v18 }

// kernel: _lambda_.11
= control target key start
LH: loop header
LB: loop body
LE: loop exit
PB: predicated region body
PF: predicated region fallthrough
CT: control target
= control target key end

     0   :  { %s1415_s0 = inlined_call_operand.vmem [shape: bf16[32,512], index: 0, kind: input, shape index: {}]   ;;  %s1416_s1 = inlined_call_operand.vmem [shape: bf16[512,128], index: 1, kind: input, shape index: {}]   ;;  %s1417_s2 = inlined_call_operand.vmem [shape: f32[32,128], index: 2, kind: output, shape index: {0}]   ;;  %s1418_s3 = inlined_call_operand.vmem [shape: f32[1,1,128], index: 3, kind: output, shape index: {1}]   ;;  %s1419_s4 = inlined_call_operand.vmem [shape: f32[1,1,128], index: 4, kind: output, shape index: {2}]  }
   0x1   :  { %v1100_v0 = vld [vmem:[%s1416_s1 + $0x40] sm:$0xff]   ;;  %v1104_v4 = vld [vmem:[%s1416_s1 + $0x48] sm:$0xff]   ;;  %v1108_v8 = vld [vmem:[%s1416_s1 + $0x50] sm:$0xff]  }
   0x2   :  { %v1101_v1 = vld [vmem:[%s1416_s1 + $0xc0] sm:$0xff]   ;;  %972 = vmatprep.subr.bf16.mxu0 %v1100_v0  ;;  %v1105_v5 = vld [vmem:[%s1416_s1 + $0xc8] sm:$0xff]   ;;  %v1109_v9 = vld [vmem:[%s1416_s1 + $0xd0] sm:$0xff]  }
   0x3   :  { %v1102_v2 = vld [vmem:[%s1416_s1] sm:$0xff]   ;;  %1036 = vmatprep.subr.bf16.mxu1 %v1101_v1  ;;  %v1106_v6 = vld [vmem:[%s1416_s1 + $0x8] sm:$0xff]   ;;  %v1110_v10 = vld [vmem:[%s1416_s1 + $0x10] sm:$0xff]  }
   0x4   :  { %v1103_v3 = vld [vmem:[%s1416_s1 + $0x80] sm:$0xff]   ;;  %973 = vmatpush3.bf16.msra.mxu0 %v1102_v2  ;;  %v1107_v7 = vld [vmem:[%s1416_s1 + $0x88] sm:$0xff]   ;;  %v1111_v11 = vld [vmem:[%s1416_s1 + $0x90] sm:$0xff]  }
   0x5   :  { %1037 = vmatpush3.bf16.msra.mxu1 %v1103_v3  ;;  %974 = vmatprep.subr.bf16.mxu0 %v1104_v4  ;;  %v1112_v12 = vld [vmem:[%s1416_s1 + $0x58] sm:$0xff]   ;;  %v1116_v16 = vld [vmem:[%s1416_s1 + $0x60] sm:$0xff]   ;;  %v1120_v20 = vld [vmem:[%s1416_s1 + $0x68] sm:$0xff]  }
   0x6   :  { %1038 = vmatprep.subr.bf16.mxu1 %v1105_v5  ;;  %v1113_v13 = vld [vmem:[%s1416_s1 + $0xd8] sm:$0xff]   ;;  %v1117_v17 = vld [vmem:[%s1416_s1 + $0xe0] sm:$0xff]   ;;  %v1121_v21 = vld [vmem:[%s1416_s1 + $0xe8] sm:$0xff]  }
   0x7   :  { %v1114_v14 = vld [vmem:[%s1416_s1 + $0x18] sm:$0xff]   ;;  %v1118_v18 = vld [vmem:[%s1416_s1 + $0x20] sm:$0xff]   ;;  %v1122_v22 = vld [vmem:[%s1416_s1 + $0x28] sm:$0xff]  }
   0x8   :  { %975 = vmatpush3.bf16.msra.mxu0 %v1106_v6  ;;  %v1115_v15 = vld [vmem:[%s1416_s1 + $0x98] sm:$0xff]   ;;  %v1119_v19 = vld [vmem:[%s1416_s1 + $0xa0] sm:$0xff]   ;;  %v1123_v23 = vld [vmem:[%s1416_s1 + $0xa8] sm:$0xff]  }
   0x9   :  { %1039 = vmatpush3.bf16.msra.mxu1 %v1107_v7  ;;  %976 = vmatprep.subr.bf16.mxu0 %v1108_v8  ;;  %v1124_v24 = vld [vmem:[%s1416_s1 + $0x70] sm:$0xff]   ;;  %v1128_v28 = vld [vmem:[%s1416_s1 + $0x78] sm:$0xff]  }
   0xa   :  { %1040 = vmatprep.subr.bf16.mxu1 %v1109_v9  ;;  %v1125_v25 = vld [vmem:[%s1416_s1 + $0xf0] sm:$0xff]   ;;  %v1129_v29 = vld [vmem:[%s1416_s1 + $0xf8] sm:$0xff]  }
   0xb   :  { %v1126_v26 = vld [vmem:[%s1416_s1 + $0x30] sm:$0xff]   ;;  %v1130_v30 = vld [vmem:[%s1416_s1 + $0x38] sm:$0xff]  }
   0xc   :  { %977 = vmatpush3.bf16.msra.mxu0 %v1110_v10  ;;  %v1127_v27 = vld [vmem:[%s1416_s1 + $0xb0] sm:$0xff]   ;;  %v1131_v31 = vld [vmem:[%s1416_s1 + $0xb8] sm:$0xff]  }
   0xd   :  { %1041 = vmatpush3.bf16.msra.mxu1 %v1111_v11  ;;  %978 = vmatprep.subr.bf16.mxu0 %v1112_v12  ;;  %v1132_v32 = vld [vmem:[%s1415_s0] ss:$16 sps:$4 sm:$0xff]   ;;  %v1134_v33 = vld [vmem:[%s1415_s0 + $0x4] ss:$16 sps:$4 sm:$0xff]   ;;  %v1135_v34 = vld [vmem:[%s1415_s0 + $0x8] ss:$16 sps:$4 sm:$0xff]  }
   0xe   :  { %1042 = vmatprep.subr.bf16.mxu1 %v1113_v13  ;;  %v1137_v35 = vld [vmem:[%s1415_s0 + $0xc] ss:$16 sps:$4 sm:$0xff]   ;;  %495 = vmatprep.mubr.bf16.mxu0 %v1134_v33  ;;  %v1138_v36 = vld [vmem:[%s1415_s0 + $0x24] ss:$16 sps:$4 sm:$0xff]   ;;  %v1142_v38 = vld [vmem:[%s1415_s0 + $0x20] ss:$16 sps:$4 sm:$0xff]  }
   0xf   :  { %592 = vmatprep.mubr.bf16.mxu1 %v1137_v35  ;;  %v1140_v37 = vld [vmem:[%s1415_s0 + $0x2c] ss:$16 sps:$4 sm:$0xff]   ;;  %v1143_v39 = vld [vmem:[%s1415_s0 + $0x28] ss:$16 sps:$4 sm:$0xff]   ;;  %v1144_v40 = vld [vmem:[%s1415_s0 + $0x44] ss:$16 sps:$4 sm:$0xff]  }
  0x10   :  { %979 = vmatpush3.bf16.msra.mxu0 %v1114_v14  ;;  %v1146_v41 = vld [vmem:[%s1415_s0 + $0x4c] ss:$16 sps:$4 sm:$0xff]   ;;  %v1148_v42 = vld [vmem:[%s1415_s0 + $0x40] ss:$16 sps:$4 sm:$0xff]   ;;  %v1149_v43 = vld [vmem:[%s1415_s0 + $0x48] ss:$16 sps:$4 sm:$0xff]  }
  0x11   :  { %1043 = vmatpush3.bf16.msra.mxu1 %v1115_v15  ;;  %980 = vmatprep.subr.bf16.mxu0 %v1116_v16  ;;  %v1150_v44 = vld [vmem:[%s1415_s0 + $0x64] ss:$16 sps:$4 sm:$0xff]   ;;  %v1152_v45 = vld [vmem:[%s1415_s0 + $0x6c] ss:$16 sps:$4 sm:$0xff]   ;;  %v1154_v46 = vld [vmem:[%s1415_s0 + $0x60] ss:$16 sps:$4 sm:$0xff]  }
  0x12   :  { %1044 = vmatprep.subr.bf16.mxu1 %v1117_v17  ;;  %v1155_v47 = vld [vmem:[%s1415_s0 + $0x68] ss:$16 sps:$4 sm:$0xff]   ;;  %v1156_v48 = vld [vmem:[%s1415_s0 + $0x84] ss:$16 sps:$4 sm:$0xff]   ;;  %v1158_v49 = vld [vmem:[%s1415_s0 + $0x8c] ss:$16 sps:$4 sm:$0xff]  }
  0x13   :  { %v1160_v50 = vld [vmem:[%s1415_s0 + $0x80] ss:$16 sps:$4 sm:$0xff]   ;;  %v1161_v51 = vld [vmem:[%s1415_s0 + $0x88] ss:$16 sps:$4 sm:$0xff]   ;;  %v1162_v52 = vld [vmem:[%s1415_s0 + $0xa4] ss:$16 sps:$4 sm:$0xff]  }
  0x14   :  { %981 = vmatpush3.bf16.msra.mxu0 %v1118_v18  ;;  %v1164_v53 = vld [vmem:[%s1415_s0 + $0xac] ss:$16 sps:$4 sm:$0xff]   ;;  %v1166_v54 = vld [vmem:[%s1415_s0 + $0xa0] ss:$16 sps:$4 sm:$0xff]   ;;  %v1167_v55 = vld [vmem:[%s1415_s0 + $0xa8] ss:$16 sps:$4 sm:$0xff]  }
  0x15   :  { %1045 = vmatpush3.bf16.msra.mxu1 %v1119_v19  ;;  %982 = vmatprep.subr.bf16.mxu0 %v1120_v20  ;;  %v1168_v56 = vld [vmem:[%s1415_s0 + $0xc4] ss:$16 sps:$4 sm:$0xff]   ;;  %v1170_v57 = vld [vmem:[%s1415_s0 + $0xcc] ss:$16 sps:$4 sm:$0xff]   ;;  %v1172_v58 = vld [vmem:[%s1415_s0 + $0xc0] ss:$16 sps:$4 sm:$0xff]  }
  0x16   :  { %1046 = vmatprep.subr.bf16.mxu1 %v1121_v21  ;;  %v1173_v59 = vld [vmem:[%s1415_s0 + $0xc8] ss:$16 sps:$4 sm:$0xff]   ;;  %v1174_v60 = vld [vmem:[%s1415_s0 + $0xe4] ss:$16 sps:$4 sm:$0xff]   ;;  %v1176_v61 = vld [vmem:[%s1415_s0 + $0xec] ss:$16 sps:$4 sm:$0xff]  }
  0x17   :  { %v1178_v62 = vld [vmem:[%s1415_s0 + $0xe0] ss:$16 sps:$4 sm:$0xff]   ;;  %v1179_v63 = vld [vmem:[%s1415_s0 + $0xe8] ss:$16 sps:$4 sm:$0xff]  }
  0x18   :  { %983 = vmatpush3.bf16.msra.mxu0 %v1122_v22 }
  0x19   :  { %1047 = vmatpush3.bf16.msra.mxu1 %v1123_v23  ;;  %984 = vmatprep.subr.bf16.mxu0 %v1124_v24 }
  0x1a   :  { %1048 = vmatprep.subr.bf16.mxu1 %v1125_v25 }
  0x1c   :  { %985 = vmatpush3.bf16.msra.mxu0 %v1126_v26 }
  0x1d   :  { %1049 = vmatpush3.bf16.msra.mxu1 %v1127_v27  ;;  %986 = vmatprep.subr.bf16.mxu0 %v1128_v28 }
  0x1e   :  { %1050 = vmatprep.subr.bf16.mxu1 %v1129_v29 }
  0x20   :  { %987 = vmatpush3.bf16.msra.mxu0 %v1130_v30 }
  0x21   :  { %1051 = vmatpush3.bf16.msra.mxu1 %v1131_v31 }
  0x23   :  { %496 = vmatmul.mubr.bf16.vlgmr.msra.gmra.mrb[0].mxu0 %v1132_v32 }
  0x24   :  { %593 = vmatmul.mubr.bf16.vlgmr.msra.gmra.mrb[0].mxu1 %v1135_v34  ;;  %503 = vmatprep.mubr.bf16.mxu0 %v1138_v36 }
  0x25   :  { %600 = vmatprep.mubr.bf16.mxu1 %v1140_v37 }
  0x2b   :  { %504 = vmatmul.mubr.bf16.gmra.mrb[4].mxu0 %v1142_v38 }
  0x2c   :  { %601 = vmatmul.mubr.bf16.gmra.mrb[4].mxu1 %v1143_v39  ;;  %511 = vmatprep.mubr.bf16.mxu0 %v1144_v40 }
  0x2d   :  { %608 = vmatprep.mubr.bf16.mxu1 %v1146_v41 }
  0x33   :  { %512 = vmatmul.mubr.bf16.gmra.mrb[8].mxu0 %v1148_v42 }
  0x34   :  { %609 = vmatmul.mubr.bf16.gmra.mrb[8].mxu1 %v1149_v43  ;;  %519 = vmatprep.mubr.bf16.mxu0 %v1150_v44 }
  0x35   :  { %616 = vmatprep.mubr.bf16.mxu1 %v1152_v45 }
  0x3b   :  { %520 = vmatmul.mubr.bf16.gmra.mrb[12].mxu0 %v1154_v46 }
  0x3c   :  { %617 = vmatmul.mubr.bf16.gmra.mrb[12].mxu1 %v1155_v47  ;;  %527 = vmatprep.mubr.bf16.mxu0 %v1156_v48 }
  0x3d   :  { %624 = vmatprep.mubr.bf16.mxu1 %v1158_v49 }
  0x43   :  { %528 = vmatmul.mubr.bf16.gmra.mrb[16].mxu0 %v1160_v50 }
  0x44   :  { %625 = vmatmul.mubr.bf16.gmra.mrb[16].mxu1 %v1161_v51  ;;  %535 = vmatprep.mubr.bf16.mxu0 %v1162_v52 }
  0x45   :  { %632 = vmatprep.mubr.bf16.mxu1 %v1164_v53 }
  0x4b   :  { %536 = vmatmul.mubr.bf16.gmra.mrb[20].mxu0 %v1166_v54 }
  0x4c   :  { %633 = vmatmul.mubr.bf16.gmra.mrb[20].mxu1 %v1167_v55  ;;  %543 = vmatprep.mubr.bf16.mxu0 %v1168_v56 }
  0x4d   :  { %640 = vmatprep.mubr.bf16.mxu1 %v1170_v57 }
  0x53   :  { %544 = vmatmul.mubr.bf16.gmra.mrb[24].mxu0 %v1172_v58 }
  0x54   :  { %641 = vmatmul.mubr.bf16.gmra.mrb[24].mxu1 %v1173_v59  ;;  %551 = vmatprep.mubr.bf16.mxu0 %v1174_v60 }
  0x55   :  { %648 = vmatprep.mubr.bf16.mxu1 %v1176_v61 }
  0x5b   :  { %552 = vmatmul.mubr.bf16.gmra.mrb[28].mxu0 %v1178_v62 }
  0x5c   :  { %649 = vmatmul.mubr.bf16.gmra.mrb[28].mxu1 %v1179_v63 }
  0xf6   :  { %v988_v0 = vpop.f32.mrb[0].mxu0 }
  0xf7   :  { %v1052_v1 = vpop.f32.mrb[0].mxu1  ;;  %v989_v2 = vpop.f32.mrb[1].mxu0 }
  0xf8   :  { %v990_v3 = vadd.f32 %v989_v2, %v988_v0  ;;  %v1053_v4 = vpop.f32.mrb[1].mxu1  ;;  %v991_v5 = vpop.f32.mrb[2].mxu0 }
  0xf9   :  { %v1054_v6 = vadd.f32 %v1053_v4, %v1052_v1  ;;  %v1055_v7 = vpop.f32.mrb[2].mxu1  ;;  %v992_v8 = vpop.f32.mrb[3].mxu0 }
  0xfa   :  { %v993_v9 = vadd.f32 %v992_v8, %v991_v5  ;;  %v1056_v10 = vpop.f32.mrb[3].mxu1 }
  0xfb   :  { %v595_v11 = vadd.f32 %v1054_v6, %v990_v3  ;;  %v1057_v12 = vadd.f32 %v1056_v10, %v1055_v7 }
  0xfd   :  { %884 = vst [vmem:[%s1417_s2] sm:$0xff] %v595_v11  ;;  %v598_v13 = vadd.f32 %v1057_v12, %v993_v9  ;;  %v772_v15 = vmul.f32 %v595_v11, %v595_v11 }
  0xfe   :  { %v994_v14 = vpop.f32.mrb[4].mxu0 }
  0xff   :  { %v773_v16 = vmul.f32 %v598_v13, %v598_v13  ;;  %v804_v17 = vadd.f32 %v598_v13, %v595_v11  ;;  %886 = vst [vmem:[%s1417_s2 + $0x8] sm:$0xff] %v598_v13  ;;  %v1058_v18 = vpop.f32.mrb[4].mxu1  ;;  %v995_v19 = vpop.f32.mrb[5].mxu0 }
 0x100   :  { %v996_v20 = vadd.f32 %v995_v19, %v994_v14  ;;  %v1059_v21 = vpop.f32.mrb[5].mxu1  ;;  %v997_v22 = vpop.f32.mrb[6].mxu0 }
 0x101   :  { %v826_v23 = vadd.f32 %v773_v16, %v772_v15  ;;  %v1060_v24 = vadd.f32 %v1059_v21, %v1058_v18  ;;  %v1061_v25 = vpop.f32.mrb[6].mxu1  ;;  %v998_v26 = vpop.f32.mrb[7].mxu0 }
 0x102   :  { %v999_v27 = vadd.f32 %v998_v26, %v997_v22  ;;  %v1062_v28 = vpop.f32.mrb[7].mxu1 }
 0x103   :  { %v603_v29 = vadd.f32 %v1060_v24, %v996_v20  ;;  %v1063_v30 = vadd.f32 %v1062_v28, %v1061_v25 }
 0x105   :  { %v774_v31 = vmul.f32 %v603_v29, %v603_v29  ;;  %v805_v32 = vadd.f32 %v804_v17, %v603_v29  ;;  %888 = vst [vmem:[%s1417_s2 + $0x10] sm:$0xff] %v603_v29  ;;  %v606_v33 = vadd.f32 %v1063_v30, %v999_v27 }
 0x106   :  { %v1000_v34 = vpop.f32.mrb[8].mxu0 }
 0x107   :  { %v827_v35 = vadd.f32 %v826_v23, %v774_v31  ;;  %v775_v36 = vmul.f32 %v606_v33, %v606_v33  ;;  %v806_v37 = vadd.f32 %v805_v32, %v606_v33  ;;  %890 = vst [vmem:[%s1417_s2 + $0x18] sm:$0xff] %v606_v33  ;;  %v1064_v38 = vpop.f32.mrb[8].mxu1  ;;  %v1001_v39 = vpop.f32.mrb[9].mxu0 }
 0x108   :  { %v1065_v40 = vpop.f32.mrb[9].mxu1  ;;  %v1003_v41 = vpop.f32.mrb[10].mxu0 }
 0x109   :  { %v819_v42 = vrot.slane %v806_v37, 4  ;;  %v828_v43 = vadd.f32 %v827_v35, %v775_v36  ;;  %v1067_v44 = vpop.f32.mrb[10].mxu1  ;;  %v1004_v45 = vpop.f32.mrb[11].mxu0 }
 0x10a   :  { %v1068_v46 = vpop.f32.mrb[11].mxu1 }
 0x10b   :  { %v820_v47 = vadd.f32 %v819_v42, %v806_v37  ;;  %v841_v48 = vrot.slane %v828_v43, 4 }
 0x10d   :  { %v821_v49 = vrot.slane %v820_v47, 2  ;;  %v842_v50 = vadd.f32 %v841_v48, %v828_v43 }
 0x10e   :  { %v1006_v51 = vpop.f32.mrb[12].mxu0 }
 0x10f   :  { %v822_v52 = vadd.f32 %v821_v49, %v820_v47  ;;  %v843_v53 = vrot.slane %v842_v50, 2  ;;  %v1070_v54 = vpop.f32.mrb[12].mxu1  ;;  %v1007_v55 = vpop.f32.mrb[13].mxu0 }
 0x110   :  { %v1071_v56 = vpop.f32.mrb[13].mxu1  ;;  %v1009_v57 = vpop.f32.mrb[14].mxu0 }
 0x111   :  { %v823_v58 = vrot.slane %v822_v52, 1  ;;  %v844_v59 = vadd.f32 %v843_v53, %v842_v50  ;;  %v1073_v60 = vpop.f32.mrb[14].mxu1  ;;  %v1010_v61 = vpop.f32.mrb[15].mxu0 }
 0x112   :  { %v1074_v62 = vpop.f32.mrb[15].mxu1 }
 0x113   :  { %v824_v63 = vadd.f32 %v823_v58, %v822_v52  ;;  %v845_v0 = vrot.slane %v844_v59, 1 }
 0x115   :  { %825 = vst [vmem:[%s1418_s3] sm:$0x1] %v824_v63  ;;  %v846_v1 = vadd.f32 %v845_v0, %v844_v59 }
 0x116   :  { %v1012_v2 = vpop.f32.mrb[16].mxu0 }
 0x117   :  { %847 = vst [vmem:[%s1419_s4] sm:$0x1] %v846_v1  ;;  %v1076_v3 = vpop.f32.mrb[16].mxu1  ;;  %v1013_v4 = vpop.f32.mrb[17].mxu0 }
 0x118   :  { %v1077_v5 = vpop.f32.mrb[17].mxu1  ;;  %v1015_v6 = vpop.f32.mrb[18].mxu0 }
 0x119   :  { %v1079_v7 = vpop.f32.mrb[18].mxu1  ;;  %v1016_v8 = vpop.f32.mrb[19].mxu0 }
 0x11a   :  { %v1080_v9 = vpop.f32.mrb[19].mxu1 }
 0x11e   :  { %v1018_v10 = vpop.f32.mrb[20].mxu0 }
 0x11f   :  { %v1082_v11 = vpop.f32.mrb[20].mxu1  ;;  %v1019_v12 = vpop.f32.mrb[21].mxu0 }
 0x120   :  { %v1083_v13 = vpop.f32.mrb[21].mxu1  ;;  %v1021_v14 = vpop.f32.mrb[22].mxu0 }
 0x121   :  { %v1085_v15 = vpop.f32.mrb[22].mxu1  ;;  %v1022_v16 = vpop.f32.mrb[23].mxu0 }
 0x122   :  { %v1086_v17 = vpop.f32.mrb[23].mxu1 }
 0x126   :  { %v1024_v18 = vpop.f32.mrb[24].mxu0 }
 0x127   :  { %v1088_v19 = vpop.f32.mrb[24].mxu1  ;;  %v1025_v20 = vpop.f32.mrb[25].mxu0 }
 0x128   :  { %v1089_v21 = vpop.f32.mrb[25].mxu1  ;;  %v1027_v22 = vpop.f32.mrb[26].mxu0 }
 0x129   :  { %v1091_v23 = vpop.f32.mrb[26].mxu1  ;;  %v1028_v24 = vpop.f32.mrb[27].mxu0 }
 0x12a   :  { %v1092_v25 = vpop.f32.mrb[27].mxu1 }
 0x12e   :  { %v1030_v26 = vpop.f32.mrb[28].mxu0 }
 0x12f   :  { %v1094_v27 = vpop.f32.mrb[28].mxu1  ;;  %v1031_v28 = vpop.f32.mrb[29].mxu0 }
 0x130   :  { %v1095_v29 = vpop.f32.mrb[29].mxu1  ;;  %v1033_v30 = vpop.f32.mrb[30].mxu0 }
 0x131   :  { %v1097_v31 = vpop.f32.mrb[30].mxu1  ;;  %v1034_v32 = vpop.f32.mrb[31].mxu0 }
 0x132   :  { %v1098_v33 = vpop.f32.mrb[31].mxu1 }

// kernel: _lambda_.12
= control target key start
LH: loop header
LB: loop body
LE: loop exit
PB: predicated region body
PF: predicated region fallthrough
CT: control target
= control target key end

     0   :  { %s244_s0 = inlined_call_operand.vmem [shape: f32[32,128], index: 0, kind: input, shape index: {}]   ;;  %s245_s1 = inlined_call_operand.vmem [shape: f32[1,128], index: 1, kind: input, shape index: {}]   ;;  %s246_s2 = inlined_call_operand.vmem [shape: f32[1,128], index: 2, kind: input, shape index: {}]   ;;  %s247_s3 = inlined_call_operand.vmem [shape: f32[32,128], index: 3, kind: output, shape index: {}]  }
   0x1   :  { %v14_v0 = vld [vmem:[%s244_s0] sm:$0xff]  ;;  %v15_v4 = vld [vmem:[%s244_s0 + $0x8] sm:$0xff]  ;;  %v16_v5 = vld [vmem:[%s244_s0 + $0x10] sm:$0xff] }
   0x2   :  { %v192_v1 = vld [vmem:[%s245_s1] ss:$0 sm:$0xff]  ;;  %v17_v6 = vld [vmem:[%s244_s0 + $0x18] sm:$0xff] }
   0x3   :  { %v193_v2 = vld [vmem:[%s246_s2] ss:$0 sm:$0xff]  ;;  %v37_v3 = vmul.f32 %v192_v1, %v14_v0  ;;  %v38_v7 = vmul.f32 %v192_v1, %v15_v4  ;;  %v39_v8 = vmul.f32 %v192_v1, %v16_v5  ;;  %v40_v9 = vmul.f32 %v192_v1, %v17_v6 }
   0x5   :  { %v60_v10 = vadd.f32 %v193_v2, %v37_v3  ;;  %v61_v11 = vadd.f32 %v193_v2, %v38_v7  ;;  %v62_v12 = vadd.f32 %v193_v2, %v39_v8  ;;  %v63_v13 = vadd.f32 %v193_v2, %v40_v9 }
   0x7   :  { %vm76_vm0 = vcmp.ge.f32.partialorder %v60_v10, 0.0  ;;  %v92_v14 = vmul.f32 0.2, %v60_v10  ;;  %vm77_vm1 = vcmp.ge.f32.partialorder %v61_v11, 0.0  ;;  %v93_v15 = vmul.f32 0.2, %v61_v11 }
   0x8   :  { %vm78_vm2 = vcmp.ge.f32.partialorder %v62_v12, 0.0  ;;  %v94_v16 = vmul.f32 0.2, %v62_v12  ;;  %vm79_vm3 = vcmp.ge.f32.partialorder %v63_v13, 0.0  ;;  %v95_v18 = vmul.f32 0.2, %v63_v13 }
   0x9   :  { %v108_v17 = vsel %vm76_vm0, %v60_v10, %v92_v14  ;;  %v109_v19 = vsel %vm77_vm1, %v61_v11, %v93_v15 }
   0xa   :  { %176 = vst [vmem:[%s247_s3] sm:$0xff] %v108_v17  ;;  %v110_v20 = vsel %vm78_vm2, %v62_v12, %v94_v16  ;;  %178 = vst [vmem:[%s247_s3 + $0x8] sm:$0xff] %v109_v19  ;;  %v111_v21 = vsel %vm79_vm3, %v63_v13, %v95_v18 }
   0xb   :  { %180 = vst [vmem:[%s247_s3 + $0x10] sm:$0xff] %v110_v20  ;;  %182 = vst [vmem:[%s247_s3 + $0x18] sm:$0xff] %v111_v21 }

// kernel: _lambda_.14
= control target key start
LH: loop header
LB: loop body
LE: loop exit
PB: predicated region body
PF: predicated region fallthrough
CT: control target
= control target key end

     0   :  { %s234_s0 = inlined_call_operand.vmem [shape: f32[18,128], index: 0, kind: input, shape index: {}]   ;;  %s235_s1 = inlined_call_operand.vmem [shape: f32[1,128], index: 1, kind: input, shape index: {}]   ;;  %s236_s2 = inlined_call_operand.vmem [shape: f32[1,128], index: 2, kind: input, shape index: {}]   ;;  %s237_s3 = inlined_call_operand.vmem [shape: f32[18,128], index: 3, kind: output, shape index: {}]  }
   0x1   :  { %v14_v0 = vld [vmem:[%s234_s0] sm:$0xff]  ;;  %v15_v4 = vld [vmem:[%s234_s0 + $0x8] sm:$0xff]  ;;  %v16_v5 = vld [vmem:[%s234_s0 + $0x10] sm:$0xff] }
   0x2   :  { %v188_v1 = vld [vmem:[%s235_s1] ss:$0 sm:$0xff] }
   0x3   :  { %v189_v2 = vld [vmem:[%s236_s2] ss:$0 sm:$0xff]  ;;  %v37_v3 = vmul.f32 %v188_v1, %v14_v0  ;;  %v38_v6 = vmul.f32 %v188_v1, %v15_v4  ;;  %v39_v7 = vmul.f32 %v188_v1, %v16_v5 }
   0x5   :  { %v60_v8 = vadd.f32 %v189_v2, %v37_v3  ;;  %v61_v9 = vadd.f32 %v189_v2, %v38_v6  ;;  %v62_v10 = vadd.f32 %v189_v2, %v39_v7 }
   0x7   :  { %vm76_vm0 = vcmp.ge.f32.partialorder %v60_v8, 0.0  ;;  %v92_v11 = vmul.f32 0.2, %v60_v8  ;;  %vm77_vm1 = vcmp.ge.f32.partialorder %v61_v9, 0.0  ;;  %v93_v12 = vmul.f32 0.2, %v61_v9 }
   0x8   :  { %vm78_vm2 = vcmp.ge.f32.partialorder %v62_v10, 0.0  ;;  %v94_v13 = vmul.f32 0.2, %v62_v10 }
   0x9   :  { %v108_v14 = vsel %vm76_vm0, %v60_v8, %v92_v11  ;;  %v109_v15 = vsel %vm77_vm1, %v61_v9, %v93_v12 }
   0xa   :  { %174 = vst [vmem:[%s237_s3] sm:$0xff] %v108_v14  ;;  %v110_v16 = vsel %vm78_vm2, %v62_v10, %v94_v13  ;;  %176 = vst [vmem:[%s237_s3 + $0x8] sm:$0xff] %v109_v15 }
   0xb   :  { %178 = vst [vmem:[%s237_s3 + $0x10] sm:$0xff] %v110_v16 }

// kernel: _lambda_.13
= control target key start
LH: loop header
LB: loop body
LE: loop exit
PB: predicated region body
PF: predicated region fallthrough
CT: control target
= control target key end

     0   :  { %s2427_s0 = inlined_call_operand.vmem [shape: bf16[18,1024], index: 0, kind: input, shape index: {}]   ;;  %s2428_s1 = inlined_call_operand.vmem [shape: bf16[1024,128], index: 1, kind: input, shape index: {}]   ;;  %s2429_s2 = inlined_call_operand.vmem [shape: f32[18,128], index: 2, kind: output, shape index: {0}]   ;;  %s2430_s3 = inlined_call_operand.vmem [shape: f32[1,1,128], index: 3, kind: output, shape index: {1}]   ;;  %s2431_s4 = inlined_call_operand.vmem [shape: f32[1,1,128], index: 4, kind: output, shape index: {2}]  }
   0x1   :  { %v1930_v0 = vld [vmem:[%s2428_s1 + $0x40] sm:$0xff]   ;;  %v1934_v4 = vld [vmem:[%s2428_s1 + $0x48] sm:$0xff]   ;;  %v1938_v8 = vld [vmem:[%s2428_s1 + $0x50] sm:$0xff]  }
   0x2   :  { %v1931_v1 = vld [vmem:[%s2428_s1 + $0xc0] sm:$0xff]   ;;  %1674 = vmatprep.subr.bf16.mxu0 %v1930_v0  ;;  %v1935_v5 = vld [vmem:[%s2428_s1 + $0xc8] sm:$0xff]   ;;  %v1939_v9 = vld [vmem:[%s2428_s1 + $0xd0] sm:$0xff]  }
   0x3   :  { %v1932_v2 = vld [vmem:[%s2428_s1] sm:$0xff]   ;;  %1738 = vmatprep.subr.bf16.mxu1 %v1931_v1  ;;  %v1936_v6 = vld [vmem:[%s2428_s1 + $0x8] sm:$0xff]   ;;  %v1940_v10 = vld [vmem:[%s2428_s1 + $0x10] sm:$0xff]  }
   0x4   :  { %v1933_v3 = vld [vmem:[%s2428_s1 + $0x80] sm:$0xff]   ;;  %1675 = vmatpush3.bf16.msra.mxu0 %v1932_v2  ;;  %v1937_v7 = vld [vmem:[%s2428_s1 + $0x88] sm:$0xff]   ;;  %v1941_v11 = vld [vmem:[%s2428_s1 + $0x90] sm:$0xff]  }
   0x5   :  { %1739 = vmatpush3.bf16.msra.mxu1 %v1933_v3  ;;  %1676 = vmatprep.subr.bf16.mxu0 %v1934_v4  ;;  %v1942_v12 = vld [vmem:[%s2428_s1 + $0x58] sm:$0xff]   ;;  %v1946_v16 = vld [vmem:[%s2428_s1 + $0x60] sm:$0xff]   ;;  %v1950_v20 = vld [vmem:[%s2428_s1 + $0x68] sm:$0xff]  }
   0x6   :  { %1740 = vmatprep.subr.bf16.mxu1 %v1935_v5  ;;  %v1943_v13 = vld [vmem:[%s2428_s1 + $0xd8] sm:$0xff]   ;;  %v1947_v17 = vld [vmem:[%s2428_s1 + $0xe0] sm:$0xff]   ;;  %v1951_v21 = vld [vmem:[%s2428_s1 + $0xe8] sm:$0xff]  }
   0x7   :  { %v1944_v14 = vld [vmem:[%s2428_s1 + $0x18] sm:$0xff]   ;;  %v1948_v18 = vld [vmem:[%s2428_s1 + $0x20] sm:$0xff]   ;;  %v1952_v22 = vld [vmem:[%s2428_s1 + $0x28] sm:$0xff]  }
   0x8   :  { %1677 = vmatpush3.bf16.msra.mxu0 %v1936_v6  ;;  %v1945_v15 = vld [vmem:[%s2428_s1 + $0x98] sm:$0xff]   ;;  %v1949_v19 = vld [vmem:[%s2428_s1 + $0xa0] sm:$0xff]   ;;  %v1953_v23 = vld [vmem:[%s2428_s1 + $0xa8] sm:$0xff]  }
   0x9   :  { %1741 = vmatpush3.bf16.msra.mxu1 %v1937_v7  ;;  %1678 = vmatprep.subr.bf16.mxu0 %v1938_v8  ;;  %v1954_v24 = vld [vmem:[%s2428_s1 + $0x70] sm:$0xff]   ;;  %v1958_v28 = vld [vmem:[%s2428_s1 + $0x78] sm:$0xff]   ;;  %v15_v32 = vld [vmem:[%s2427_s0] sm:$0xff] }
   0xa   :  { %1742 = vmatprep.subr.bf16.mxu1 %v1939_v9  ;;  %v1955_v25 = vld [vmem:[%s2428_s1 + $0xf0] sm:$0xff]   ;;  %v1959_v29 = vld [vmem:[%s2428_s1 + $0xf8] sm:$0xff]   ;;  %v19_v33 = vld [vmem:[%s2427_s0 + $0x20] sm:$0xff] }
   0xb   :  { %v1956_v26 = vld [vmem:[%s2428_s1 + $0x30] sm:$0xff]   ;;  %v1960_v30 = vld [vmem:[%s2428_s1 + $0x38] sm:$0xff]   ;;  %v16_v34 = vld [vmem:[%s2427_s0 + $0x8] sm:$0xff]  ;;  %v1546_v35 = vcombine.low %v15_v32, %v19_v33  ;;  %v1547_v36 = vcombine.high %v15_v32, %v19_v33 }
   0xc   :  { %1679 = vmatpush3.bf16.msra.mxu0 %v1940_v10  ;;  %v1957_v27 = vld [vmem:[%s2428_s1 + $0xb0] sm:$0xff]   ;;  %v1961_v31 = vld [vmem:[%s2428_s1 + $0xb8] sm:$0xff]   ;;  %v20_v37 = vld [vmem:[%s2427_s0 + $0x28] sm:$0xff] }
   0xd   :  { %1743 = vmatpush3.bf16.msra.mxu1 %v1941_v11  ;;  %1680 = vmatprep.subr.bf16.mxu0 %v1942_v12  ;;  %v1548_v38 = vcombine.low %v16_v34, %v20_v37  ;;  %v1549_v39 = vcombine.high %v16_v34, %v20_v37  ;;  %v1962_v40 = vld [vmem:[%s2428_s1 + $0x140] sm:$0xff]   ;;  %v24_v47 = vld [vmem:[%s2427_s0 + $0x48] sm:$0xff]  ;;  %v1970_v62 = vld [vmem:[%s2428_s1 + $0x150] sm:$0xff]  }
   0xe   :  { %1744 = vmatprep.subr.bf16.mxu1 %v1943_v13  ;;  %943 = vmatprep.mubr.bf16.mxu0 %v1547_v36  ;;  %v1963_v41 = vld [vmem:[%s2428_s1 + $0x1c0] sm:$0xff]   ;;  %v28_v48 = vld [vmem:[%s2427_s0 + $0x68] sm:$0xff]  ;;  %v1971_v63 = vld [vmem:[%s2428_s1 + $0x1d0] sm:$0xff]  }
   0xf   :  { %1040 = vmatprep.mubr.bf16.mxu1 %v1549_v39  ;;  %v1964_v42 = vld [vmem:[%s2428_s1 + $0x100] sm:$0xff]   ;;  %v1557_v49 = vcombine.high %v24_v47, %v28_v48  ;;  %v1966_v50 = vld [vmem:[%s2428_s1 + $0x148] sm:$0xff]   ;;  %v1556_v53 = vcombine.low %v24_v47, %v28_v48  ;;  %v1972_v0 = vld [vmem:[%s2428_s1 + $0x110] sm:$0xff]  }
  0x10   :  { %1681 = vmatpush3.bf16.msra.mxu0 %v1944_v14  ;;  %v1965_v43 = vld [vmem:[%s2428_s1 + $0x180] sm:$0xff]   ;;  %v1967_v52 = vld [vmem:[%s2428_s1 + $0x1c8] sm:$0xff]   ;;  %v1973_v1 = vld [vmem:[%s2428_s1 + $0x190] sm:$0xff]  }
  0x11   :  { %1745 = vmatpush3.bf16.msra.mxu1 %v1945_v15  ;;  %1682 = vmatprep.subr.bf16.mxu0 %v1946_v16  ;;  %v23_v44 = vld [vmem:[%s2427_s0 + $0x40] sm:$0xff]  ;;  %v1968_v54 = vld [vmem:[%s2428_s1 + $0x108] sm:$0xff]   ;;  %v1974_v10 = vld [vmem:[%s2428_s1 + $0x158] sm:$0xff]  }
  0x12   :  { %1746 = vmatprep.subr.bf16.mxu1 %v1947_v17  ;;  %v27_v45 = vld [vmem:[%s2427_s0 + $0x60] sm:$0xff]  ;;  %v1969_v55 = vld [vmem:[%s2428_s1 + $0x188] sm:$0xff]   ;;  %v1975_v11 = vld [vmem:[%s2428_s1 + $0x1d8] sm:$0xff]  }
  0x13   :  { %v1555_v46 = vcombine.high %v23_v44, %v27_v45  ;;  %v1554_v51 = vcombine.low %v23_v44, %v27_v45  ;;  %v31_v56 = vld [vmem:[%s2427_s0 + $0x80] sm:$0xff]  ;;  %v32_v58 = vld [vmem:[%s2427_s0 + $0x88] sm:$0xff]  ;;  %v1976_v12 = vld [vmem:[%s2428_s1 + $0x118] sm:$0xff]  }
  0x14   :  { %1683 = vmatpush3.bf16.msra.mxu0 %v1948_v18  ;;  %v35_v57 = vld [vmem:[%s2427_s0 + $0xa0] sm:$0xff]  ;;  %v36_v59 = vld [vmem:[%s2427_s0 + $0xa8] sm:$0xff]  ;;  %v1977_v13 = vld [vmem:[%s2428_s1 + $0x198] sm:$0xff]  }
  0x15   :  { %1747 = vmatpush3.bf16.msra.mxu1 %v1949_v19  ;;  %1684 = vmatprep.subr.bf16.mxu0 %v1950_v20  ;;  %v1563_v60 = vcombine.high %v31_v56, %v35_v57  ;;  %v1565_v61 = vcombine.high %v32_v58, %v36_v59  ;;  %v1562_v2 = vcombine.low %v31_v56, %v35_v57  ;;  %v39_v3 = vld [vmem:[%s2427_s0 + $0xc0] sm:$0xff]  ;;  %v40_v5 = vld [vmem:[%s2427_s0 + $0xc8] sm:$0xff]  ;;  %v1987_v39 = vld [vmem:[%s2428_s1 + $0x1f0] sm:$0xff]  }
  0x16   :  { %1748 = vmatprep.subr.bf16.mxu1 %v1951_v21  ;;  %v43_v4 = vld [vmem:[%s2427_s0 + $0xe0] sm:$0xff]  ;;  %v1564_v6 = vcombine.low %v32_v58, %v36_v59  ;;  %v44_v8 = vld [vmem:[%s2427_s0 + $0xe8] sm:$0xff]  ;;  %v1991_v48 = vld [vmem:[%s2428_s1 + $0x1f8] sm:$0xff]  }
  0x17   :  { %v1571_v7 = vcombine.high %v39_v3, %v43_v4  ;;  %v1573_v9 = vcombine.high %v40_v5, %v44_v8  ;;  %v47_v14 = vld [vmem:[%s2427_s0 + $0x100] sm:$0xff]  ;;  %v48_v16 = vld [vmem:[%s2427_s0 + $0x108] sm:$0xff]  ;;  %v1570_v19 = vcombine.low %v39_v3, %v43_v4  ;;  %v1572_v21 = vcombine.low %v40_v5, %v44_v8  ;;  %v26_v8 = vld [vmem:[%s2427_s0 + $0x58] sm:$0xff] }
  0x18   :  { %1685 = vmatpush3.bf16.msra.mxu0 %v1952_v22  ;;  %v51_v15 = vld [vmem:[%s2427_s0 + $0x120] sm:$0xff]  ;;  %v52_v17 = vld [vmem:[%s2427_s0 + $0x128] sm:$0xff] }
  0x19   :  { %1749 = vmatpush3.bf16.msra.mxu1 %v1953_v23  ;;  %1686 = vmatprep.subr.bf16.mxu0 %v1954_v24  ;;  %v1978_v18 = vld [vmem:[%s2428_s1 + $0x160] sm:$0xff]   ;;  %v1579_v22 = vcombine.high %v47_v14, %v51_v15  ;;  %v1581_v24 = vcombine.high %v48_v16, %v52_v17  ;;  %v1984_v32 = vld [vmem:[%s2428_s1 + $0x128] sm:$0xff]   ;;  %v1578_v34 = vcombine.low %v47_v14, %v51_v15  ;;  %v33_v14 = vld [vmem:[%s2427_s0 + $0x90] sm:$0xff] }
  0x1a   :  { %1750 = vmatprep.subr.bf16.mxu1 %v1955_v25  ;;  %v1979_v20 = vld [vmem:[%s2428_s1 + $0x1e0] sm:$0xff]   ;;  %v1985_v33 = vld [vmem:[%s2428_s1 + $0x1a8] sm:$0xff]   ;;  %v37_v15 = vld [vmem:[%s2427_s0 + $0xb0] sm:$0xff] }
  0x1b   :  { %v1980_v23 = vld [vmem:[%s2428_s1 + $0x120] sm:$0xff]   ;;  %v64_v44 = vld [vmem:[%s2427_s0 + $0x188] sm:$0xff] }
  0x1c   :  { %1687 = vmatpush3.bf16.msra.mxu0 %v1956_v26  ;;  %v1981_v25 = vld [vmem:[%s2428_s1 + $0x1a0] sm:$0xff]   ;;  %v68_v45 = vld [vmem:[%s2427_s0 + $0x1a8] sm:$0xff] }
  0x1d   :  { %1751 = vmatpush3.bf16.msra.mxu1 %v1957_v27  ;;  %1688 = vmatprep.subr.bf16.mxu0 %v1958_v28  ;;  %v55_v26 = vld [vmem:[%s2427_s0 + $0x140] sm:$0xff]  ;;  %v1982_v28 = vld [vmem:[%s2428_s1 + $0x168] sm:$0xff]   ;;  %v1596_v59 = vcombine.low %v64_v44, %v68_v45 }
  0x1e   :  { %1752 = vmatprep.subr.bf16.mxu1 %v1959_v29  ;;  %v59_v27 = vld [vmem:[%s2427_s0 + $0x160] sm:$0xff]  ;;  %v56_v29 = vld [vmem:[%s2427_s0 + $0x148] sm:$0xff] }
  0x1f   :  { %v1587_v36 = vcombine.high %v55_v26, %v59_v27  ;;  %v1586_v47 = vcombine.low %v55_v26, %v59_v27  ;;  %v72_v56 = vld [vmem:[%s2427_s0 + $0x1c8] sm:$0xff]  ;;  %v1566_v26 = vcombine.low %v33_v14, %v37_v15 }
  0x20   :  { %1689 = vmatpush3.bf16.msra.mxu0 %v1960_v30  ;;  %v60_v30 = vld [vmem:[%s2427_s0 + $0x168] sm:$0xff] }
  0x21   :  { %1753 = vmatpush3.bf16.msra.mxu1 %v1961_v31  ;;  %1802 = vmatprep.subr.bf16.mxu0 %v1962_v40  ;;  %v1983_v31 = vld [vmem:[%s2428_s1 + $0x1e8] sm:$0xff]   ;;  %v1589_v37 = vcombine.high %v56_v29, %v60_v30  ;;  %v1988_v40 = vld [vmem:[%s2428_s1 + $0x130] sm:$0xff]  }
  0x22   :  { %1866 = vmatprep.subr.bf16.mxu1 %v1963_v41  ;;  %v63_v41 = vld [vmem:[%s2427_s0 + $0x180] sm:$0xff]  ;;  %v76_v57 = vld [vmem:[%s2427_s0 + $0x1e8] sm:$0xff] }
  0x23   :  { %944 = vmatmul.mubr.bf16.vlgmr.msra.gmra.mrb[0].mxu0 %v1546_v35  ;;  %v1580_v35 = vcombine.low %v48_v16, %v52_v17  ;;  %v1604_v3 = vcombine.low %v72_v56, %v76_v57  ;;  %v34_v16 = vld [vmem:[%s2427_s0 + $0x98] sm:$0xff] }
  0x24   :  { %1041 = vmatmul.mubr.bf16.vlgmr.msra.gmra.mrb[0].mxu1 %v1548_v38  ;;  %1803 = vmatpush3.bf16.msra.mxu0 %v1964_v42  ;;  %v1986_v38 = vld [vmem:[%s2428_s1 + $0x170] sm:$0xff]   ;;  %v67_v42 = vld [vmem:[%s2427_s0 + $0x1a0] sm:$0xff]  ;;  %v38_v17 = vld [vmem:[%s2427_s0 + $0xb8] sm:$0xff] }
  0x25   :  { %1867 = vmatpush3.bf16.msra.mxu1 %v1965_v43  ;;  %951 = vmatprep.mubr.bf16.mxu0 %v1555_v46  ;;  %v1989_v43 = vld [vmem:[%s2428_s1 + $0x1b0] sm:$0xff]   ;;  %v1990_v46 = vld [vmem:[%s2428_s1 + $0x178] sm:$0xff]   ;;  %v1594_v58 = vcombine.low %v63_v41, %v67_v42  ;;  %v1568_v27 = vcombine.low %v34_v16, %v38_v17 }
  0x26   :  { %1048 = vmatprep.mubr.bf16.mxu1 %v1557_v49  ;;  %1804 = vmatprep.subr.bf16.mxu0 %v1966_v50  ;;  %v1588_v49 = vcombine.low %v56_v29, %v60_v30  ;;  %v1595_v50 = vcombine.high %v63_v41, %v67_v42  ;;  %v49_v30 = vld [vmem:[%s2427_s0 + $0x110] sm:$0xff]  ;;  %v62_v41 = vld [vmem:[%s2427_s0 + $0x178] sm:$0xff] }
  0x27   :  { %1868 = vmatprep.subr.bf16.mxu1 %v1967_v52  ;;  %v1597_v52 = vcombine.high %v64_v44, %v68_v45 }
  0x28   :  { %1805 = vmatpush3.bf16.msra.mxu0 %v1968_v54  ;;  %v71_v54 = vld [vmem:[%s2427_s0 + $0x1c0] sm:$0xff] }
  0x29   :  { %1869 = vmatpush3.bf16.msra.mxu1 %v1969_v55  ;;  %1806 = vmatprep.subr.bf16.mxu0 %v1970_v62  ;;  %v75_v55 = vld [vmem:[%s2427_s0 + $0x1e0] sm:$0xff]  ;;  %v17_v62 = vld [vmem:[%s2427_s0 + $0x10] sm:$0xff] }
  0x2a   :  { %1870 = vmatprep.subr.bf16.mxu1 %v1971_v63  ;;  %v21_v63 = vld [vmem:[%s2427_s0 + $0x30] sm:$0xff] }
  0x2b   :  { %952 = vmatmul.mubr.bf16.gmra.mrb[4].mxu0 %v1554_v51  ;;  %v1992_v51 = vld [vmem:[%s2428_s1 + $0x138] sm:$0xff]   ;;  %v1551_v4 = vcombine.high %v17_v62, %v21_v63 }
  0x2c   :  { %1049 = vmatmul.mubr.bf16.gmra.mrb[4].mxu1 %v1556_v53  ;;  %959 = vmatprep.mubr.bf16.mxu0 %v1563_v60  ;;  %v1993_v53 = vld [vmem:[%s2428_s1 + $0x1b8] sm:$0xff]   ;;  %v1603_v60 = vcombine.high %v71_v54, %v75_v55 }
  0x2d   :  { %1056 = vmatprep.mubr.bf16.mxu1 %v1565_v61  ;;  %1807 = vmatpush3.bf16.msra.mxu0 %v1972_v0  ;;  %v1605_v61 = vcombine.high %v72_v56, %v76_v57  ;;  %v18_v0 = vld [vmem:[%s2427_s0 + $0x18] sm:$0xff] }
  0x2e   :  { %1871 = vmatpush3.bf16.msra.mxu1 %v1973_v1  ;;  %1808 = vmatprep.subr.bf16.mxu0 %v1974_v10  ;;  %v22_v1 = vld [vmem:[%s2427_s0 + $0x38] sm:$0xff]  ;;  %v1550_v10 = vcombine.low %v17_v62, %v21_v63 }
  0x2f   :  { %1872 = vmatprep.subr.bf16.mxu1 %v1975_v11  ;;  %v1553_v5 = vcombine.high %v18_v0, %v22_v1  ;;  %v1552_v11 = vcombine.low %v18_v0, %v22_v1  ;;  %v74_v56 = vld [vmem:[%s2427_s0 + $0x1d8] sm:$0xff] }
  0x30   :  { %v78_v57 = vld [vmem:[%s2427_s0 + $0x1f8] sm:$0xff] }
  0x31   :  { %1809 = vmatpush3.bf16.msra.mxu0 %v1976_v12  ;;  %v1608_v63 = vcombine.low %v74_v56, %v78_v57 }
  0x32   :  { %1873 = vmatpush3.bf16.msra.mxu1 %v1977_v13  ;;  %1810 = vmatprep.subr.bf16.mxu0 %v1978_v18 }
  0x33   :  { %960 = vmatmul.mubr.bf16.gmra.mrb[8].mxu0 %v1562_v2  ;;  %1874 = vmatprep.subr.bf16.mxu1 %v1979_v20  ;;  %v1602_v2 = vcombine.low %v71_v54, %v75_v55  ;;  %v1567_v20 = vcombine.high %v33_v14, %v37_v15  ;;  %v73_v54 = vld [vmem:[%s2427_s0 + $0x1d0] sm:$0xff] }
  0x34   :  { %1057 = vmatmul.mubr.bf16.gmra.mrb[8].mxu1 %v1564_v6  ;;  %967 = vmatprep.mubr.bf16.mxu0 %v1571_v7  ;;  %v25_v6 = vld [vmem:[%s2427_s0 + $0x50] sm:$0xff] }
  0x35   :  { %1064 = vmatprep.mubr.bf16.mxu1 %v1573_v9  ;;  %1811 = vmatpush3.bf16.msra.mxu0 %v1980_v23  ;;  %v29_v7 = vld [vmem:[%s2427_s0 + $0x70] sm:$0xff]  ;;  %v30_v9 = vld [vmem:[%s2427_s0 + $0x78] sm:$0xff] }
  0x36   :  { %1875 = vmatpush3.bf16.msra.mxu1 %v1981_v25  ;;  %1812 = vmatprep.subr.bf16.mxu0 %v1982_v28  ;;  %v1559_v12 = vcombine.high %v25_v6, %v29_v7  ;;  %v1561_v13 = vcombine.high %v26_v8, %v30_v9  ;;  %v1558_v18 = vcombine.low %v25_v6, %v29_v7  ;;  %v45_v23 = vld [vmem:[%s2427_s0 + $0xf0] sm:$0xff]  ;;  %v46_v25 = vld [vmem:[%s2427_s0 + $0xf8] sm:$0xff] }
  0x37   :  { %1876 = vmatprep.subr.bf16.mxu1 %v1983_v31  ;;  %v53_v31 = vld [vmem:[%s2427_s0 + $0x130] sm:$0xff] }
  0x38   :  { %v1582_v42 = vcombine.low %v49_v30, %v53_v31  ;;  %v77_v55 = vld [vmem:[%s2427_s0 + $0x1f0] sm:$0xff] }
  0x39   :  { %1813 = vmatpush3.bf16.msra.mxu0 %v1984_v32  ;;  %v50_v32 = vld [vmem:[%s2427_s0 + $0x118] sm:$0xff]  ;;  %v1606_v62 = vcombine.low %v73_v54, %v77_v55 }
  0x3a   :  { %1877 = vmatpush3.bf16.msra.mxu1 %v1985_v33  ;;  %1814 = vmatprep.subr.bf16.mxu0 %v1986_v38  ;;  %v54_v33 = vld [vmem:[%s2427_s0 + $0x138] sm:$0xff]  ;;  %v57_v38 = vld [vmem:[%s2427_s0 + $0x150] sm:$0xff] }
  0x3b   :  { %968 = vmatmul.mubr.bf16.gmra.mrb[12].mxu0 %v1570_v19  ;;  %1878 = vmatprep.subr.bf16.mxu1 %v1987_v39  ;;  %v1560_v19 = vcombine.low %v26_v8, %v30_v9  ;;  %v61_v39 = vld [vmem:[%s2427_s0 + $0x170] sm:$0xff] }
  0x3c   :  { %1065 = vmatmul.mubr.bf16.gmra.mrb[12].mxu1 %v1572_v21  ;;  %975 = vmatprep.mubr.bf16.mxu0 %v1579_v22  ;;  %v1569_v21 = vcombine.high %v34_v16, %v38_v17  ;;  %v41_v22 = vld [vmem:[%s2427_s0 + $0xd0] sm:$0xff]  ;;  %v1591_v44 = vcombine.high %v57_v38, %v61_v39 }
  0x3d   :  { %1072 = vmatprep.mubr.bf16.mxu1 %v1581_v24  ;;  %1815 = vmatpush3.bf16.msra.mxu0 %v1988_v40  ;;  %v42_v24 = vld [vmem:[%s2427_s0 + $0xd8] sm:$0xff]  ;;  %v1575_v28 = vcombine.high %v41_v22, %v45_v23 }
  0x3e   :  { %1879 = vmatpush3.bf16.msra.mxu1 %v1989_v43  ;;  %1816 = vmatprep.subr.bf16.mxu0 %v1990_v46  ;;  %v1577_v29 = vcombine.high %v42_v24, %v46_v25  ;;  %v58_v40 = vld [vmem:[%s2427_s0 + $0x158] sm:$0xff]  ;;  %v1584_v43 = vcombine.low %v50_v32, %v54_v33  ;;  %v65_v46 = vld [vmem:[%s2427_s0 + $0x190] sm:$0xff] }
  0x3f   :  { %1880 = vmatprep.subr.bf16.mxu1 %v1991_v48  ;;  %v1593_v45 = vcombine.high %v58_v40, %v62_v41  ;;  %v66_v48 = vld [vmem:[%s2427_s0 + $0x198] sm:$0xff] }
  0x41   :  { %1817 = vmatpush3.bf16.msra.mxu0 %v1992_v51  ;;  %v1592_v51 = vcombine.low %v58_v40, %v62_v41 }
  0x42   :  { %1881 = vmatpush3.bf16.msra.mxu1 %v1993_v53 }
  0x43   :  { %976 = vmatmul.mubr.bf16.gmra.mrb[16].mxu0 %v1578_v34  ;;  %v1574_v34 = vcombine.low %v41_v22, %v45_v23 }
  0x44   :  { %1073 = vmatmul.mubr.bf16.gmra.mrb[16].mxu1 %v1580_v35  ;;  %983 = vmatprep.mubr.bf16.mxu0 %v1587_v36  ;;  %v1576_v35 = vcombine.low %v42_v24, %v46_v25  ;;  %v1583_v36 = vcombine.high %v49_v30, %v53_v31 }
  0x45   :  { %1080 = vmatprep.mubr.bf16.mxu1 %v1589_v37  ;;  %v1585_v37 = vcombine.high %v50_v32, %v54_v33 }
  0x4b   :  { %984 = vmatmul.mubr.bf16.gmra.mrb[20].mxu0 %v1586_v47  ;;  %v69_v47 = vld [vmem:[%s2427_s0 + $0x1b0] sm:$0xff] }
  0x4c   :  { %1081 = vmatmul.mubr.bf16.gmra.mrb[20].mxu1 %v1588_v49  ;;  %991 = vmatprep.mubr.bf16.mxu0 %v1595_v50  ;;  %v70_v49 = vld [vmem:[%s2427_s0 + $0x1b8] sm:$0xff]  ;;  %v1590_v50 = vcombine.low %v57_v38, %v61_v39 }
  0x4d   :  { %1088 = vmatprep.mubr.bf16.mxu1 %v1597_v52  ;;  %v1599_v52 = vcombine.high %v65_v46, %v69_v47  ;;  %v1601_v53 = vcombine.high %v66_v48, %v70_v49 }
  0x53   :  { %992 = vmatmul.mubr.bf16.gmra.mrb[24].mxu0 %v1594_v58  ;;  %v1598_v58 = vcombine.low %v65_v46, %v69_v47 }
  0x54   :  { %1089 = vmatmul.mubr.bf16.gmra.mrb[24].mxu1 %v1596_v59  ;;  %999 = vmatprep.mubr.bf16.mxu0 %v1603_v60  ;;  %v1600_v59 = vcombine.low %v66_v48, %v70_v49  ;;  %v1607_v60 = vcombine.high %v73_v54, %v77_v55 }
  0x55   :  { %1096 = vmatprep.mubr.bf16.mxu1 %v1605_v61  ;;  %v1609_v61 = vcombine.high %v74_v56, %v78_v57 }
  0x5b   :  { %1000 = vmatmul.mubr.bf16.gmra.mrb[28].mxu0 %v1602_v2 }
  0x5c   :  { %1097 = vmatmul.mubr.bf16.gmra.mrb[28].mxu1 %v1604_v3  ;;  %1137 = vmatprep.mubr.bf16.mxu0 %v1551_v4 }
  0x5d   :  { %1234 = vmatprep.mubr.bf16.mxu1 %v1553_v5 }
  0x63   :  { %1138 = vmatmul.mubr.bf16.vlgmr.msra.gmra.mrb[32].mxu0 %v1550_v10 }
  0x64   :  { %1235 = vmatmul.mubr.bf16.vlgmr.msra.gmra.mrb[32].mxu1 %v1552_v11  ;;  %1145 = vmatprep.mubr.bf16.mxu0 %v1559_v12 }
  0x65   :  { %1242 = vmatprep.mubr.bf16.mxu1 %v1561_v13 }
  0x6b   :  { %1146 = vmatmul.mubr.bf16.gmra.mrb[36].mxu0 %v1558_v18 }
  0x6c   :  { %1243 = vmatmul.mubr.bf16.gmra.mrb[36].mxu1 %v1560_v19  ;;  %1153 = vmatprep.mubr.bf16.mxu0 %v1567_v20 }
  0x6d   :  { %1250 = vmatprep.mubr.bf16.mxu1 %v1569_v21 }
  0x73   :  { %1154 = vmatmul.mubr.bf16.gmra.mrb[40].mxu0 %v1566_v26 }
  0x74   :  { %1251 = vmatmul.mubr.bf16.gmra.mrb[40].mxu1 %v1568_v27  ;;  %1161 = vmatprep.mubr.bf16.mxu0 %v1575_v28 }
  0x75   :  { %1258 = vmatprep.mubr.bf16.mxu1 %v1577_v29 }
  0x7b   :  { %1162 = vmatmul.mubr.bf16.gmra.mrb[44].mxu0 %v1574_v34 }
  0x7c   :  { %1259 = vmatmul.mubr.bf16.gmra.mrb[44].mxu1 %v1576_v35  ;;  %1169 = vmatprep.mubr.bf16.mxu0 %v1583_v36 }
  0x7d   :  { %1266 = vmatprep.mubr.bf16.mxu1 %v1585_v37 }
  0x83   :  { %1170 = vmatmul.mubr.bf16.gmra.mrb[48].mxu0 %v1582_v42 }
  0x84   :  { %1267 = vmatmul.mubr.bf16.gmra.mrb[48].mxu1 %v1584_v43  ;;  %1177 = vmatprep.mubr.bf16.mxu0 %v1591_v44 }
  0x85   :  { %1274 = vmatprep.mubr.bf16.mxu1 %v1593_v45 }
  0x8b   :  { %1178 = vmatmul.mubr.bf16.gmra.mrb[52].mxu0 %v1590_v50 }
  0x8c   :  { %1275 = vmatmul.mubr.bf16.gmra.mrb[52].mxu1 %v1592_v51  ;;  %1185 = vmatprep.mubr.bf16.mxu0 %v1599_v52 }
  0x8d   :  { %1282 = vmatprep.mubr.bf16.mxu1 %v1601_v53 }
  0x93   :  { %1186 = vmatmul.mubr.bf16.gmra.mrb[56].mxu0 %v1598_v58 }
  0x94   :  { %1283 = vmatmul.mubr.bf16.gmra.mrb[56].mxu1 %v1600_v59  ;;  %1193 = vmatprep.mubr.bf16.mxu0 %v1607_v60 }
  0x95   :  { %1290 = vmatprep.mubr.bf16.mxu1 %v1609_v61 }
  0x9b   :  { %1194 = vmatmul.mubr.bf16.gmra.mrb[60].mxu0 %v1606_v62 }
  0x9c   :  { %1291 = vmatmul.mubr.bf16.gmra.mrb[60].mxu1 %v1608_v63 }
  0xf6   :  { %v1690_v0 = vpop.f32.mrb[0].mxu0 }
  0xf7   :  { %v1754_v1 = vpop.f32.mrb[0].mxu1  ;;  %v1691_v2 = vpop.f32.mrb[1].mxu0 }
  0xf8   :  { %v1692_v3 = vadd.f32 %v1691_v2, %v1690_v0  ;;  %v1755_v4 = vpop.f32.mrb[1].mxu1  ;;  %v1693_v5 = vpop.f32.mrb[2].mxu0 }
  0xf9   :  { %v1756_v6 = vadd.f32 %v1755_v4, %v1754_v1  ;;  %v1757_v7 = vpop.f32.mrb[2].mxu1  ;;  %v1694_v8 = vpop.f32.mrb[3].mxu0 }
  0xfa   :  { %v1695_v9 = vadd.f32 %v1694_v8, %v1693_v5  ;;  %v1758_v10 = vpop.f32.mrb[3].mxu1 }
  0xfb   :  { %v2403_v11 = vadd.f32 %v1756_v6, %v1692_v3  ;;  %v1759_v12 = vadd.f32 %v1758_v10, %v1757_v7 }
  0xfd   :  { %v2405_v13 = vadd.f32 %v1759_v12, %v1695_v9 }
  0xfe   :  { %v1696_v14 = vpop.f32.mrb[4].mxu0 }
  0xff   :  { %v1760_v15 = vpop.f32.mrb[4].mxu1  ;;  %v1697_v16 = vpop.f32.mrb[5].mxu0 }
 0x100   :  { %v1698_v17 = vadd.f32 %v1697_v16, %v1696_v14  ;;  %v1761_v18 = vpop.f32.mrb[5].mxu1  ;;  %v1699_v19 = vpop.f32.mrb[6].mxu0  ;;  %v1315_v14 = vlaneseq }
 0x101   :  { %v1762_v20 = vadd.f32 %v1761_v18, %v1760_v15  ;;  %v1763_v21 = vpop.f32.mrb[6].mxu1  ;;  %v1700_v22 = vpop.f32.mrb[7].mxu0 }
 0x102   :  { %v1764_v23 = vpop.f32.mrb[7].mxu1 }
 0x103   :  { %v2407_v24 = vadd.f32 %v1762_v20, %v1698_v17 }
 0x106   :  { %v1702_v25 = vpop.f32.mrb[8].mxu0 }
 0x107   :  { %v1766_v26 = vpop.f32.mrb[8].mxu1  ;;  %v1703_v27 = vpop.f32.mrb[9].mxu0 }
 0x108   :  { %v1767_v28 = vpop.f32.mrb[9].mxu1  ;;  %v1705_v29 = vpop.f32.mrb[10].mxu0  ;;  %v1316_v26 = vshrl.u32 %v1315_v14, 7 }
 0x109   :  { %v1769_v30 = vpop.f32.mrb[10].mxu1  ;;  %v1706_v31 = vpop.f32.mrb[11].mxu0 }
 0x10a   :  { %v1770_v32 = vpop.f32.mrb[11].mxu1 }
 0x10e   :  { %v1708_v33 = vpop.f32.mrb[12].mxu0 }
 0x10f   :  { %v1772_v34 = vpop.f32.mrb[12].mxu1  ;;  %v1709_v35 = vpop.f32.mrb[13].mxu0  ;;  %v1318_v33 = vadd.s32 16, %v1316_v26 }
 0x110   :  { %v1773_v36 = vpop.f32.mrb[13].mxu1  ;;  %v1711_v37 = vpop.f32.mrb[14].mxu0 }
 0x111   :  { %v1775_v38 = vpop.f32.mrb[14].mxu1  ;;  %v1712_v39 = vpop.f32.mrb[15].mxu0  ;;  %vm1352_vm0 = vcmp.lt.s32.totalorder %v1318_v33, 18 }
 0x112   :  { %v1776_v40 = vpop.f32.mrb[15].mxu1 }
 0x116   :  { %v1714_v41 = vpop.f32.mrb[16].mxu0 }
 0x117   :  { %v1778_v42 = vpop.f32.mrb[16].mxu1  ;;  %v1715_v43 = vpop.f32.mrb[17].mxu0 }
 0x118   :  { %v1779_v44 = vpop.f32.mrb[17].mxu1  ;;  %v1717_v45 = vpop.f32.mrb[18].mxu0 }
 0x119   :  { %v1781_v46 = vpop.f32.mrb[18].mxu1  ;;  %v1718_v47 = vpop.f32.mrb[19].mxu0 }
 0x11a   :  { %v1782_v48 = vpop.f32.mrb[19].mxu1 }
 0x11e   :  { %v1720_v49 = vpop.f32.mrb[20].mxu0 }
 0x11f   :  { %v1784_v50 = vpop.f32.mrb[20].mxu1  ;;  %v1721_v51 = vpop.f32.mrb[21].mxu0 }
 0x120   :  { %v1785_v52 = vpop.f32.mrb[21].mxu1  ;;  %v1723_v53 = vpop.f32.mrb[22].mxu0 }
 0x121   :  { %v1787_v54 = vpop.f32.mrb[22].mxu1  ;;  %v1724_v55 = vpop.f32.mrb[23].mxu0 }
 0x122   :  { %v1788_v56 = vpop.f32.mrb[23].mxu1 }
 0x126   :  { %v1726_v57 = vpop.f32.mrb[24].mxu0 }
 0x127   :  { %v1790_v58 = vpop.f32.mrb[24].mxu1  ;;  %v1727_v59 = vpop.f32.mrb[25].mxu0 }
 0x128   :  { %v1791_v60 = vpop.f32.mrb[25].mxu1  ;;  %v1729_v61 = vpop.f32.mrb[26].mxu0 }
 0x129   :  { %v1793_v62 = vpop.f32.mrb[26].mxu1  ;;  %v1730_v63 = vpop.f32.mrb[27].mxu0 }
 0x12a   :  { %v1794_v0 = vpop.f32.mrb[27].mxu1 }
 0x12e   :  { %v1732_v1 = vpop.f32.mrb[28].mxu0 }
 0x12f   :  { %v1796_v2 = vpop.f32.mrb[28].mxu1  ;;  %v1733_v3 = vpop.f32.mrb[29].mxu0 }
 0x130   :  { %v1797_v4 = vpop.f32.mrb[29].mxu1  ;;  %v1735_v5 = vpop.f32.mrb[30].mxu0 }
 0x131   :  { %v1799_v6 = vpop.f32.mrb[30].mxu1  ;;  %v1736_v7 = vpop.f32.mrb[31].mxu0 }
 0x132   :  { %v1800_v8 = vpop.f32.mrb[31].mxu1 }
 0x136   :  { %v1818_v9 = vpop.f32.mrb[32].mxu0 }
 0x137   :  { %v1882_v10 = vpop.f32.mrb[32].mxu1  ;;  %v1819_v12 = vpop.f32.mrb[33].mxu0 }
 0x138   :  { %v1820_v15 = vadd.f32 %v1819_v12, %v1818_v9  ;;  %v1883_v16 = vpop.f32.mrb[33].mxu1  ;;  %v1821_v17 = vpop.f32.mrb[34].mxu0 }
 0x139   :  { %v1884_v18 = vadd.f32 %v1883_v16, %v1882_v10  ;;  %v1885_v19 = vpop.f32.mrb[34].mxu1  ;;  %v1822_v20 = vpop.f32.mrb[35].mxu0 }
 0x13a   :  { %v1140_v21 = vadd.f32 %v1820_v15, %v2403_v11  ;;  %v1823_v22 = vadd.f32 %v1822_v20, %v1821_v17  ;;  %v1886_v23 = vpop.f32.mrb[35].mxu1 }
 0x13b   :  { %v1887_v25 = vadd.f32 %v1886_v23, %v1885_v19 }
 0x13c   :  { %v1237_v27 = vadd.f32 %v1884_v18, %v1140_v21  ;;  %v1143_v28 = vadd.f32 %v1823_v22, %v2405_v13 }
 0x13e   :  { %1524 = vst [vmem:[%s2429_s2] sm:$0xff] %v1237_v27  ;;  %v1240_v29 = vadd.f32 %v1887_v25, %v1143_v28  ;;  %v1824_v30 = vpop.f32.mrb[36].mxu0  ;;  %v1414_v34 = vmul.f32 %v1237_v27, %v1237_v27 }
 0x13f   :  { %v1888_v31 = vpop.f32.mrb[36].mxu1  ;;  %v1825_v32 = vpop.f32.mrb[37].mxu0 }
 0x140   :  { %v1415_v35 = vmul.f32 %v1240_v29, %v1240_v29  ;;  %v1446_v36 = vadd.f32 %v1240_v29, %v1237_v27  ;;  %1526 = vst [vmem:[%s2429_s2 + $0x8] sm:$0xff] %v1240_v29  ;;  %v1826_v11 = vadd.f32 %v1825_v32, %v1824_v30  ;;  %v1889_v37 = vpop.f32.mrb[37].mxu1  ;;  %v1827_v38 = vpop.f32.mrb[38].mxu0 }
 0x141   :  { %v1890_v13 = vadd.f32 %v1889_v37, %v1888_v31  ;;  %v1891_v39 = vpop.f32.mrb[38].mxu1  ;;  %v1828_v40 = vpop.f32.mrb[39].mxu0 }
 0x142   :  { %v1468_v41 = vadd.f32 %v1415_v35, %v1414_v34  ;;  %v1148_v42 = vadd.f32 %v1826_v11, %v2407_v24  ;;  %v1892_v43 = vpop.f32.mrb[39].mxu1 }
 0x144   :  { %v1245_v44 = vadd.f32 %v1890_v13, %v1148_v42 }
 0x146   :  { %v1400_v45 = vsel %vm1352_vm0, %v1245_v44, 0.0  ;;  %v1416_v46 = vmul.f32 %v1245_v44, %v1245_v44  ;;  %1528 = vst [vmem:[%s2429_s2 + $0x10] sm:$0xff] %v1245_v44  ;;  %v1830_v47 = vpop.f32.mrb[40].mxu0 }
 0x147   :  { %v1447_v48 = vadd.f32 %v1446_v36, %v1400_v45  ;;  %v1894_v49 = vpop.f32.mrb[40].mxu1  ;;  %v1831_v50 = vpop.f32.mrb[41].mxu0 }
 0x148   :  { %v1432_v51 = vsel %vm1352_vm0, %v1416_v46, 0.0  ;;  %v1895_v52 = vpop.f32.mrb[41].mxu1  ;;  %v1833_v53 = vpop.f32.mrb[42].mxu0 }
 0x149   :  { %v1461_v54 = vrot.slane %v1447_v48, 4  ;;  %v1469_v55 = vadd.f32 %v1468_v41, %v1432_v51  ;;  %v1897_v56 = vpop.f32.mrb[42].mxu1  ;;  %v1834_v24 = vpop.f32.mrb[43].mxu0 }
 0x14a   :  { %v1898_v57 = vpop.f32.mrb[43].mxu1 }
 0x14b   :  { %v1462_v58 = vadd.f32 %v1461_v54, %v1447_v48  ;;  %v1483_v59 = vrot.slane %v1469_v55, 4 }
 0x14d   :  { %v1463_v60 = vrot.slane %v1462_v58, 2  ;;  %v1484_v61 = vadd.f32 %v1483_v59, %v1469_v55 }
 0x14e   :  { %v1836_v62 = vpop.f32.mrb[44].mxu0 }
 0x14f   :  { %v1464_v63 = vadd.f32 %v1463_v60, %v1462_v58  ;;  %v1485_v0 = vrot.slane %v1484_v61, 2  ;;  %v1900_v1 = vpop.f32.mrb[44].mxu1  ;;  %v1837_v2 = vpop.f32.mrb[45].mxu0 }
 0x150   :  { %v1901_v3 = vpop.f32.mrb[45].mxu1  ;;  %v1839_v4 = vpop.f32.mrb[46].mxu0 }
 0x151   :  { %v1465_v5 = vrot.slane %v1464_v63, 1  ;;  %v1486_v6 = vadd.f32 %v1485_v0, %v1484_v61  ;;  %v1903_v7 = vpop.f32.mrb[46].mxu1  ;;  %v1840_v8 = vpop.f32.mrb[47].mxu0 }
 0x152   :  { %v1904_v9 = vpop.f32.mrb[47].mxu1 }
 0x153   :  { %v1466_v10 = vadd.f32 %v1465_v5, %v1464_v63  ;;  %v1487_v12 = vrot.slane %v1486_v6, 1 }
 0x155   :  { %1467 = vst [vmem:[%s2430_s3] sm:$0x1] %v1466_v10  ;;  %v1488_v14 = vadd.f32 %v1487_v12, %v1486_v6 }
 0x156   :  { %v1842_v15 = vpop.f32.mrb[48].mxu0 }
 0x157   :  { %1489 = vst [vmem:[%s2431_s4] sm:$0x1] %v1488_v14  ;;  %v1906_v16 = vpop.f32.mrb[48].mxu1  ;;  %v1843_v17 = vpop.f32.mrb[49].mxu0 }
 0x158   :  { %v1907_v18 = vpop.f32.mrb[49].mxu1  ;;  %v1845_v19 = vpop.f32.mrb[50].mxu0 }
 0x159   :  { %v1909_v20 = vpop.f32.mrb[50].mxu1  ;;  %v1846_v21 = vpop.f32.mrb[51].mxu0 }
 0x15a   :  { %v1910_v22 = vpop.f32.mrb[51].mxu1 }
 0x15e   :  { %v1848_v23 = vpop.f32.mrb[52].mxu0 }
 0x15f   :  { %v1912_v25 = vpop.f32.mrb[52].mxu1  ;;  %v1849_v26 = vpop.f32.mrb[53].mxu0 }
 0x160   :  { %v1913_v27 = vpop.f32.mrb[53].mxu1  ;;  %v1851_v28 = vpop.f32.mrb[54].mxu0 }
 0x161   :  { %v1915_v29 = vpop.f32.mrb[54].mxu1  ;;  %v1852_v30 = vpop.f32.mrb[55].mxu0 }
 0x162   :  { %v1916_v31 = vpop.f32.mrb[55].mxu1 }
 0x166   :  { %v1854_v32 = vpop.f32.mrb[56].mxu0 }
 0x167   :  { %v1918_v33 = vpop.f32.mrb[56].mxu1  ;;  %v1855_v34 = vpop.f32.mrb[57].mxu0 }
 0x168   :  { %v1919_v35 = vpop.f32.mrb[57].mxu1  ;;  %v1857_v36 = vpop.f32.mrb[58].mxu0 }
 0x169   :  { %v1921_v11 = vpop.f32.mrb[58].mxu1  ;;  %v1858_v37 = vpop.f32.mrb[59].mxu0 }
 0x16a   :  { %v1922_v38 = vpop.f32.mrb[59].mxu1 }
 0x16e   :  { %v1860_v13 = vpop.f32.mrb[60].mxu0 }
 0x16f   :  { %v1924_v39 = vpop.f32.mrb[60].mxu1  ;;  %v1861_v40 = vpop.f32.mrb[61].mxu0 }
 0x170   :  { %v1925_v41 = vpop.f32.mrb[61].mxu1  ;;  %v1863_v42 = vpop.f32.mrb[62].mxu0 }
 0x171   :  { %v1927_v43 = vpop.f32.mrb[62].mxu1  ;;  %v1864_v44 = vpop.f32.mrb[63].mxu0 }
 0x172   :  { %v1928_v45 = vpop.f32.mrb[63].mxu1 }

// kernel: _lambda_.15
= control target key start
LH: loop header
LB: loop body
LE: loop exit
PB: predicated region body
PF: predicated region fallthrough
CT: control target
= control target key end

     0   :  { %s4346_s0 = inlined_call_operand.vmem [shape: bf16[8,2048], index: 0, kind: input, shape index: {}]   ;;  %s4347_s1 = inlined_call_operand.vmem [shape: bf16[2048,128], index: 1, kind: input, shape index: {}]   ;;  %s4348_s2 = inlined_call_operand.vmem [shape: f32[1,128], index: 2, kind: input, shape index: {}]   ;;  %s4349_s3 = inlined_call_operand.vmem [shape: f32[8,128], index: 3, kind: output, shape index: {}]  }
   0x1   :  { %v3415_v0 = vld [vmem:[%s4347_s1 + $0x40] sm:$0xff]   ;;  %v3419_v4 = vld [vmem:[%s4347_s1 + $0x48] sm:$0xff]   ;;  %v3423_v8 = vld [vmem:[%s4347_s1 + $0x50] sm:$0xff]  }
   0x2   :  { %v3416_v1 = vld [vmem:[%s4347_s1 + $0xc0] sm:$0xff]   ;;  %2903 = vmatprep.subr.bf16.mxu0 %v3415_v0  ;;  %v3420_v5 = vld [vmem:[%s4347_s1 + $0xc8] sm:$0xff]   ;;  %v3424_v9 = vld [vmem:[%s4347_s1 + $0xd0] sm:$0xff]  }
   0x3   :  { %v3417_v2 = vld [vmem:[%s4347_s1] sm:$0xff]   ;;  %2967 = vmatprep.subr.bf16.mxu1 %v3416_v1  ;;  %v3421_v6 = vld [vmem:[%s4347_s1 + $0x8] sm:$0xff]   ;;  %v3425_v10 = vld [vmem:[%s4347_s1 + $0x10] sm:$0xff]  }
   0x4   :  { %v3418_v3 = vld [vmem:[%s4347_s1 + $0x80] sm:$0xff]   ;;  %2904 = vmatpush3.bf16.msra.mxu0 %v3417_v2  ;;  %v3422_v7 = vld [vmem:[%s4347_s1 + $0x88] sm:$0xff]   ;;  %v3426_v11 = vld [vmem:[%s4347_s1 + $0x90] sm:$0xff]  }
   0x5   :  { %2968 = vmatpush3.bf16.msra.mxu1 %v3418_v3  ;;  %2905 = vmatprep.subr.bf16.mxu0 %v3419_v4  ;;  %v3427_v12 = vld [vmem:[%s4347_s1 + $0x58] sm:$0xff]   ;;  %v3431_v16 = vld [vmem:[%s4347_s1 + $0x60] sm:$0xff]   ;;  %v3435_v20 = vld [vmem:[%s4347_s1 + $0x68] sm:$0xff]  }
   0x6   :  { %2969 = vmatprep.subr.bf16.mxu1 %v3420_v5  ;;  %v3428_v13 = vld [vmem:[%s4347_s1 + $0xd8] sm:$0xff]   ;;  %v3432_v17 = vld [vmem:[%s4347_s1 + $0xe0] sm:$0xff]   ;;  %v3436_v21 = vld [vmem:[%s4347_s1 + $0xe8] sm:$0xff]  }
   0x7   :  { %v3429_v14 = vld [vmem:[%s4347_s1 + $0x18] sm:$0xff]   ;;  %v3433_v18 = vld [vmem:[%s4347_s1 + $0x20] sm:$0xff]   ;;  %v3437_v22 = vld [vmem:[%s4347_s1 + $0x28] sm:$0xff]  }
   0x8   :  { %2906 = vmatpush3.bf16.msra.mxu0 %v3421_v6  ;;  %v3430_v15 = vld [vmem:[%s4347_s1 + $0x98] sm:$0xff]   ;;  %v3434_v19 = vld [vmem:[%s4347_s1 + $0xa0] sm:$0xff]   ;;  %v3438_v23 = vld [vmem:[%s4347_s1 + $0xa8] sm:$0xff]  }
   0x9   :  { %2970 = vmatpush3.bf16.msra.mxu1 %v3422_v7  ;;  %2907 = vmatprep.subr.bf16.mxu0 %v3423_v8  ;;  %v3439_v24 = vld [vmem:[%s4347_s1 + $0x70] sm:$0xff]   ;;  %v3443_v28 = vld [vmem:[%s4347_s1 + $0x78] sm:$0xff]   ;;  %v15_v32 = vld [vmem:[%s4346_s0] sm:$0xff] }
   0xa   :  { %2971 = vmatprep.subr.bf16.mxu1 %v3424_v9  ;;  %v3440_v25 = vld [vmem:[%s4347_s1 + $0xf0] sm:$0xff]   ;;  %v3444_v29 = vld [vmem:[%s4347_s1 + $0xf8] sm:$0xff]   ;;  %v23_v33 = vld [vmem:[%s4346_s0 + $0x40] sm:$0xff] }
   0xb   :  { %v3441_v26 = vld [vmem:[%s4347_s1 + $0x30] sm:$0xff]   ;;  %v3445_v30 = vld [vmem:[%s4347_s1 + $0x38] sm:$0xff]   ;;  %v16_v34 = vld [vmem:[%s4346_s0 + $0x8] sm:$0xff]  ;;  %v2647_v35 = vcombine.low %v15_v32, %v23_v33  ;;  %v2648_v36 = vcombine.high %v15_v32, %v23_v33 }
   0xc   :  { %2908 = vmatpush3.bf16.msra.mxu0 %v3425_v10  ;;  %v3442_v27 = vld [vmem:[%s4347_s1 + $0xb0] sm:$0xff]   ;;  %v3446_v31 = vld [vmem:[%s4347_s1 + $0xb8] sm:$0xff]   ;;  %v24_v37 = vld [vmem:[%s4346_s0 + $0x48] sm:$0xff] }
   0xd   :  { %2972 = vmatpush3.bf16.msra.mxu1 %v3426_v11  ;;  %2909 = vmatprep.subr.bf16.mxu0 %v3427_v12  ;;  %v2649_v38 = vcombine.low %v16_v34, %v24_v37  ;;  %v2650_v39 = vcombine.high %v16_v34, %v24_v37  ;;  %v3447_v40 = vld [vmem:[%s4347_s1 + $0x140] sm:$0xff]   ;;  %v32_v47 = vld [vmem:[%s4346_s0 + $0x88] sm:$0xff]  ;;  %v3455_v62 = vld [vmem:[%s4347_s1 + $0x150] sm:$0xff]  }
   0xe   :  { %2973 = vmatprep.subr.bf16.mxu1 %v3428_v13  ;;  %1846 = vmatprep.mubr.bf16.mxu0 %v2648_v36  ;;  %v3448_v41 = vld [vmem:[%s4347_s1 + $0x1c0] sm:$0xff]   ;;  %v40_v48 = vld [vmem:[%s4346_s0 + $0xc8] sm:$0xff]  ;;  %v3456_v63 = vld [vmem:[%s4347_s1 + $0x1d0] sm:$0xff]  }
   0xf   :  { %1943 = vmatprep.mubr.bf16.mxu1 %v2650_v39  ;;  %v3449_v42 = vld [vmem:[%s4347_s1 + $0x100] sm:$0xff]   ;;  %v2666_v49 = vcombine.high %v32_v47, %v40_v48  ;;  %v3451_v50 = vld [vmem:[%s4347_s1 + $0x148] sm:$0xff]   ;;  %v2665_v53 = vcombine.low %v32_v47, %v40_v48  ;;  %v3457_v0 = vld [vmem:[%s4347_s1 + $0x110] sm:$0xff]  }
  0x10   :  { %2910 = vmatpush3.bf16.msra.mxu0 %v3429_v14  ;;  %v3450_v43 = vld [vmem:[%s4347_s1 + $0x180] sm:$0xff]   ;;  %v3452_v52 = vld [vmem:[%s4347_s1 + $0x1c8] sm:$0xff]   ;;  %v3458_v1 = vld [vmem:[%s4347_s1 + $0x190] sm:$0xff]  }
  0x11   :  { %2974 = vmatpush3.bf16.msra.mxu1 %v3430_v15  ;;  %2911 = vmatprep.subr.bf16.mxu0 %v3431_v16  ;;  %v31_v44 = vld [vmem:[%s4346_s0 + $0x80] sm:$0xff]  ;;  %v3453_v54 = vld [vmem:[%s4347_s1 + $0x108] sm:$0xff]   ;;  %v3459_v10 = vld [vmem:[%s4347_s1 + $0x158] sm:$0xff]  }
  0x12   :  { %2975 = vmatprep.subr.bf16.mxu1 %v3432_v17  ;;  %v39_v45 = vld [vmem:[%s4346_s0 + $0xc0] sm:$0xff]  ;;  %v3454_v55 = vld [vmem:[%s4347_s1 + $0x188] sm:$0xff]   ;;  %v3460_v11 = vld [vmem:[%s4347_s1 + $0x1d8] sm:$0xff]  }
  0x13   :  { %v2664_v46 = vcombine.high %v31_v44, %v39_v45  ;;  %v2663_v51 = vcombine.low %v31_v44, %v39_v45  ;;  %v47_v56 = vld [vmem:[%s4346_s0 + $0x100] sm:$0xff]  ;;  %v48_v58 = vld [vmem:[%s4346_s0 + $0x108] sm:$0xff]  ;;  %v3461_v12 = vld [vmem:[%s4347_s1 + $0x118] sm:$0xff]  }
  0x14   :  { %2912 = vmatpush3.bf16.msra.mxu0 %v3433_v18  ;;  %v55_v57 = vld [vmem:[%s4346_s0 + $0x140] sm:$0xff]  ;;  %v56_v59 = vld [vmem:[%s4346_s0 + $0x148] sm:$0xff]  ;;  %v3462_v13 = vld [vmem:[%s4347_s1 + $0x198] sm:$0xff]  }
  0x15   :  { %2976 = vmatpush3.bf16.msra.mxu1 %v3434_v19  ;;  %2913 = vmatprep.subr.bf16.mxu0 %v3435_v20  ;;  %v2680_v60 = vcombine.high %v47_v56, %v55_v57  ;;  %v2682_v61 = vcombine.high %v48_v58, %v56_v59  ;;  %v2679_v2 = vcombine.low %v47_v56, %v55_v57  ;;  %v63_v3 = vld [vmem:[%s4346_s0 + $0x180] sm:$0xff]  ;;  %v64_v5 = vld [vmem:[%s4346_s0 + $0x188] sm:$0xff]  ;;  %v3472_v39 = vld [vmem:[%s4347_s1 + $0x1f0] sm:$0xff]  }
  0x16   :  { %2977 = vmatprep.subr.bf16.mxu1 %v3436_v21  ;;  %v71_v4 = vld [vmem:[%s4346_s0 + $0x1c0] sm:$0xff]  ;;  %v2681_v6 = vcombine.low %v48_v58, %v56_v59  ;;  %v72_v8 = vld [vmem:[%s4346_s0 + $0x1c8] sm:$0xff]  ;;  %v3476_v48 = vld [vmem:[%s4347_s1 + $0x1f8] sm:$0xff]  }
  0x17   :  { %v2696_v7 = vcombine.high %v63_v3, %v71_v4  ;;  %v2698_v9 = vcombine.high %v64_v5, %v72_v8  ;;  %v79_v14 = vld [vmem:[%s4346_s0 + $0x200] sm:$0xff]  ;;  %v80_v16 = vld [vmem:[%s4346_s0 + $0x208] sm:$0xff]  ;;  %v2695_v19 = vcombine.low %v63_v3, %v71_v4  ;;  %v2697_v21 = vcombine.low %v64_v5, %v72_v8  ;;  %v26_v3 = vld [vmem:[%s4346_s0 + $0x58] sm:$0xff] }
  0x18   :  { %2914 = vmatpush3.bf16.msra.mxu0 %v3437_v22  ;;  %v87_v15 = vld [vmem:[%s4346_s0 + $0x240] sm:$0xff]  ;;  %v88_v17 = vld [vmem:[%s4346_s0 + $0x248] sm:$0xff]  ;;  %v33_v8 = vld [vmem:[%s4346_s0 + $0x90] sm:$0xff] }
  0x19   :  { %2978 = vmatpush3.bf16.msra.mxu1 %v3438_v23  ;;  %2915 = vmatprep.subr.bf16.mxu0 %v3439_v24  ;;  %v3463_v18 = vld [vmem:[%s4347_s1 + $0x160] sm:$0xff]   ;;  %v2712_v22 = vcombine.high %v79_v14, %v87_v15  ;;  %v2714_v24 = vcombine.high %v80_v16, %v88_v17  ;;  %v3469_v32 = vld [vmem:[%s4347_s1 + $0x128] sm:$0xff]   ;;  %v2711_v34 = vcombine.low %v79_v14, %v87_v15  ;;  %v42_v14 = vld [vmem:[%s4346_s0 + $0xd8] sm:$0xff] }
  0x1a   :  { %2979 = vmatprep.subr.bf16.mxu1 %v3440_v25  ;;  %v3464_v20 = vld [vmem:[%s4347_s1 + $0x1e0] sm:$0xff]   ;;  %v3470_v33 = vld [vmem:[%s4347_s1 + $0x1a8] sm:$0xff]  }
  0x1b   :  { %v3465_v23 = vld [vmem:[%s4347_s1 + $0x120] sm:$0xff]   ;;  %v112_v44 = vld [vmem:[%s4346_s0 + $0x308] sm:$0xff] }
  0x1c   :  { %2916 = vmatpush3.bf16.msra.mxu0 %v3441_v26  ;;  %v3466_v25 = vld [vmem:[%s4347_s1 + $0x1a0] sm:$0xff]   ;;  %v120_v45 = vld [vmem:[%s4346_s0 + $0x348] sm:$0xff] }
  0x1d   :  { %2980 = vmatpush3.bf16.msra.mxu1 %v3442_v27  ;;  %2917 = vmatprep.subr.bf16.mxu0 %v3443_v28  ;;  %v95_v26 = vld [vmem:[%s4346_s0 + $0x280] sm:$0xff]  ;;  %v3467_v28 = vld [vmem:[%s4347_s1 + $0x168] sm:$0xff]  }
  0x1e   :  { %2981 = vmatprep.subr.bf16.mxu1 %v3444_v29  ;;  %v103_v27 = vld [vmem:[%s4346_s0 + $0x2c0] sm:$0xff]  ;;  %v96_v29 = vld [vmem:[%s4346_s0 + $0x288] sm:$0xff] }
  0x1f   :  { %v2728_v36 = vcombine.high %v95_v26, %v103_v27  ;;  %v2727_v47 = vcombine.low %v95_v26, %v103_v27  ;;  %v3479_v56 = vld [vmem:[%s4347_s1 + $0x240] sm:$0xff]   ;;  %v128_v58 = vld [vmem:[%s4346_s0 + $0x388] sm:$0xff]  ;;  %v3487_v26 = vld [vmem:[%s4347_s1 + $0x250] sm:$0xff]  }
  0x20   :  { %2918 = vmatpush3.bf16.msra.mxu0 %v3445_v30  ;;  %v104_v30 = vld [vmem:[%s4346_s0 + $0x2c8] sm:$0xff]  ;;  %v3480_v57 = vld [vmem:[%s4347_s1 + $0x2c0] sm:$0xff]   ;;  %v3488_v27 = vld [vmem:[%s4347_s1 + $0x2d0] sm:$0xff]  }
  0x21   :  { %2982 = vmatpush3.bf16.msra.mxu1 %v3446_v31  ;;  %3031 = vmatprep.subr.bf16.mxu0 %v3447_v40  ;;  %v3468_v31 = vld [vmem:[%s4347_s1 + $0x1e8] sm:$0xff]   ;;  %v2730_v37 = vcombine.high %v96_v29, %v104_v30  ;;  %v3473_v40 = vld [vmem:[%s4347_s1 + $0x130] sm:$0xff]  }
  0x22   :  { %3095 = vmatprep.subr.bf16.mxu1 %v3448_v41  ;;  %v111_v41 = vld [vmem:[%s4346_s0 + $0x300] sm:$0xff]  ;;  %v136_v59 = vld [vmem:[%s4346_s0 + $0x3c8] sm:$0xff] }
  0x23   :  { %1847 = vmatmul.mubr.bf16.vlgmr.msra.gmra.mrb[0].mxu0 %v2647_v35  ;;  %v2713_v35 = vcombine.low %v80_v16, %v88_v17  ;;  %v2761_v5 = vcombine.low %v128_v58, %v136_v59  ;;  %v3483_v16 = vld [vmem:[%s4347_s1 + $0x248] sm:$0xff]  }
  0x24   :  { %1944 = vmatmul.mubr.bf16.vlgmr.msra.gmra.mrb[0].mxu1 %v2649_v38  ;;  %3032 = vmatpush3.bf16.msra.mxu0 %v3449_v42  ;;  %v3471_v38 = vld [vmem:[%s4347_s1 + $0x170] sm:$0xff]   ;;  %v119_v42 = vld [vmem:[%s4346_s0 + $0x340] sm:$0xff] }
  0x25   :  { %3096 = vmatpush3.bf16.msra.mxu1 %v3450_v43  ;;  %1854 = vmatprep.mubr.bf16.mxu0 %v2664_v46  ;;  %v3474_v43 = vld [vmem:[%s4347_s1 + $0x1b0] sm:$0xff]   ;;  %v3475_v46 = vld [vmem:[%s4347_s1 + $0x178] sm:$0xff]  }
  0x26   :  { %1951 = vmatprep.mubr.bf16.mxu1 %v2666_v49  ;;  %3033 = vmatprep.subr.bf16.mxu0 %v3451_v50  ;;  %v2729_v49 = vcombine.low %v96_v29, %v104_v30  ;;  %v2744_v50 = vcombine.high %v111_v41, %v119_v42 }
  0x27   :  { %3097 = vmatprep.subr.bf16.mxu1 %v3452_v52  ;;  %v2746_v52 = vcombine.high %v112_v44, %v120_v45 }
  0x28   :  { %3034 = vmatpush3.bf16.msra.mxu0 %v3453_v54  ;;  %v127_v54 = vld [vmem:[%s4346_s0 + $0x380] sm:$0xff] }
  0x29   :  { %3098 = vmatpush3.bf16.msra.mxu1 %v3454_v55  ;;  %3035 = vmatprep.subr.bf16.mxu0 %v3455_v62  ;;  %v135_v55 = vld [vmem:[%s4346_s0 + $0x3c0] sm:$0xff] }
  0x2a   :  { %3099 = vmatprep.subr.bf16.mxu1 %v3456_v63  ;;  %v2760_v62 = vcombine.high %v127_v54, %v135_v55  ;;  %v2762_v63 = vcombine.high %v128_v58, %v136_v59  ;;  %v2759_v4 = vcombine.low %v127_v54, %v135_v55  ;;  %v82_v54 = vld [vmem:[%s4346_s0 + $0x218] sm:$0xff]  ;;  %v3503_v58 = vld [vmem:[%s4347_s1 + $0x270] sm:$0xff]  }
  0x2b   :  { %1855 = vmatmul.mubr.bf16.gmra.mrb[4].mxu0 %v2663_v51  ;;  %v3477_v51 = vld [vmem:[%s4347_s1 + $0x138] sm:$0xff]  }
  0x2c   :  { %1952 = vmatmul.mubr.bf16.gmra.mrb[4].mxu1 %v2665_v53  ;;  %1862 = vmatprep.mubr.bf16.mxu0 %v2680_v60  ;;  %v3478_v53 = vld [vmem:[%s4347_s1 + $0x1b8] sm:$0xff]   ;;  %v2743_v60 = vcombine.low %v111_v41, %v119_v42  ;;  %v3495_v42 = vld [vmem:[%s4347_s1 + $0x260] sm:$0xff]  }
  0x2d   :  { %1959 = vmatprep.mubr.bf16.mxu1 %v2682_v61  ;;  %3036 = vmatpush3.bf16.msra.mxu0 %v3457_v0  ;;  %v2745_v61 = vcombine.low %v112_v44, %v120_v45  ;;  %v17_v0 = vld [vmem:[%s4346_s0 + $0x10] sm:$0xff]  ;;  %v3494_v41 = vld [vmem:[%s4347_s1 + $0x298] sm:$0xff]   ;;  %v3496_v44 = vld [vmem:[%s4347_s1 + $0x2e0] sm:$0xff]  }
  0x2e   :  { %3100 = vmatpush3.bf16.msra.mxu1 %v3458_v1  ;;  %3037 = vmatprep.subr.bf16.mxu0 %v3459_v10  ;;  %v25_v1 = vld [vmem:[%s4346_s0 + $0x50] sm:$0xff]  ;;  %v90_v55 = vld [vmem:[%s4346_s0 + $0x258] sm:$0xff] }
  0x2f   :  { %3101 = vmatprep.subr.bf16.mxu1 %v3460_v11  ;;  %v41_v10 = vld [vmem:[%s4346_s0 + $0xd0] sm:$0xff]  ;;  %v2651_v11 = vcombine.low %v17_v0, %v25_v1 }
  0x30   :  { %v2668_v17 = vcombine.high %v33_v8, %v41_v10 }
  0x31   :  { %3038 = vmatpush3.bf16.msra.mxu0 %v3461_v12  ;;  %v3482_v12 = vld [vmem:[%s4347_s1 + $0x280] sm:$0xff]  }
  0x32   :  { %3102 = vmatpush3.bf16.msra.mxu1 %v3462_v13  ;;  %3039 = vmatprep.subr.bf16.mxu0 %v3463_v18  ;;  %v34_v13 = vld [vmem:[%s4346_s0 + $0x98] sm:$0xff]  ;;  %v3484_v18 = vld [vmem:[%s4347_s1 + $0x2c8] sm:$0xff]  }
  0x33   :  { %1863 = vmatmul.mubr.bf16.gmra.mrb[8].mxu0 %v2679_v2  ;;  %3103 = vmatprep.subr.bf16.mxu1 %v3464_v20  ;;  %v18_v2 = vld [vmem:[%s4346_s0 + $0x18] sm:$0xff]  ;;  %v3485_v20 = vld [vmem:[%s4347_s1 + $0x208] sm:$0xff]   ;;  %v2669_v29 = vcombine.low %v34_v13, %v42_v14 }
  0x34   :  { %1960 = vmatmul.mubr.bf16.gmra.mrb[8].mxu1 %v2681_v6  ;;  %1870 = vmatprep.mubr.bf16.mxu0 %v2696_v7  ;;  %v2652_v6 = vcombine.high %v17_v0, %v25_v1  ;;  %v2654_v7 = vcombine.high %v18_v2, %v26_v3  ;;  %v2653_v15 = vcombine.low %v18_v2, %v26_v3  ;;  %v3505_v0 = vld [vmem:[%s4347_s1 + $0x230] sm:$0xff]   ;;  %v3507_v2 = vld [vmem:[%s4347_s1 + $0x278] sm:$0xff]  }
  0x35   :  { %1967 = vmatprep.mubr.bf16.mxu1 %v2698_v9  ;;  %3040 = vmatpush3.bf16.msra.mxu0 %v3465_v23  ;;  %v3481_v9 = vld [vmem:[%s4347_s1 + $0x200] sm:$0xff]   ;;  %v57_v23 = vld [vmem:[%s4346_s0 + $0x150] sm:$0xff] }
  0x36   :  { %3104 = vmatpush3.bf16.msra.mxu1 %v3466_v25  ;;  %3041 = vmatprep.subr.bf16.mxu0 %v3467_v28  ;;  %v58_v25 = vld [vmem:[%s4346_s0 + $0x158] sm:$0xff]  ;;  %v2667_v28 = vcombine.low %v33_v8, %v41_v10  ;;  %v3506_v1 = vld [vmem:[%s4347_s1 + $0x2b0] sm:$0xff]   ;;  %v3511_v10 = vld [vmem:[%s4347_s1 + $0x340] sm:$0xff]  }
  0x37   :  { %3105 = vmatprep.subr.bf16.mxu1 %v3468_v31  ;;  %v97_v3 = vld [vmem:[%s4346_s0 + $0x290] sm:$0xff]  ;;  %v3509_v8 = vld [vmem:[%s4347_s1 + $0x238] sm:$0xff]  }
  0x39   :  { %3042 = vmatpush3.bf16.msra.mxu0 %v3469_v32  ;;  %v3489_v32 = vld [vmem:[%s4347_s1 + $0x210] sm:$0xff]  }
  0x3a   :  { %3106 = vmatpush3.bf16.msra.mxu1 %v3470_v33  ;;  %3043 = vmatprep.subr.bf16.mxu0 %v3471_v38  ;;  %v3490_v33 = vld [vmem:[%s4347_s1 + $0x290] sm:$0xff]   ;;  %v66_v38 = vld [vmem:[%s4346_s0 + $0x198] sm:$0xff] }
  0x3b   :  { %1871 = vmatmul.mubr.bf16.gmra.mrb[12].mxu0 %v2695_v19  ;;  %3107 = vmatprep.subr.bf16.mxu1 %v3472_v39  ;;  %v2670_v19 = vcombine.high %v34_v13, %v42_v14  ;;  %v74_v39 = vld [vmem:[%s4346_s0 + $0x1d8] sm:$0xff]  ;;  %v2717_v13 = vcombine.low %v82_v54, %v90_v55 }
  0x3c   :  { %1968 = vmatmul.mubr.bf16.gmra.mrb[12].mxu1 %v2697_v21  ;;  %1878 = vmatprep.mubr.bf16.mxu0 %v2712_v22  ;;  %v3486_v21 = vld [vmem:[%s4347_s1 + $0x288] sm:$0xff]   ;;  %v49_v22 = vld [vmem:[%s4346_s0 + $0x110] sm:$0xff] }
  0x3d   :  { %1975 = vmatprep.mubr.bf16.mxu1 %v2714_v24  ;;  %3044 = vmatpush3.bf16.msra.mxu0 %v3473_v40  ;;  %v50_v24 = vld [vmem:[%s4346_s0 + $0x118] sm:$0xff]  ;;  %v2684_v30 = vcombine.high %v49_v22, %v57_v23 }
  0x3e   :  { %3108 = vmatpush3.bf16.msra.mxu1 %v3474_v43  ;;  %3045 = vmatprep.subr.bf16.mxu0 %v3475_v46  ;;  %v2686_v31 = vcombine.high %v50_v24, %v58_v25  ;;  %v3493_v40 = vld [vmem:[%s4347_s1 + $0x218] sm:$0xff]   ;;  %v2683_v43 = vcombine.low %v49_v22, %v57_v23  ;;  %v2685_v45 = vcombine.low %v50_v24, %v58_v25  ;;  %v129_v24 = vld [vmem:[%s4346_s0 + $0x390] sm:$0xff] }
  0x3f   :  { %3109 = vmatprep.subr.bf16.mxu1 %v3476_v48  ;;  %v2702_v48 = vcombine.high %v66_v38, %v74_v39  ;;  %v137_v25 = vld [vmem:[%s4346_s0 + $0x3d0] sm:$0xff] }
  0x41   :  { %3046 = vmatpush3.bf16.msra.mxu0 %v3477_v51  ;;  %v81_v51 = vld [vmem:[%s4346_s0 + $0x210] sm:$0xff] }
  0x42   :  { %3110 = vmatpush3.bf16.msra.mxu1 %v3478_v53  ;;  %3159 = vmatprep.subr.bf16.mxu0 %v3479_v56  ;;  %v89_v53 = vld [vmem:[%s4346_s0 + $0x250] sm:$0xff]  ;;  %v3501_v56 = vld [vmem:[%s4347_s1 + $0x228] sm:$0xff]  }
  0x43   :  { %1879 = vmatmul.mubr.bf16.gmra.mrb[16].mxu0 %v2711_v34  ;;  %3223 = vmatprep.subr.bf16.mxu1 %v3480_v57  ;;  %v3491_v34 = vld [vmem:[%s4347_s1 + $0x258] sm:$0xff]   ;;  %v3502_v57 = vld [vmem:[%s4347_s1 + $0x2a8] sm:$0xff]  }
  0x44   :  { %1976 = vmatmul.mubr.bf16.gmra.mrb[16].mxu1 %v2713_v35  ;;  %1886 = vmatprep.mubr.bf16.mxu0 %v2728_v36  ;;  %v65_v35 = vld [vmem:[%s4346_s0 + $0x190] sm:$0xff] }
  0x45   :  { %1983 = vmatprep.mubr.bf16.mxu1 %v2730_v37  ;;  %v73_v36 = vld [vmem:[%s4346_s0 + $0x1d0] sm:$0xff]  ;;  %v3492_v37 = vld [vmem:[%s4347_s1 + $0x2d8] sm:$0xff]  }
  0x46   :  { %v2700_v46 = vcombine.high %v65_v35, %v73_v36  ;;  %v2699_v59 = vcombine.low %v65_v35, %v73_v36  ;;  %v28_v35 = vld [vmem:[%s4346_s0 + $0x68] sm:$0xff]  ;;  %v2763_v36 = vcombine.low %v129_v24, %v137_v25 }
  0x4b   :  { %1887 = vmatmul.mubr.bf16.gmra.mrb[20].mxu0 %v2727_v47  ;;  %v3497_v47 = vld [vmem:[%s4347_s1 + $0x220] sm:$0xff]  }
  0x4c   :  { %1984 = vmatmul.mubr.bf16.gmra.mrb[20].mxu1 %v2729_v49  ;;  %1894 = vmatprep.mubr.bf16.mxu0 %v2744_v50  ;;  %v3498_v49 = vld [vmem:[%s4347_s1 + $0x2a0] sm:$0xff]   ;;  %v3499_v50 = vld [vmem:[%s4347_s1 + $0x268] sm:$0xff]  }
  0x4d   :  { %1991 = vmatprep.mubr.bf16.mxu1 %v2746_v52  ;;  %v3500_v52 = vld [vmem:[%s4347_s1 + $0x2e8] sm:$0xff]  }
  0x53   :  { %1895 = vmatmul.mubr.bf16.gmra.mrb[24].mxu0 %v2743_v60  ;;  %v3504_v60 = vld [vmem:[%s4347_s1 + $0x2f0] sm:$0xff]  }
  0x54   :  { %1992 = vmatmul.mubr.bf16.gmra.mrb[24].mxu1 %v2745_v61  ;;  %1902 = vmatprep.mubr.bf16.mxu0 %v2760_v62  ;;  %v2701_v61 = vcombine.low %v66_v38, %v74_v39  ;;  %v2716_v62 = vcombine.high %v81_v51, %v89_v53 }
  0x55   :  { %1999 = vmatprep.mubr.bf16.mxu1 %v2762_v63  ;;  %v2718_v63 = vcombine.high %v82_v54, %v90_v55  ;;  %v51_v54 = vld [vmem:[%s4346_s0 + $0x120] sm:$0xff] }
  0x56   :  { %v59_v55 = vld [vmem:[%s4346_s0 + $0x160] sm:$0xff] }
  0x5b   :  { %1903 = vmatmul.mubr.bf16.gmra.mrb[28].mxu0 %v2759_v4  ;;  %v105_v4 = vld [vmem:[%s4346_s0 + $0x2d0] sm:$0xff] }
  0x5c   :  { %2000 = vmatmul.mubr.bf16.gmra.mrb[28].mxu1 %v2761_v5  ;;  %2040 = vmatprep.mubr.bf16.mxu0 %v2652_v6  ;;  %v3508_v5 = vld [vmem:[%s4347_s1 + $0x2f8] sm:$0xff]   ;;  %v2732_v14 = vcombine.high %v97_v3, %v105_v4 }
  0x5d   :  { %2137 = vmatprep.mubr.bf16.mxu1 %v2654_v7  ;;  %v98_v6 = vld [vmem:[%s4346_s0 + $0x298] sm:$0xff] }
  0x5e   :  { %v106_v7 = vld [vmem:[%s4346_s0 + $0x2d8] sm:$0xff] }
  0x63   :  { %2041 = vmatmul.mubr.bf16.vlgmr.msra.gmra.mrb[32].mxu0 %v2651_v11  ;;  %v2715_v11 = vcombine.low %v81_v51, %v89_v53  ;;  %v3516_v51 = vld [vmem:[%s4347_s1 + $0x3c8] sm:$0xff]  }
  0x64   :  { %2138 = vmatmul.mubr.bf16.vlgmr.msra.gmra.mrb[32].mxu1 %v2653_v15  ;;  %3160 = vmatpush3.bf16.msra.mxu0 %v3481_v9  ;;  %v3510_v9 = vld [vmem:[%s4347_s1 + $0x2b8] sm:$0xff]   ;;  %v2734_v15 = vcombine.high %v98_v6, %v106_v7  ;;  %v3518_v53 = vld [vmem:[%s4347_s1 + $0x388] sm:$0xff]  }
  0x65   :  { %3224 = vmatpush3.bf16.msra.mxu1 %v3482_v12  ;;  %2048 = vmatprep.mubr.bf16.mxu0 %v2668_v17  ;;  %v3512_v12 = vld [vmem:[%s4347_s1 + $0x3c0] sm:$0xff]   ;;  %v121_v17 = vld [vmem:[%s4346_s0 + $0x350] sm:$0xff] }
  0x66   :  { %2145 = vmatprep.mubr.bf16.mxu1 %v2670_v19  ;;  %3161 = vmatprep.subr.bf16.mxu0 %v3483_v16  ;;  %v113_v16 = vld [vmem:[%s4346_s0 + $0x310] sm:$0xff]  ;;  %v122_v19 = vld [vmem:[%s4346_s0 + $0x358] sm:$0xff] }
  0x67   :  { %3225 = vmatprep.subr.bf16.mxu1 %v3484_v18  ;;  %v114_v18 = vld [vmem:[%s4346_s0 + $0x318] sm:$0xff]  ;;  %v2748_v22 = vcombine.high %v113_v16, %v121_v17 }
  0x68   :  { %3162 = vmatpush3.bf16.msra.mxu0 %v3485_v20  ;;  %v2731_v20 = vcombine.low %v97_v3, %v105_v4  ;;  %v2750_v23 = vcombine.high %v114_v18, %v122_v19  ;;  %v3524_v3 = vld [vmem:[%s4347_s1 + $0x3d8] sm:$0xff]   ;;  %v67_v4 = vld [vmem:[%s4346_s0 + $0x1a0] sm:$0xff] }
  0x69   :  { %3226 = vmatpush3.bf16.msra.mxu1 %v3486_v21  ;;  %3163 = vmatprep.subr.bf16.mxu0 %v3487_v26  ;;  %v2733_v21 = vcombine.low %v98_v6, %v106_v7  ;;  %v130_v26 = vld [vmem:[%s4346_s0 + $0x398] sm:$0xff]  ;;  %v68_v6 = vld [vmem:[%s4346_s0 + $0x1a8] sm:$0xff] }
  0x6a   :  { %3227 = vmatprep.subr.bf16.mxu1 %v3488_v27  ;;  %v138_v27 = vld [vmem:[%s4346_s0 + $0x3d8] sm:$0xff] }
  0x6b   :  { %2049 = vmatmul.mubr.bf16.gmra.mrb[36].mxu0 %v2667_v28  ;;  %v2747_v28 = vcombine.low %v113_v16, %v121_v17  ;;  %v3525_v7 = vld [vmem:[%s4347_s1 + $0x318] sm:$0xff]   ;;  %v3529_v16 = vld [vmem:[%s4347_s1 + $0x320] sm:$0xff]  }
  0x6c   :  { %2146 = vmatmul.mubr.bf16.gmra.mrb[36].mxu1 %v2669_v29  ;;  %2056 = vmatprep.mubr.bf16.mxu0 %v2684_v30  ;;  %v2749_v29 = vcombine.low %v114_v18, %v122_v19  ;;  %v2764_v30 = vcombine.high %v129_v24, %v137_v25  ;;  %v3530_v17 = vld [vmem:[%s4347_s1 + $0x3a0] sm:$0xff]   ;;  %v3531_v18 = vld [vmem:[%s4347_s1 + $0x368] sm:$0xff]  }
  0x6d   :  { %2153 = vmatprep.mubr.bf16.mxu1 %v2686_v31  ;;  %3164 = vmatpush3.bf16.msra.mxu0 %v3489_v32  ;;  %v2766_v31 = vcombine.high %v130_v26, %v138_v27  ;;  %v19_v32 = vld [vmem:[%s4346_s0 + $0x20] sm:$0xff]  ;;  %v3532_v19 = vld [vmem:[%s4347_s1 + $0x3e8] sm:$0xff]  }
  0x6e   :  { %3228 = vmatpush3.bf16.msra.mxu1 %v3490_v33  ;;  %3165 = vmatprep.subr.bf16.mxu0 %v3491_v34  ;;  %v27_v33 = vld [vmem:[%s4346_s0 + $0x60] sm:$0xff]  ;;  %v20_v34 = vld [vmem:[%s4346_s0 + $0x28] sm:$0xff] }
  0x6f   :  { %3229 = vmatprep.subr.bf16.mxu1 %v3492_v37  ;;  %v2765_v37 = vcombine.low %v130_v26, %v138_v27  ;;  %v2656_v38 = vcombine.high %v19_v32, %v27_v33  ;;  %v2658_v39 = vcombine.high %v20_v34, %v28_v35  ;;  %v92_v24 = vld [vmem:[%s4346_s0 + $0x268] sm:$0xff]  ;;  %v3535_v26 = vld [vmem:[%s4347_s1 + $0x370] sm:$0xff]  }
  0x70   :  { %v3534_v25 = vld [vmem:[%s4347_s1 + $0x3a8] sm:$0xff]  }
  0x71   :  { %3166 = vmatpush3.bf16.msra.mxu0 %v3493_v40  ;;  %v35_v40 = vld [vmem:[%s4346_s0 + $0xa0] sm:$0xff] }
  0x72   :  { %3230 = vmatpush3.bf16.msra.mxu1 %v3494_v41  ;;  %3167 = vmatprep.subr.bf16.mxu0 %v3495_v42  ;;  %v43_v41 = vld [vmem:[%s4346_s0 + $0xe0] sm:$0xff]  ;;  %v2655_v42 = vcombine.low %v19_v32, %v27_v33  ;;  %v3537_v32 = vld [vmem:[%s4347_s1 + $0x330] sm:$0xff]  }
  0x73   :  { %2057 = vmatmul.mubr.bf16.gmra.mrb[40].mxu0 %v2683_v43  ;;  %3231 = vmatprep.subr.bf16.mxu1 %v3496_v44  ;;  %v36_v43 = vld [vmem:[%s4346_s0 + $0xa8] sm:$0xff]  ;;  %v3538_v33 = vld [vmem:[%s4347_s1 + $0x3b0] sm:$0xff]  }
  0x74   :  { %2154 = vmatmul.mubr.bf16.gmra.mrb[40].mxu1 %v2685_v45  ;;  %2064 = vmatprep.mubr.bf16.mxu0 %v2700_v46  ;;  %v44_v44 = vld [vmem:[%s4346_s0 + $0xe8] sm:$0xff]  ;;  %v2657_v45 = vcombine.low %v20_v34, %v28_v35  ;;  %v3513_v46 = vld [vmem:[%s4347_s1 + $0x300] sm:$0xff]   ;;  %v3539_v34 = vld [vmem:[%s4347_s1 + $0x378] sm:$0xff]  }
  0x75   :  { %2161 = vmatprep.mubr.bf16.mxu1 %v2702_v48  ;;  %3168 = vmatpush3.bf16.msra.mxu0 %v3497_v47  ;;  %v3514_v47 = vld [vmem:[%s4347_s1 + $0x380] sm:$0xff]   ;;  %v2672_v48 = vcombine.high %v35_v40, %v43_v41  ;;  %v3540_v35 = vld [vmem:[%s4347_s1 + $0x3f8] sm:$0xff]  }
  0x76   :  { %3232 = vmatpush3.bf16.msra.mxu1 %v3498_v49  ;;  %3169 = vmatprep.subr.bf16.mxu0 %v3499_v50  ;;  %v2674_v49 = vcombine.high %v36_v43, %v44_v44  ;;  %v3515_v50 = vld [vmem:[%s4347_s1 + $0x348] sm:$0xff]  }
  0x77   :  { %3233 = vmatprep.subr.bf16.mxu1 %v3500_v52  ;;  %v3517_v52 = vld [vmem:[%s4347_s1 + $0x308] sm:$0xff]  }
  0x79   :  { %3170 = vmatpush3.bf16.msra.mxu0 %v3501_v56  ;;  %v3519_v56 = vld [vmem:[%s4347_s1 + $0x350] sm:$0xff]  }
  0x7a   :  { %3234 = vmatpush3.bf16.msra.mxu1 %v3502_v57  ;;  %3171 = vmatprep.subr.bf16.mxu0 %v3503_v58  ;;  %v52_v57 = vld [vmem:[%s4346_s0 + $0x128] sm:$0xff] }
  0x7b   :  { %2065 = vmatmul.mubr.bf16.gmra.mrb[44].mxu0 %v2699_v59  ;;  %3235 = vmatprep.subr.bf16.mxu1 %v3504_v60  ;;  %v60_v58 = vld [vmem:[%s4346_s0 + $0x168] sm:$0xff]  ;;  %v3520_v59 = vld [vmem:[%s4347_s1 + $0x3d0] sm:$0xff]   ;;  %v2671_v60 = vcombine.low %v35_v40, %v43_v41  ;;  %v3542_v41 = vld [vmem:[%s4347_s1 + $0x3b8] sm:$0xff]  }
  0x7c   :  { %2162 = vmatmul.mubr.bf16.gmra.mrb[44].mxu1 %v2701_v61  ;;  %2072 = vmatprep.mubr.bf16.mxu0 %v2716_v62  ;;  %v2673_v61 = vcombine.low %v36_v43, %v44_v44  ;;  %v2688_v62 = vcombine.high %v51_v54, %v59_v55  ;;  %v108_v40 = vld [vmem:[%s4346_s0 + $0x2e8] sm:$0xff] }
  0x7d   :  { %2169 = vmatprep.mubr.bf16.mxu1 %v2718_v63  ;;  %3172 = vmatpush3.bf16.msra.mxu0 %v3505_v0  ;;  %v2690_v63 = vcombine.high %v52_v57, %v60_v58  ;;  %v3521_v0 = vld [vmem:[%s4347_s1 + $0x310] sm:$0xff]  }
  0x7e   :  { %3236 = vmatpush3.bf16.msra.mxu1 %v3506_v1  ;;  %3173 = vmatprep.subr.bf16.mxu0 %v3507_v2  ;;  %v3522_v1 = vld [vmem:[%s4347_s1 + $0x390] sm:$0xff]   ;;  %v3523_v2 = vld [vmem:[%s4347_s1 + $0x358] sm:$0xff]  }
  0x7f   :  { %3237 = vmatprep.subr.bf16.mxu1 %v3508_v5  ;;  %v75_v5 = vld [vmem:[%s4346_s0 + $0x1e0] sm:$0xff] }
  0x80   :  { %v2703_v27 = vcombine.low %v67_v4, %v75_v5 }
  0x81   :  { %3174 = vmatpush3.bf16.msra.mxu0 %v3509_v8  ;;  %v76_v8 = vld [vmem:[%s4346_s0 + $0x1e8] sm:$0xff] }
  0x82   :  { %3238 = vmatpush3.bf16.msra.mxu1 %v3510_v9  ;;  %3287 = vmatprep.subr.bf16.mxu0 %v3511_v10  ;;  %v3526_v9 = vld [vmem:[%s4347_s1 + $0x398] sm:$0xff]   ;;  %v3527_v10 = vld [vmem:[%s4347_s1 + $0x360] sm:$0xff]  }
  0x83   :  { %2073 = vmatmul.mubr.bf16.gmra.mrb[48].mxu0 %v2715_v11  ;;  %3351 = vmatprep.subr.bf16.mxu1 %v3512_v12  ;;  %v2687_v11 = vcombine.low %v51_v54, %v59_v55  ;;  %v3528_v12 = vld [vmem:[%s4347_s1 + $0x3e0] sm:$0xff]  }
  0x84   :  { %2170 = vmatmul.mubr.bf16.gmra.mrb[48].mxu1 %v2717_v13  ;;  %2080 = vmatprep.mubr.bf16.mxu0 %v2732_v14  ;;  %v2689_v13 = vcombine.low %v52_v57, %v60_v58  ;;  %v2704_v14 = vcombine.high %v67_v4, %v75_v5  ;;  %v131_v54 = vld [vmem:[%s4346_s0 + $0x3a0] sm:$0xff]  ;;  %v140_v57 = vld [vmem:[%s4346_s0 + $0x3e8] sm:$0xff] }
  0x85   :  { %2177 = vmatprep.mubr.bf16.mxu1 %v2734_v15  ;;  %v2706_v15 = vcombine.high %v68_v6, %v76_v8  ;;  %v139_v55 = vld [vmem:[%s4346_s0 + $0x3e0] sm:$0xff] }
  0x8b   :  { %2081 = vmatmul.mubr.bf16.gmra.mrb[52].mxu0 %v2731_v20  ;;  %v83_v20 = vld [vmem:[%s4346_s0 + $0x220] sm:$0xff] }
  0x8c   :  { %2178 = vmatmul.mubr.bf16.gmra.mrb[52].mxu1 %v2733_v21  ;;  %2088 = vmatprep.mubr.bf16.mxu0 %v2748_v22  ;;  %v91_v21 = vld [vmem:[%s4346_s0 + $0x260] sm:$0xff]  ;;  %v84_v22 = vld [vmem:[%s4346_s0 + $0x228] sm:$0xff] }
  0x8d   :  { %2185 = vmatprep.mubr.bf16.mxu1 %v2750_v23  ;;  %v3533_v23 = vld [vmem:[%s4347_s1 + $0x328] sm:$0xff]   ;;  %v2721_v43 = vcombine.low %v84_v22, %v92_v24 }
  0x93   :  { %2089 = vmatmul.mubr.bf16.gmra.mrb[56].mxu0 %v2747_v28  ;;  %v3536_v28 = vld [vmem:[%s4347_s1 + $0x3f0] sm:$0xff]  }
  0x94   :  { %2186 = vmatmul.mubr.bf16.gmra.mrb[56].mxu1 %v2749_v29  ;;  %2096 = vmatprep.mubr.bf16.mxu0 %v2764_v30  ;;  %v2705_v29 = vcombine.low %v68_v6, %v76_v8  ;;  %v2720_v30 = vcombine.high %v83_v20, %v91_v21  ;;  %v37_v6 = vld [vmem:[%s4346_s0 + $0xb0] sm:$0xff]  ;;  %v38_v8 = vld [vmem:[%s4346_s0 + $0xb8] sm:$0xff] }
  0x95   :  { %2193 = vmatprep.mubr.bf16.mxu1 %v2766_v31  ;;  %v2722_v31 = vcombine.high %v84_v22, %v92_v24  ;;  %v69_v22 = vld [vmem:[%s4346_s0 + $0x1b0] sm:$0xff]  ;;  %v70_v24 = vld [vmem:[%s4346_s0 + $0x1b8] sm:$0xff] }
  0x9b   :  { %2097 = vmatmul.mubr.bf16.gmra.mrb[60].mxu0 %v2763_v36  ;;  %v99_v36 = vld [vmem:[%s4346_s0 + $0x2a0] sm:$0xff] }
  0x9c   :  { %2194 = vmatmul.mubr.bf16.gmra.mrb[60].mxu1 %v2765_v37  ;;  %2234 = vmatprep.mubr.bf16.mxu0 %v2656_v38  ;;  %v107_v37 = vld [vmem:[%s4346_s0 + $0x2e0] sm:$0xff]  ;;  %v3541_v38 = vld [vmem:[%s4347_s1 + $0x338] sm:$0xff]  }
  0x9d   :  { %2331 = vmatprep.mubr.bf16.mxu1 %v2658_v39  ;;  %v100_v39 = vld [vmem:[%s4346_s0 + $0x2a8] sm:$0xff]  ;;  %v2736_v44 = vcombine.high %v99_v36, %v107_v37 }
  0xa3   :  { %2235 = vmatmul.mubr.bf16.vlgmr.msra.gmra.mrb[64].mxu0 %v2655_v42  ;;  %v2719_v42 = vcombine.low %v83_v20, %v91_v21 }
  0xa4   :  { %2332 = vmatmul.mubr.bf16.vlgmr.msra.gmra.mrb[64].mxu1 %v2657_v45  ;;  %3288 = vmatpush3.bf16.msra.mxu0 %v3513_v46  ;;  %v2738_v45 = vcombine.high %v100_v39, %v108_v40  ;;  %v115_v46 = vld [vmem:[%s4346_s0 + $0x320] sm:$0xff] }
  0xa5   :  { %3352 = vmatpush3.bf16.msra.mxu1 %v3514_v47  ;;  %2242 = vmatprep.mubr.bf16.mxu0 %v2672_v48  ;;  %v123_v47 = vld [vmem:[%s4346_s0 + $0x360] sm:$0xff]  ;;  %v116_v48 = vld [vmem:[%s4346_s0 + $0x328] sm:$0xff] }
  0xa6   :  { %2339 = vmatprep.mubr.bf16.mxu1 %v2674_v49  ;;  %3289 = vmatprep.subr.bf16.mxu0 %v3515_v50  ;;  %v124_v49 = vld [vmem:[%s4346_s0 + $0x368] sm:$0xff]  ;;  %v2735_v50 = vcombine.low %v99_v36, %v107_v37  ;;  %v2751_v58 = vcombine.low %v115_v46, %v123_v47  ;;  %v2646_v36 = vld [vmem:[%s4348_s2] ss:$0 sm:$0xff] }
  0xa7   :  { %3353 = vmatprep.subr.bf16.mxu1 %v3516_v51  ;;  %v2737_v51 = vcombine.low %v100_v39, %v108_v40 }
  0xa8   :  { %3290 = vmatpush3.bf16.msra.mxu0 %v3517_v52  ;;  %v2752_v52 = vcombine.high %v115_v46, %v123_v47 }
  0xa9   :  { %3354 = vmatpush3.bf16.msra.mxu1 %v3518_v53  ;;  %3291 = vmatprep.subr.bf16.mxu0 %v3519_v56  ;;  %v2754_v53 = vcombine.high %v116_v48, %v124_v49  ;;  %v132_v56 = vld [vmem:[%s4346_s0 + $0x3a8] sm:$0xff] }
  0xaa   :  { %3355 = vmatprep.subr.bf16.mxu1 %v3520_v59  ;;  %v2753_v59 = vcombine.low %v116_v48, %v124_v49 }
  0xab   :  { %2243 = vmatmul.mubr.bf16.gmra.mrb[68].mxu0 %v2671_v60  ;;  %v2768_v60 = vcombine.high %v131_v54, %v139_v55 }
  0xac   :  { %2340 = vmatmul.mubr.bf16.gmra.mrb[68].mxu1 %v2673_v61  ;;  %2250 = vmatprep.mubr.bf16.mxu0 %v2688_v62  ;;  %v2770_v61 = vcombine.high %v132_v56, %v140_v57  ;;  %v21_v62 = vld [vmem:[%s4346_s0 + $0x30] sm:$0xff] }
  0xad   :  { %2347 = vmatprep.mubr.bf16.mxu1 %v2690_v63  ;;  %3292 = vmatpush3.bf16.msra.mxu0 %v3521_v0  ;;  %v29_v63 = vld [vmem:[%s4346_s0 + $0x70] sm:$0xff]  ;;  %v22_v0 = vld [vmem:[%s4346_s0 + $0x38] sm:$0xff] }
  0xae   :  { %3356 = vmatpush3.bf16.msra.mxu1 %v3522_v1  ;;  %3293 = vmatprep.subr.bf16.mxu0 %v3523_v2  ;;  %v30_v1 = vld [vmem:[%s4346_s0 + $0x78] sm:$0xff]  ;;  %v2767_v2 = vcombine.low %v131_v54, %v139_v55  ;;  %v2660_v4 = vcombine.high %v21_v62, %v29_v63 }
  0xaf   :  { %3357 = vmatprep.subr.bf16.mxu1 %v3524_v3  ;;  %v2769_v3 = vcombine.low %v132_v56, %v140_v57  ;;  %v2662_v5 = vcombine.high %v22_v0, %v30_v1  ;;  %v102_v54 = vld [vmem:[%s4346_s0 + $0x2b8] sm:$0xff] }
  0xb0   :  { %v110_v55 = vld [vmem:[%s4346_s0 + $0x2f8] sm:$0xff] }
  0xb1   :  { %3294 = vmatpush3.bf16.msra.mxu0 %v3525_v7  ;;  %v45_v7 = vld [vmem:[%s4346_s0 + $0xf0] sm:$0xff] }
  0xb2   :  { %3358 = vmatpush3.bf16.msra.mxu1 %v3526_v9  ;;  %3295 = vmatprep.subr.bf16.mxu0 %v3527_v10  ;;  %v46_v9 = vld [vmem:[%s4346_s0 + $0xf8] sm:$0xff]  ;;  %v2659_v10 = vcombine.low %v21_v62, %v29_v63 }
  0xb3   :  { %2251 = vmatmul.mubr.bf16.gmra.mrb[72].mxu0 %v2687_v11  ;;  %3359 = vmatprep.subr.bf16.mxu1 %v3528_v12  ;;  %v2661_v11 = vcombine.low %v22_v0, %v30_v1  ;;  %v2676_v12 = vcombine.high %v37_v6, %v45_v7  ;;  %v2742_v1 = vcombine.high %v102_v54, %v110_v55 }
  0xb4   :  { %2348 = vmatmul.mubr.bf16.gmra.mrb[72].mxu1 %v2689_v13  ;;  %2258 = vmatprep.mubr.bf16.mxu0 %v2704_v14  ;;  %v2678_v13 = vcombine.high %v38_v8, %v46_v9  ;;  %v53_v14 = vld [vmem:[%s4346_s0 + $0x130] sm:$0xff] }
  0xb5   :  { %2355 = vmatprep.mubr.bf16.mxu1 %v2706_v15  ;;  %3296 = vmatpush3.bf16.msra.mxu0 %v3529_v16  ;;  %v61_v15 = vld [vmem:[%s4346_s0 + $0x170] sm:$0xff]  ;;  %v54_v16 = vld [vmem:[%s4346_s0 + $0x138] sm:$0xff] }
  0xb6   :  { %3360 = vmatpush3.bf16.msra.mxu1 %v3530_v17  ;;  %3297 = vmatprep.subr.bf16.mxu0 %v3531_v18  ;;  %v62_v17 = vld [vmem:[%s4346_s0 + $0x178] sm:$0xff]  ;;  %v2675_v18 = vcombine.low %v37_v6, %v45_v7  ;;  %v2692_v20 = vcombine.high %v53_v14, %v61_v15 }
  0xb7   :  { %3361 = vmatprep.subr.bf16.mxu1 %v3532_v19  ;;  %v2677_v19 = vcombine.low %v38_v8, %v46_v9  ;;  %v2694_v21 = vcombine.high %v54_v16, %v62_v17  ;;  %v118_v6 = vld [vmem:[%s4346_s0 + $0x338] sm:$0xff] }
  0xb8   :  { %v126_v7 = vld [vmem:[%s4346_s0 + $0x378] sm:$0xff] }
  0xb9   :  { %3298 = vmatpush3.bf16.msra.mxu0 %v3533_v23  ;;  %v77_v23 = vld [vmem:[%s4346_s0 + $0x1f0] sm:$0xff] }
  0xba   :  { %3362 = vmatpush3.bf16.msra.mxu1 %v3534_v25  ;;  %3299 = vmatprep.subr.bf16.mxu0 %v3535_v26  ;;  %v78_v25 = vld [vmem:[%s4346_s0 + $0x1f8] sm:$0xff]  ;;  %v2691_v26 = vcombine.low %v53_v14, %v61_v15 }
  0xbb   :  { %2259 = vmatmul.mubr.bf16.gmra.mrb[76].mxu0 %v2703_v27  ;;  %3363 = vmatprep.subr.bf16.mxu1 %v3536_v28  ;;  %v2693_v27 = vcombine.low %v54_v16, %v62_v17  ;;  %v2708_v28 = vcombine.high %v69_v22, %v77_v23  ;;  %v2758_v17 = vcombine.high %v118_v6, %v126_v7 }
  0xbc   :  { %2356 = vmatmul.mubr.bf16.gmra.mrb[76].mxu1 %v2705_v29  ;;  %2266 = vmatprep.mubr.bf16.mxu0 %v2720_v30  ;;  %v2710_v29 = vcombine.high %v70_v24, %v78_v25  ;;  %v85_v30 = vld [vmem:[%s4346_s0 + $0x230] sm:$0xff] }
  0xbd   :  { %2363 = vmatprep.mubr.bf16.mxu1 %v2722_v31  ;;  %3300 = vmatpush3.bf16.msra.mxu0 %v3537_v32  ;;  %v93_v31 = vld [vmem:[%s4346_s0 + $0x270] sm:$0xff] }
  0xbe   :  { %3364 = vmatpush3.bf16.msra.mxu1 %v3538_v33  ;;  %3301 = vmatprep.subr.bf16.mxu0 %v3539_v34  ;;  %v86_v33 = vld [vmem:[%s4346_s0 + $0x238] sm:$0xff] }
  0xbf   :  { %3365 = vmatprep.subr.bf16.mxu1 %v3540_v35  ;;  %v94_v34 = vld [vmem:[%s4346_s0 + $0x278] sm:$0xff] }
  0xc0   :  { %v2726_v47 = vcombine.high %v86_v33, %v94_v34 }
  0xc1   :  { %3302 = vmatpush3.bf16.msra.mxu0 %v3541_v38  ;;  %v2707_v38 = vcombine.low %v69_v22, %v77_v23  ;;  %v134_v22 = vld [vmem:[%s4346_s0 + $0x3b8] sm:$0xff] }
  0xc2   :  { %3366 = vmatpush3.bf16.msra.mxu1 %v3542_v41  ;;  %v142_v23 = vld [vmem:[%s4346_s0 + $0x3f8] sm:$0xff] }
  0xc3   :  { %2267 = vmatmul.mubr.bf16.gmra.mrb[80].mxu0 %v2719_v42  ;;  %v2709_v42 = vcombine.low %v70_v24, %v78_v25 }
  0xc4   :  { %2364 = vmatmul.mubr.bf16.gmra.mrb[80].mxu1 %v2721_v43  ;;  %2274 = vmatprep.mubr.bf16.mxu0 %v2736_v44  ;;  %v2724_v43 = vcombine.high %v85_v30, %v93_v31 }
  0xc5   :  { %2371 = vmatprep.mubr.bf16.mxu1 %v2738_v45 }
  0xcb   :  { %2275 = vmatmul.mubr.bf16.gmra.mrb[84].mxu0 %v2735_v50 }
  0xcc   :  { %2372 = vmatmul.mubr.bf16.gmra.mrb[84].mxu1 %v2737_v51  ;;  %2282 = vmatprep.mubr.bf16.mxu0 %v2752_v52  ;;  %v101_v51 = vld [vmem:[%s4346_s0 + $0x2b0] sm:$0xff] }
  0xcd   :  { %2379 = vmatprep.mubr.bf16.mxu1 %v2754_v53  ;;  %v109_v52 = vld [vmem:[%s4346_s0 + $0x2f0] sm:$0xff] }
  0xce   :  { %v2740_v62 = vcombine.high %v101_v51, %v109_v52 }
  0xd3   :  { %2283 = vmatmul.mubr.bf16.gmra.mrb[88].mxu0 %v2751_v58  ;;  %v2723_v58 = vcombine.low %v85_v30, %v93_v31 }
  0xd4   :  { %2380 = vmatmul.mubr.bf16.gmra.mrb[88].mxu1 %v2753_v59  ;;  %2290 = vmatprep.mubr.bf16.mxu0 %v2768_v60 }
  0xd5   :  { %2387 = vmatprep.mubr.bf16.mxu1 %v2770_v61  ;;  %v2725_v61 = vcombine.low %v86_v33, %v94_v34  ;;  %v2774_v33 = vcombine.high %v134_v22, %v142_v23 }
  0xdb   :  { %2291 = vmatmul.mubr.bf16.gmra.mrb[92].mxu0 %v2767_v2 }
  0xdc   :  { %2388 = vmatmul.mubr.bf16.gmra.mrb[92].mxu1 %v2769_v3  ;;  %2428 = vmatprep.mubr.bf16.mxu0 %v2660_v4  ;;  %v117_v3 = vld [vmem:[%s4346_s0 + $0x330] sm:$0xff] }
  0xdd   :  { %2525 = vmatprep.mubr.bf16.mxu1 %v2662_v5  ;;  %v125_v4 = vld [vmem:[%s4346_s0 + $0x370] sm:$0xff] }
  0xde   :  { %v2756_v14 = vcombine.high %v117_v3, %v125_v4 }
  0xe3   :  { %2429 = vmatmul.mubr.bf16.vlgmr.msra.gmra.mrb[96].mxu0 %v2659_v10  ;;  %v2739_v10 = vcombine.low %v101_v51, %v109_v52 }
  0xe4   :  { %2526 = vmatmul.mubr.bf16.vlgmr.msra.gmra.mrb[96].mxu1 %v2661_v11  ;;  %2436 = vmatprep.mubr.bf16.mxu0 %v2676_v12 }
  0xe5   :  { %2533 = vmatprep.mubr.bf16.mxu1 %v2678_v13  ;;  %v2741_v13 = vcombine.low %v102_v54, %v110_v55 }
  0xeb   :  { %2437 = vmatmul.mubr.bf16.gmra.mrb[100].mxu0 %v2675_v18 }
  0xec   :  { %2534 = vmatmul.mubr.bf16.gmra.mrb[100].mxu1 %v2677_v19  ;;  %2444 = vmatprep.mubr.bf16.mxu0 %v2692_v20  ;;  %v133_v19 = vld [vmem:[%s4346_s0 + $0x3b0] sm:$0xff] }
  0xed   :  { %2541 = vmatprep.mubr.bf16.mxu1 %v2694_v21  ;;  %v141_v20 = vld [vmem:[%s4346_s0 + $0x3f0] sm:$0xff] }
  0xee   :  { %v2772_v30 = vcombine.high %v133_v19, %v141_v20 }
  0xf3   :  { %2445 = vmatmul.mubr.bf16.gmra.mrb[104].mxu0 %v2691_v26  ;;  %v2755_v26 = vcombine.low %v117_v3, %v125_v4 }
  0xf4   :  { %2542 = vmatmul.mubr.bf16.gmra.mrb[104].mxu1 %v2693_v27  ;;  %2452 = vmatprep.mubr.bf16.mxu0 %v2708_v28 }
  0xf5   :  { %2549 = vmatprep.mubr.bf16.mxu1 %v2710_v29  ;;  %v2757_v29 = vcombine.low %v118_v6, %v126_v7 }
  0xf6   :  { %v2919_v32 = vpop.f32.mrb[0].mxu0 }
  0xf7   :  { %v2983_v35 = vpop.f32.mrb[0].mxu1  ;;  %v2920_v37 = vpop.f32.mrb[1].mxu0 }
  0xf8   :  { %v2921_v39 = vadd.f32 %v2920_v37, %v2919_v32  ;;  %v2984_v40 = vpop.f32.mrb[1].mxu1  ;;  %v2922_v41 = vpop.f32.mrb[2].mxu0 }
  0xf9   :  { %v2985_v44 = vadd.f32 %v2984_v40, %v2983_v35  ;;  %v2986_v45 = vpop.f32.mrb[2].mxu1  ;;  %v2923_v46 = vpop.f32.mrb[3].mxu0  ;;  %v2773_v41 = vcombine.low %v134_v22, %v142_v23 }
  0xfa   :  { %v1849_v48 = vadd.f32 %v2921_v39, %v2646_v36  ;;  %v2987_v49 = vpop.f32.mrb[3].mxu1 }
  0xfb   :  { %2453 = vmatmul.mubr.bf16.gmra.mrb[108].mxu0 %v2707_v38  ;;  %v2771_v38 = vcombine.low %v133_v19, %v141_v20 }
  0xfc   :  { %v4298_v50 = vadd.f32 %v2985_v44, %v1849_v48  ;;  %2550 = vmatmul.mubr.bf16.gmra.mrb[108].mxu1 %v2709_v42  ;;  %2460 = vmatprep.mubr.bf16.mxu0 %v2724_v43 }
  0xfd   :  { %2557 = vmatprep.mubr.bf16.mxu1 %v2726_v47 }
  0xfe   :  { %v2925_v53 = vpop.f32.mrb[4].mxu0 }
  0xff   :  { %v2989_v56 = vpop.f32.mrb[4].mxu1  ;;  %v2926_v57 = vpop.f32.mrb[5].mxu0 }
 0x100   :  { %v2990_v59 = vpop.f32.mrb[5].mxu1  ;;  %v2928_v60 = vpop.f32.mrb[6].mxu0 }
 0x101   :  { %v2992_v63 = vpop.f32.mrb[6].mxu1  ;;  %v2929_v0 = vpop.f32.mrb[7].mxu0 }
 0x102   :  { %v2993_v2 = vpop.f32.mrb[7].mxu1 }
 0x103   :  { %2461 = vmatmul.mubr.bf16.gmra.mrb[112].mxu0 %v2723_v58 }
 0x104   :  { %2558 = vmatmul.mubr.bf16.gmra.mrb[112].mxu1 %v2725_v61  ;;  %2468 = vmatprep.mubr.bf16.mxu0 %v2740_v62 }
 0x105   :  { %2565 = vmatprep.mubr.bf16.mxu1 %v2742_v1 }
 0x106   :  { %v2931_v5 = vpop.f32.mrb[8].mxu0 }
 0x107   :  { %v2995_v8 = vpop.f32.mrb[8].mxu1  ;;  %v2932_v9 = vpop.f32.mrb[9].mxu0 }
 0x108   :  { %v2996_v11 = vpop.f32.mrb[9].mxu1  ;;  %v2934_v12 = vpop.f32.mrb[10].mxu0 }
 0x109   :  { %v2998_v15 = vpop.f32.mrb[10].mxu1  ;;  %v2935_v16 = vpop.f32.mrb[11].mxu0 }
 0x10a   :  { %v2999_v18 = vpop.f32.mrb[11].mxu1 }
 0x10b   :  { %2469 = vmatmul.mubr.bf16.gmra.mrb[116].mxu0 %v2739_v10 }
 0x10c   :  { %2566 = vmatmul.mubr.bf16.gmra.mrb[116].mxu1 %v2741_v13  ;;  %2476 = vmatprep.mubr.bf16.mxu0 %v2756_v14 }
 0x10d   :  { %2573 = vmatprep.mubr.bf16.mxu1 %v2758_v17 }
 0x10e   :  { %v2937_v21 = vpop.f32.mrb[12].mxu0 }
 0x10f   :  { %v3001_v24 = vpop.f32.mrb[12].mxu1  ;;  %v2938_v25 = vpop.f32.mrb[13].mxu0 }
 0x110   :  { %v3002_v27 = vpop.f32.mrb[13].mxu1  ;;  %v2940_v28 = vpop.f32.mrb[14].mxu0 }
 0x111   :  { %v3004_v31 = vpop.f32.mrb[14].mxu1  ;;  %v2941_v32 = vpop.f32.mrb[15].mxu0 }
 0x112   :  { %v3005_v34 = vpop.f32.mrb[15].mxu1 }
 0x113   :  { %2477 = vmatmul.mubr.bf16.gmra.mrb[120].mxu0 %v2755_v26 }
 0x114   :  { %2574 = vmatmul.mubr.bf16.gmra.mrb[120].mxu1 %v2757_v29  ;;  %2484 = vmatprep.mubr.bf16.mxu0 %v2772_v30 }
 0x115   :  { %2581 = vmatprep.mubr.bf16.mxu1 %v2774_v33 }
 0x116   :  { %v2943_v35 = vpop.f32.mrb[16].mxu0 }
 0x117   :  { %v3007_v36 = vpop.f32.mrb[16].mxu1  ;;  %v2944_v37 = vpop.f32.mrb[17].mxu0 }
 0x118   :  { %v3008_v39 = vpop.f32.mrb[17].mxu1  ;;  %v2946_v40 = vpop.f32.mrb[18].mxu0 }
 0x119   :  { %v3010_v42 = vpop.f32.mrb[18].mxu1  ;;  %v2947_v43 = vpop.f32.mrb[19].mxu0 }
 0x11a   :  { %v3011_v44 = vpop.f32.mrb[19].mxu1 }
 0x11b   :  { %2485 = vmatmul.mubr.bf16.gmra.mrb[124].mxu0 %v2771_v38 }
 0x11c   :  { %2582 = vmatmul.mubr.bf16.gmra.mrb[124].mxu1 %v2773_v41 }
 0x11e   :  { %v2949_v45 = vpop.f32.mrb[20].mxu0 }
 0x11f   :  { %v3013_v46 = vpop.f32.mrb[20].mxu1  ;;  %v2950_v47 = vpop.f32.mrb[21].mxu0 }
 0x120   :  { %v3014_v48 = vpop.f32.mrb[21].mxu1  ;;  %v2952_v49 = vpop.f32.mrb[22].mxu0 }
 0x121   :  { %v3016_v51 = vpop.f32.mrb[22].mxu1  ;;  %v2953_v52 = vpop.f32.mrb[23].mxu0 }
 0x122   :  { %v3017_v53 = vpop.f32.mrb[23].mxu1 }
 0x126   :  { %v2955_v54 = vpop.f32.mrb[24].mxu0 }
 0x127   :  { %v3019_v55 = vpop.f32.mrb[24].mxu1  ;;  %v2956_v56 = vpop.f32.mrb[25].mxu0 }
 0x128   :  { %v3020_v57 = vpop.f32.mrb[25].mxu1  ;;  %v2958_v58 = vpop.f32.mrb[26].mxu0 }
 0x129   :  { %v3022_v59 = vpop.f32.mrb[26].mxu1  ;;  %v2959_v60 = vpop.f32.mrb[27].mxu0 }
 0x12a   :  { %v3023_v61 = vpop.f32.mrb[27].mxu1 }
 0x12e   :  { %v2961_v62 = vpop.f32.mrb[28].mxu0 }
 0x12f   :  { %v3025_v63 = vpop.f32.mrb[28].mxu1  ;;  %v2962_v0 = vpop.f32.mrb[29].mxu0 }
 0x130   :  { %v3026_v1 = vpop.f32.mrb[29].mxu1  ;;  %v2964_v2 = vpop.f32.mrb[30].mxu0 }
 0x131   :  { %v3028_v3 = vpop.f32.mrb[30].mxu1  ;;  %v2965_v4 = vpop.f32.mrb[31].mxu0 }
 0x132   :  { %v3029_v5 = vpop.f32.mrb[31].mxu1 }
 0x136   :  { %v3047_v6 = vpop.f32.mrb[32].mxu0 }
 0x137   :  { %v3111_v7 = vpop.f32.mrb[32].mxu1  ;;  %v3048_v8 = vpop.f32.mrb[33].mxu0 }
 0x138   :  { %v3049_v9 = vadd.f32 %v3048_v8, %v3047_v6  ;;  %v3112_v10 = vpop.f32.mrb[33].mxu1  ;;  %v3050_v11 = vpop.f32.mrb[34].mxu0 }
 0x139   :  { %v3113_v12 = vadd.f32 %v3112_v10, %v3111_v7  ;;  %v3114_v13 = vpop.f32.mrb[34].mxu1  ;;  %v3051_v14 = vpop.f32.mrb[35].mxu0 }
 0x13a   :  { %v2043_v15 = vadd.f32 %v3049_v9, %v4298_v50  ;;  %v3115_v16 = vpop.f32.mrb[35].mxu1 }
 0x13c   :  { %v4337_v17 = vadd.f32 %v3113_v12, %v2043_v15 }
 0x13e   :  { %v3053_v18 = vpop.f32.mrb[36].mxu0 }
 0x13f   :  { %v3117_v19 = vpop.f32.mrb[36].mxu1  ;;  %v3054_v20 = vpop.f32.mrb[37].mxu0 }
 0x140   :  { %v3118_v21 = vpop.f32.mrb[37].mxu1  ;;  %v3056_v22 = vpop.f32.mrb[38].mxu0 }
 0x141   :  { %v3120_v23 = vpop.f32.mrb[38].mxu1  ;;  %v3057_v24 = vpop.f32.mrb[39].mxu0 }
 0x142   :  { %v3121_v25 = vpop.f32.mrb[39].mxu1 }
 0x146   :  { %v3059_v26 = vpop.f32.mrb[40].mxu0 }
 0x147   :  { %v3123_v27 = vpop.f32.mrb[40].mxu1  ;;  %v3060_v28 = vpop.f32.mrb[41].mxu0 }
 0x148   :  { %v3124_v29 = vpop.f32.mrb[41].mxu1  ;;  %v3062_v30 = vpop.f32.mrb[42].mxu0 }
 0x149   :  { %v3126_v31 = vpop.f32.mrb[42].mxu1  ;;  %v3063_v32 = vpop.f32.mrb[43].mxu0 }
 0x14a   :  { %v3127_v33 = vpop.f32.mrb[43].mxu1 }
 0x14e   :  { %v3065_v50 = vpop.f32.mrb[44].mxu0 }
 0x14f   :  { %v3129_v34 = vpop.f32.mrb[44].mxu1  ;;  %v3066_v35 = vpop.f32.mrb[45].mxu0 }
 0x150   :  { %v3130_v36 = vpop.f32.mrb[45].mxu1  ;;  %v3068_v37 = vpop.f32.mrb[46].mxu0 }
 0x151   :  { %v3132_v38 = vpop.f32.mrb[46].mxu1  ;;  %v3069_v39 = vpop.f32.mrb[47].mxu0 }
 0x152   :  { %v3133_v40 = vpop.f32.mrb[47].mxu1 }
 0x156   :  { %v3071_v41 = vpop.f32.mrb[48].mxu0 }
 0x157   :  { %v3135_v42 = vpop.f32.mrb[48].mxu1  ;;  %v3072_v43 = vpop.f32.mrb[49].mxu0 }
 0x158   :  { %v3136_v44 = vpop.f32.mrb[49].mxu1  ;;  %v3074_v45 = vpop.f32.mrb[50].mxu0 }
 0x159   :  { %v3138_v46 = vpop.f32.mrb[50].mxu1  ;;  %v3075_v47 = vpop.f32.mrb[51].mxu0 }
 0x15a   :  { %v3139_v48 = vpop.f32.mrb[51].mxu1 }
 0x15e   :  { %v3077_v49 = vpop.f32.mrb[52].mxu0 }
 0x15f   :  { %v3141_v51 = vpop.f32.mrb[52].mxu1  ;;  %v3078_v52 = vpop.f32.mrb[53].mxu0 }
 0x160   :  { %v3142_v53 = vpop.f32.mrb[53].mxu1  ;;  %v3080_v54 = vpop.f32.mrb[54].mxu0 }
 0x161   :  { %v3144_v55 = vpop.f32.mrb[54].mxu1  ;;  %v3081_v56 = vpop.f32.mrb[55].mxu0 }
 0x162   :  { %v3145_v57 = vpop.f32.mrb[55].mxu1 }
 0x166   :  { %v3083_v58 = vpop.f32.mrb[56].mxu0 }
 0x167   :  { %v3147_v59 = vpop.f32.mrb[56].mxu1  ;;  %v3084_v60 = vpop.f32.mrb[57].mxu0 }
 0x168   :  { %v3148_v61 = vpop.f32.mrb[57].mxu1  ;;  %v3086_v62 = vpop.f32.mrb[58].mxu0 }
 0x169   :  { %v3150_v63 = vpop.f32.mrb[58].mxu1  ;;  %v3087_v0 = vpop.f32.mrb[59].mxu0 }
 0x16a   :  { %v3151_v1 = vpop.f32.mrb[59].mxu1 }
 0x16e   :  { %v3089_v2 = vpop.f32.mrb[60].mxu0 }
 0x16f   :  { %v3153_v3 = vpop.f32.mrb[60].mxu1  ;;  %v3090_v4 = vpop.f32.mrb[61].mxu0 }
 0x170   :  { %v3154_v5 = vpop.f32.mrb[61].mxu1  ;;  %v3092_v6 = vpop.f32.mrb[62].mxu0 }
 0x171   :  { %v3156_v7 = vpop.f32.mrb[62].mxu1  ;;  %v3093_v8 = vpop.f32.mrb[63].mxu0 }
 0x172   :  { %v3157_v9 = vpop.f32.mrb[63].mxu1 }
 0x176   :  { %v3175_v10 = vpop.f32.mrb[64].mxu0 }
 0x177   :  { %v3239_v11 = vpop.f32.mrb[64].mxu1  ;;  %v3176_v12 = vpop.f32.mrb[65].mxu0 }
 0x178   :  { %v3177_v13 = vadd.f32 %v3176_v12, %v3175_v10  ;;  %v3240_v14 = vpop.f32.mrb[65].mxu1  ;;  %v3178_v15 = vpop.f32.mrb[66].mxu0 }
 0x179   :  { %v3241_v16 = vadd.f32 %v3240_v14, %v3239_v11  ;;  %v3242_v18 = vpop.f32.mrb[66].mxu1  ;;  %v3179_v19 = vpop.f32.mrb[67].mxu0 }
 0x17a   :  { %v2237_v20 = vadd.f32 %v3177_v13, %v4337_v17  ;;  %v3243_v21 = vpop.f32.mrb[67].mxu1 }
 0x17c   :  { %v4340_v22 = vadd.f32 %v3241_v16, %v2237_v20 }
 0x17e   :  { %v3181_v23 = vpop.f32.mrb[68].mxu0 }
 0x17f   :  { %v3245_v24 = vpop.f32.mrb[68].mxu1  ;;  %v3182_v25 = vpop.f32.mrb[69].mxu0 }
 0x180   :  { %v3246_v26 = vpop.f32.mrb[69].mxu1  ;;  %v3184_v27 = vpop.f32.mrb[70].mxu0 }
 0x181   :  { %v3248_v28 = vpop.f32.mrb[70].mxu1  ;;  %v3185_v29 = vpop.f32.mrb[71].mxu0 }
 0x182   :  { %v3249_v30 = vpop.f32.mrb[71].mxu1 }
 0x186   :  { %v3187_v31 = vpop.f32.mrb[72].mxu0 }
 0x187   :  { %v3251_v32 = vpop.f32.mrb[72].mxu1  ;;  %v3188_v33 = vpop.f32.mrb[73].mxu0 }
 0x188   :  { %v3252_v50 = vpop.f32.mrb[73].mxu1  ;;  %v3190_v34 = vpop.f32.mrb[74].mxu0 }
 0x189   :  { %v3254_v35 = vpop.f32.mrb[74].mxu1  ;;  %v3191_v36 = vpop.f32.mrb[75].mxu0 }
 0x18a   :  { %v3255_v37 = vpop.f32.mrb[75].mxu1 }
 0x18e   :  { %v3193_v17 = vpop.f32.mrb[76].mxu0 }
 0x18f   :  { %v3257_v38 = vpop.f32.mrb[76].mxu1  ;;  %v3194_v39 = vpop.f32.mrb[77].mxu0 }
 0x190   :  { %v3258_v40 = vpop.f32.mrb[77].mxu1  ;;  %v3196_v41 = vpop.f32.mrb[78].mxu0 }
 0x191   :  { %v3260_v42 = vpop.f32.mrb[78].mxu1  ;;  %v3197_v43 = vpop.f32.mrb[79].mxu0 }
 0x192   :  { %v3261_v44 = vpop.f32.mrb[79].mxu1 }
 0x196   :  { %v3199_v45 = vpop.f32.mrb[80].mxu0 }
 0x197   :  { %v3263_v46 = vpop.f32.mrb[80].mxu1  ;;  %v3200_v47 = vpop.f32.mrb[81].mxu0 }
 0x198   :  { %v3264_v48 = vpop.f32.mrb[81].mxu1  ;;  %v3202_v49 = vpop.f32.mrb[82].mxu0 }
 0x199   :  { %v3266_v51 = vpop.f32.mrb[82].mxu1  ;;  %v3203_v52 = vpop.f32.mrb[83].mxu0 }
 0x19a   :  { %v3267_v53 = vpop.f32.mrb[83].mxu1 }
 0x19e   :  { %v3205_v54 = vpop.f32.mrb[84].mxu0 }
 0x19f   :  { %v3269_v55 = vpop.f32.mrb[84].mxu1  ;;  %v3206_v56 = vpop.f32.mrb[85].mxu0 }
 0x1a0   :  { %v3270_v57 = vpop.f32.mrb[85].mxu1  ;;  %v3208_v58 = vpop.f32.mrb[86].mxu0 }
 0x1a1   :  { %v3272_v59 = vpop.f32.mrb[86].mxu1  ;;  %v3209_v60 = vpop.f32.mrb[87].mxu0 }
 0x1a2   :  { %v3273_v61 = vpop.f32.mrb[87].mxu1 }
 0x1a6   :  { %v3211_v62 = vpop.f32.mrb[88].mxu0 }
 0x1a7   :  { %v3275_v63 = vpop.f32.mrb[88].mxu1  ;;  %v3212_v0 = vpop.f32.mrb[89].mxu0 }
 0x1a8   :  { %v3276_v1 = vpop.f32.mrb[89].mxu1  ;;  %v3214_v2 = vpop.f32.mrb[90].mxu0 }
 0x1a9   :  { %v3278_v3 = vpop.f32.mrb[90].mxu1  ;;  %v3215_v4 = vpop.f32.mrb[91].mxu0 }
 0x1aa   :  { %v3279_v5 = vpop.f32.mrb[91].mxu1 }
 0x1ae   :  { %v3217_v6 = vpop.f32.mrb[92].mxu0 }
 0x1af   :  { %v3281_v7 = vpop.f32.mrb[92].mxu1  ;;  %v3218_v8 = vpop.f32.mrb[93].mxu0 }
 0x1b0   :  { %v3282_v9 = vpop.f32.mrb[93].mxu1  ;;  %v3220_v10 = vpop.f32.mrb[94].mxu0 }
 0x1b1   :  { %v3284_v11 = vpop.f32.mrb[94].mxu1  ;;  %v3221_v12 = vpop.f32.mrb[95].mxu0 }
 0x1b2   :  { %v3285_v13 = vpop.f32.mrb[95].mxu1 }
 0x1b6   :  { %v3303_v14 = vpop.f32.mrb[96].mxu0 }
 0x1b7   :  { %v3367_v15 = vpop.f32.mrb[96].mxu1  ;;  %v3304_v16 = vpop.f32.mrb[97].mxu0 }
 0x1b8   :  { %v3305_v18 = vadd.f32 %v3304_v16, %v3303_v14  ;;  %v3368_v19 = vpop.f32.mrb[97].mxu1  ;;  %v3306_v20 = vpop.f32.mrb[98].mxu0 }
 0x1b9   :  { %v3369_v21 = vadd.f32 %v3368_v19, %v3367_v15  ;;  %v3370_v23 = vpop.f32.mrb[98].mxu1  ;;  %v3307_v24 = vpop.f32.mrb[99].mxu0 }
 0x1ba   :  { %v2431_v25 = vadd.f32 %v3305_v18, %v4340_v22  ;;  %v3371_v26 = vpop.f32.mrb[99].mxu1 }
 0x1bc   :  { %v2528_v27 = vadd.f32 %v3369_v21, %v2431_v25 }
 0x1be   :  { %2636 = vst [vmem:[%s4349_s3] sm:$0xff] %v2528_v27  ;;  %v3309_v28 = vpop.f32.mrb[100].mxu0 }
 0x1bf   :  { %v3373_v29 = vpop.f32.mrb[100].mxu1  ;;  %v3310_v30 = vpop.f32.mrb[101].mxu0 }
 0x1c0   :  { %v3374_v31 = vpop.f32.mrb[101].mxu1  ;;  %v3312_v32 = vpop.f32.mrb[102].mxu0 }
 0x1c1   :  { %v3376_v33 = vpop.f32.mrb[102].mxu1  ;;  %v3313_v50 = vpop.f32.mrb[103].mxu0 }
 0x1c2   :  { %v3377_v34 = vpop.f32.mrb[103].mxu1 }
 0x1c6   :  { %v3315_v35 = vpop.f32.mrb[104].mxu0 }
 0x1c7   :  { %v3379_v36 = vpop.f32.mrb[104].mxu1  ;;  %v3316_v37 = vpop.f32.mrb[105].mxu0 }
 0x1c8   :  { %v3380_v17 = vpop.f32.mrb[105].mxu1  ;;  %v3318_v38 = vpop.f32.mrb[106].mxu0 }
 0x1c9   :  { %v3382_v22 = vpop.f32.mrb[106].mxu1  ;;  %v3319_v39 = vpop.f32.mrb[107].mxu0 }
 0x1ca   :  { %v3383_v40 = vpop.f32.mrb[107].mxu1 }
 0x1ce   :  { %v3321_v41 = vpop.f32.mrb[108].mxu0 }
 0x1cf   :  { %v3385_v42 = vpop.f32.mrb[108].mxu1  ;;  %v3322_v43 = vpop.f32.mrb[109].mxu0 }
 0x1d0   :  { %v3386_v44 = vpop.f32.mrb[109].mxu1  ;;  %v3324_v45 = vpop.f32.mrb[110].mxu0 }
 0x1d1   :  { %v3388_v46 = vpop.f32.mrb[110].mxu1  ;;  %v3325_v47 = vpop.f32.mrb[111].mxu0 }
 0x1d2   :  { %v3389_v48 = vpop.f32.mrb[111].mxu1 }
 0x1d6   :  { %v3327_v49 = vpop.f32.mrb[112].mxu0 }
 0x1d7   :  { %v3391_v51 = vpop.f32.mrb[112].mxu1  ;;  %v3328_v52 = vpop.f32.mrb[113].mxu0 }
 0x1d8   :  { %v3392_v53 = vpop.f32.mrb[113].mxu1  ;;  %v3330_v54 = vpop.f32.mrb[114].mxu0 }
 0x1d9   :  { %v3394_v55 = vpop.f32.mrb[114].mxu1  ;;  %v3331_v56 = vpop.f32.mrb[115].mxu0 }
 0x1da   :  { %v3395_v57 = vpop.f32.mrb[115].mxu1 }
 0x1de   :  { %v3333_v58 = vpop.f32.mrb[116].mxu0 }
 0x1df   :  { %v3397_v59 = vpop.f32.mrb[116].mxu1  ;;  %v3334_v60 = vpop.f32.mrb[117].mxu0 }
 0x1e0   :  { %v3398_v61 = vpop.f32.mrb[117].mxu1  ;;  %v3336_v62 = vpop.f32.mrb[118].mxu0 }
 0x1e1   :  { %v3400_v63 = vpop.f32.mrb[118].mxu1  ;;  %v3337_v0 = vpop.f32.mrb[119].mxu0 }
 0x1e2   :  { %v3401_v1 = vpop.f32.mrb[119].mxu1 }
 0x1e6   :  { %v3339_v2 = vpop.f32.mrb[120].mxu0 }
 0x1e7   :  { %v3403_v3 = vpop.f32.mrb[120].mxu1  ;;  %v3340_v4 = vpop.f32.mrb[121].mxu0 }
 0x1e8   :  { %v3404_v5 = vpop.f32.mrb[121].mxu1  ;;  %v3342_v6 = vpop.f32.mrb[122].mxu0 }
 0x1e9   :  { %v3406_v7 = vpop.f32.mrb[122].mxu1  ;;  %v3343_v8 = vpop.f32.mrb[123].mxu0 }
 0x1ea   :  { %v3407_v9 = vpop.f32.mrb[123].mxu1 }
 0x1ee   :  { %v3345_v10 = vpop.f32.mrb[124].mxu0 }
 0x1ef   :  { %v3409_v11 = vpop.f32.mrb[124].mxu1  ;;  %v3346_v12 = vpop.f32.mrb[125].mxu0 }
 0x1f0   :  { %v3410_v13 = vpop.f32.mrb[125].mxu1  ;;  %v3348_v14 = vpop.f32.mrb[126].mxu0 }
 0x1f1   :  { %v3412_v15 = vpop.f32.mrb[126].mxu1  ;;  %v3349_v16 = vpop.f32.mrb[127].mxu0 }
 0x1f2   :  { %v3413_v18 = vpop.f32.mrb[127].mxu1 }

</bundles_post_ra>
